<compile_context>
chip_gen: v7x
topology: tpu7x:2x2x1
jax: 0.10.0
libtpu: 0.0.40
codegen_flags: <defaults>
</compile_context>

<pallas_src>
import functools

import jax
import jax.numpy as jnp
from jax.experimental import pallas as pl
from jax.experimental.pallas import tpu as pltpu

PAD_INDEX = 0
EPS = 1e-8
NEG_INF = -1e30


def _squash(x):
    """CapsNet squash along the last dim (exact MAMS form: 1/(|x|+eps))."""
    sq = jnp.sum(x * x, axis=-1, keepdims=True)
    return x * (sq / (1.0 + sq)) / (jnp.sqrt(sq) + EPS)


def capsnet_kernel(sent_ref, asp_ref, maskc_ref, wpack_ref, wfold_ref, bpack_ref,
                   scale_ref, out_ref, *, E, H, C, K, Kpad, L, TB):
    sent = sent_ref[...]                         # (TB*L, E)  f32
    asp = asp_ref[...]                           # (TB, E)    f32
    maskc = maskc_ref[...]                       # (TB*L, 1)  f32  (token mask, column)

    # Packed parameters (sliced directly off the refs).
    w_enc = wpack_ref[0, :E, :H]                 # bf16
    w_sent = wpack_ref[1, :H, :C]
    w_asp = wpack_ref[2, :E, :C]
    w_att = wpack_ref[3, :C, :C]
    w_fold = wfold_ref[...]                      # (C, Kpad) bf16: guide_weight @ squash(gc)^T
    b_sent = bpack_ref[0:1, :]                   # (1, C) f32
    b_asp = bpack_ref[1:2, :]
    scale = scale_ref[0, 0]

    # --- stand-in _sentence_encode: tanh(Linear(E->H)), fused, flattened over TB*L rows
    hid = jnp.tanh(jnp.dot(sent.astype(jnp.bfloat16), w_enc,
                           preferred_element_type=jnp.float32))               # (TB*L, H)

    # --- sentence_transform (dropout = identity) + squash -> primary capsules
    prim = _squash(jnp.dot(hid.astype(jnp.bfloat16), w_sent,
                           preferred_element_type=jnp.float32) + b_sent)      # (TB*L, C)
    prim_bf = prim.astype(jnp.bfloat16)

    # --- aspect_transform (dropout = identity) + squash, then bilinear query q = ac @ W
    ac = _squash(jnp.dot(asp.astype(jnp.bfloat16), w_asp,
                         preferred_element_type=jnp.float32) + b_asp)         # (TB, C)
    q = jnp.dot(ac.astype(jnp.bfloat16), w_att,
                preferred_element_type=jnp.float32)                           # (TB, C)

    # --- routing logits + softmax over the K real categories (flat, lane-dense)
    logits = jnp.dot(prim_bf, w_fold, preferred_element_type=jnp.float32)     # (TB*L, Kpad)
    real = jax.lax.broadcasted_iota(jnp.int32, (TB * L, Kpad), 1) < K
    logits = jnp.where(real, logits, NEG_INF)
    ge = jnp.where(real, jnp.exp(logits - jnp.max(logits, axis=-1, keepdims=True)), 0.0)
    sm = ge * (1.0 / jnp.sum(ge, axis=-1, keepdims=True))                     # exact recip
    sm_bf = sm.astype(jnp.bfloat16)

    # --- per-row: bilinear attention softmax (tiny), weighted routing contraction,
    #     analytic ||squash(category_capsule)||.  Static loop -> static slices/stores.
    out_rows = []
    for b in range(TB):
        p_b = prim[b * L:(b + 1) * L, :]                                      # (L, C) f32
        sc = jnp.sum(p_b * q[b:b + 1, :], axis=-1, keepdims=True)             # (L, 1)
        valid = maskc[b * L:(b + 1) * L, :] > 0.5
        sc = jnp.where(valid, sc, NEG_INF)
        e = jnp.where(valid, jnp.exp(sc - jnp.max(sc, axis=0, keepdims=True)), 0.0)
        den = jnp.maximum(jnp.sum(e, axis=0, keepdims=True), EPS)             # all-PAD guard
        nw = e * (scale / den)                                                # scale folded in
        # category capsules, (C, Kpad) orientation: cat = (nw .* prim)^T @ sm
        pw_bf = (p_b * nw).astype(jnp.bfloat16)                               # (L, C)
        cat_t = jax.lax.dot_general(pw_bf, sm_bf[b * L:(b + 1) * L, :],
                                    (((0,), (0,)), ((), ())),
                                    preferred_element_type=jnp.float32)       # (C, Kpad)
        # ||squash(c)|| = (s/(1+s)) * sqrt(s)/(sqrt(s)+eps), s = ||c||^2 (dropout = id)
        s = jnp.sum(cat_t * cat_t, axis=0, keepdims=True)                     # (1, Kpad)
        r = jnp.sqrt(s)
        out_rows.append((s / (1.0 + s)) * (r / (r + EPS)))                    # pad lanes -> 0
    out_ref[...] = jnp.concatenate(out_rows, axis=0)                          # (TB, Kpad)


def _pack(mats, dtype):
    rmax = max(m.shape[0] for m in mats)
    cmax = max(m.shape[1] for m in mats)
    return jnp.stack([jnp.pad(m, ((0, rmax - m.shape[0]), (0, cmax - m.shape[1])))
                      for m in mats]).astype(dtype)


def _choose_tb(B, L, target_rows=256, min_steps=2):
    """~target_rows rows/step fills the MXU (v6e/v7x); >=min_steps steps keep both v7x
    TensorCores busy; TB is rounded to a multiple of 8 so 2-D blocks are sublane-aligned."""
    tb = max(1, target_rows // max(L, 1))
    if B > 1:
        tb = min(tb, -(-B // min_steps))
    tb = -(-tb // 8) * 8
    return min(tb, -(-B // 8) * 8)


def capsule_network_pallas(sent_emb, asp_emb, mask_f, params, *, lane_pad=128):
    B, L, E = sent_emb.shape
    H = params['w_enc'].shape[1]
    C = params['w_sent'].shape[1]
    K = params['guide_capsule'].shape[0]
    Kpad = max(lane_pad, K)

    TB = _choose_tb(B, L)
    steps = -(-B // TB)
    Bp = steps * TB
    pad = Bp - B

    # Fold guide_weight @ squash(guide_capsule)^T once per call (parameter-only).
    gc = params['guide_capsule']
    sq = jnp.sum(gc * gc, axis=-1, keepdims=True)
    gc_sq = gc * (sq / (1.0 + sq)) / (jnp.sqrt(sq) + EPS)
    w_fold = jnp.pad(params['guide_weight'] @ gc_sq.T,
                     ((0, 0), (0, Kpad - K))).astype(jnp.bfloat16)            # (C, Kpad)

    wpack = _pack([params['w_enc'], params['w_sent'], params['w_asp'],
                   params['w_att']], jnp.bfloat16)                            # (4, Rmax, Cmax)
    bpack = jnp.stack([params['b_sent'].reshape(C),
                       params['b_asp'].reshape(C)]).astype(jnp.float32)       # (2, C)
    scale = params['scale'].reshape(1, 1).astype(jnp.float32)

    # Pad the batch to a multiple of TB; padded rows have an all-zero mask -> output 0.
    sent_flat = jnp.pad(sent_emb, ((0, pad), (0, 0), (0, 0))).reshape(Bp * L, E)
    asp_p = jnp.pad(asp_emb, ((0, pad), (0, 0)))
    mask_col = jnp.pad(mask_f, ((0, pad), (0, 0))).reshape(Bp * L, 1)

    NW, Rmax, Cmax = wpack.shape
    kernel = functools.partial(capsnet_kernel, E=E, H=H, C=C, K=K, Kpad=Kpad, L=L, TB=TB)

    flops = 2 * Bp * L * (E * H + H * C + 2 * C * Kpad + C) + 2 * Bp * C * (E + C)
    transc = Bp * L * (H + Kpad + 1) + 8 * Bp
    bytes_acc = (4 * (sent_flat.size + asp_p.size + mask_col.size + Bp * Kpad + bpack.size + 1)
                 + 2 * (wpack.size + w_fold.size))

    out = pl.pallas_call(
        kernel,
        out_shape=jax.ShapeDtypeStruct((Bp, Kpad), jnp.float32),
        grid=(steps,),
        in_specs=[
            pl.BlockSpec((TB * L, E), lambda i: (i, 0)),        # flattened sentence embeddings
            pl.BlockSpec((TB, E), lambda i: (i, 0)),            # aspect embeddings
            pl.BlockSpec((TB * L, 1), lambda i: (i, 0)),        # token mask (column layout)
            pl.BlockSpec((NW, Rmax, Cmax), lambda i: (0, 0, 0)),  # packed bf16 weights
            pl.BlockSpec((C, Kpad), lambda i: (0, 0)),          # folded routing matrix
            pl.BlockSpec((2, C), lambda i: (0, 0)),             # packed f32 biases
            pl.BlockSpec(memory_space=pltpu.MemorySpace.SMEM),  # scale scalar
        ],
        out_specs=pl.BlockSpec((TB, Kpad), lambda i: (i, 0)),   # lane+sublane-dense store
        compiler_params=pltpu.CompilerParams(
            dimension_semantics=("parallel",),                  # v7x: 2 TCs split the steps
            vmem_limit_bytes=32 * 1024 * 1024),
        cost_estimate=pl.CostEstimate(flops=int(flops), transcendentals=int(transc),
                                      bytes_accessed=int(bytes_acc)),
    )(sent_flat, asp_p, mask_col, wpack, w_fold, bpack, scale)
    return out[:B, :K]


# ----------------------------------------------------------------------------
# Plain-JAX glue reproducing the (non-kernel) parts of CapsuleNetwork.forward
# ----------------------------------------------------------------------------
def forward(sentence_ids, aspect_ids, category_alpha, params):
    # TODO(synk): sentence_clip (trims trailing all-PAD columns) is shape-dynamic and is
    # skipped; the attention mask makes PAD positions contribute exactly nothing.
    mask = (sentence_ids != PAD_INDEX).astype(jnp.float32)                  # (B, L)

    sent_emb = jnp.take(params['embedding'], sentence_ids, axis=0)          # (B, L, E)
    asp_emb = jnp.take(params['embedding'], aspect_ids, axis=0)             # (B, E)

    # element_wise_mul + cav/cam are only consumed by the abstract _sentence_encode in the
    # reference model; computed for fidelity, unused by the stand-in encoder.
    caml = sent_emb * category_alpha[:, :, None]
    cavl = jnp.sum(caml, axis=1)
    cav = jnp.concatenate([cavl, asp_emb], axis=-1)
    cam = jnp.concatenate(
        [caml, jnp.repeat(asp_emb[:, None, :], sent_emb.shape[1], axis=1)], axis=-1)
    del cav, cam

    # TODO(synk): _sentence_encode raises NotImplementedError in the reference module;
    # a deterministic tanh-linear stand-in (w_enc) is fused inside the Pallas kernel.
    return capsule_network_pallas(sent_emb, asp_emb, mask, params)


# ----------------------------------------------------------------------------
# Deterministic synthetic setup
# ----------------------------------------------------------------------------
def xavier_uniform(key, shape):
    fan_in, fan_out = shape[0], shape[1]
    bound = (6.0 / (fan_in + fan_out)) ** 0.5
    return jax.random.uniform(key, shape, jnp.float32, -bound, bound)


if __name__ == "__main__":
    B, L, V = 10, 16, 50         # batch, seq len, vocab (B exercises batch padding: Bp=16)
    E, H, C, K = 32, 32, 32, 8   # embed, hidden, capsule_size, num_categories

    key = jax.random.PRNGKey(0)
    ks = jax.random.split(key, 12)

    params = {
        'embedding':     0.1 * jax.random.normal(ks[0], (V, E), jnp.float32),
        'w_enc':         xavier_uniform(ks[1], (E, H)),
        'w_sent':        xavier_uniform(ks[2], (H, C)),
        'b_sent':        jnp.zeros((1, C), jnp.float32),
        'w_asp':         xavier_uniform(ks[3], (E, C)),
        'b_asp':         jnp.zeros((1, C), jnp.float32),
        'w_att':         xavier_uniform(ks[4], (C, C)),
        'guide_capsule': xavier_uniform(ks[5], (K, C)),
        'guide_weight':  xavier_uniform(ks[6], (C, C)),
        'scale':         jnp.full((1, 1), 5.0, jnp.float32),
    }

    sentence_ids = jax.random.randint(ks[7], (B, L), 1, V)
    # trailing PAD tokens to exercise the mask
    sentence_ids = sentence_ids.at[:, -3:].set(PAD_INDEX)
    aspect_ids = jax.random.randint(ks[8], (B,), 1, V)
    category_alpha = jax.nn.softmax(jax.random.normal(ks[9], (B, L)), axis=-1)

    fwd = jax.jit(forward)
    out = jax.block_until_ready(fwd(sentence_ids, aspect_ids, category_alpha, params))
    assert out.shape == (B, K) and out.dtype == jnp.float32
    assert bool(jnp.all(jnp.isfinite(out)))
    print("KERNEL_OK")
</pallas_src>

<mosaic_0001>
module attributes {stable_mosaic.version = 11 : i64} {
  func.func @capsnet_kernel(%arg0: i32, %arg1: memref<128x32xf32, #tpu.memory_space<vmem>>, %arg2: memref<8x32xf32, #tpu.memory_space<vmem>>, %arg3: memref<128x1xf32, #tpu.memory_space<vmem>>, %arg4: memref<4x32x32xbf16, #tpu.memory_space<vmem>>, %arg5: memref<32x128xbf16, #tpu.memory_space<vmem>>, %arg6: memref<2x32xf32, #tpu.memory_space<vmem>>, %arg7: memref<1x1xf32, #tpu.memory_space<smem>>, %arg8: memref<8x128xf32, #tpu.memory_space<vmem>>) attributes {dimension_semantics = [#tpu.dimension_semantics<parallel>], iteration_bounds = array<i64: 2>, scalar_prefetch = 0 : i64, scratch_operands = 0 : i64, tpu.core_type = #tpu.core_type<tc>, window_params = [{transform_indices = @transform_0, window_bounds = array<i64: 128, 32>}, {transform_indices = @transform_1, window_bounds = array<i64: 8, 32>}, {transform_indices = @transform_2, window_bounds = array<i64: 128, 1>}, {pipeline_mode = #tpu.pipeline_mode<synchronous>, transform_indices = @transform_3, window_bounds = array<i64: 4, 32, 32>}, {pipeline_mode = #tpu.pipeline_mode<synchronous>, transform_indices = @transform_4, window_bounds = array<i64: 32, 128>}, {pipeline_mode = #tpu.pipeline_mode<synchronous>, transform_indices = @transform_5, window_bounds = array<i64: 2, 32>}, {transform_indices = @transform_6, window_bounds = array<i64: 1, 1>}, {transform_indices = @transform_7, window_bounds = array<i64: 8, 128>}]} {
    %c0 = arith.constant 0 : index
    %c0_0 = arith.constant 0 : index
    %0 = vector.load %arg1[%c0, %c0_0] : memref<128x32xf32, #tpu.memory_space<vmem>>, vector<128x32xf32>
    %c0_1 = arith.constant 0 : index
    %c0_2 = arith.constant 0 : index
    %1 = vector.load %arg2[%c0_1, %c0_2] : memref<8x32xf32, #tpu.memory_space<vmem>>, vector<8x32xf32>
    %c0_3 = arith.constant 0 : index
    %c0_4 = arith.constant 0 : index
    %2 = vector.load %arg3[%c0_3, %c0_4] : memref<128x1xf32, #tpu.memory_space<vmem>>, vector<128x1xf32>
    %c0_5 = arith.constant 0 : index
    %c0_6 = arith.constant 0 : index
    %c0_7 = arith.constant 0 : index
    %3 = vector.load %arg4[%c0_5, %c0_6, %c0_7] : memref<4x32x32xbf16, #tpu.memory_space<vmem>>, vector<1x32x32xbf16>
    %4 = vector.shape_cast %3 : vector<1x32x32xbf16> to vector<32x32xbf16>
    %c1 = arith.constant 1 : index
    %c0_8 = arith.constant 0 : index
    %c0_9 = arith.constant 0 : index
    %5 = vector.load %arg4[%c1, %c0_8, %c0_9] : memref<4x32x32xbf16, #tpu.memory_space<vmem>>, vector<1x32x32xbf16>
    %6 = vector.shape_cast %5 : vector<1x32x32xbf16> to vector<32x32xbf16>
    %c2 = arith.constant 2 : index
    %c0_10 = arith.constant 0 : index
    %c0_11 = arith.constant 0 : index
    %7 = vector.load %arg4[%c2, %c0_10, %c0_11] : memref<4x32x32xbf16, #tpu.memory_space<vmem>>, vector<1x32x32xbf16>
    %8 = vector.shape_cast %7 : vector<1x32x32xbf16> to vector<32x32xbf16>
    %c3 = arith.constant 3 : index
    %c0_12 = arith.constant 0 : index
    %c0_13 = arith.constant 0 : index
    %9 = vector.load %arg4[%c3, %c0_12, %c0_13] : memref<4x32x32xbf16, #tpu.memory_space<vmem>>, vector<1x32x32xbf16>
    %10 = vector.shape_cast %9 : vector<1x32x32xbf16> to vector<32x32xbf16>
    %c0_14 = arith.constant 0 : index
    %c0_15 = arith.constant 0 : index
    %11 = vector.load %arg5[%c0_14, %c0_15] : memref<32x128xbf16, #tpu.memory_space<vmem>>, vector<32x128xbf16>
    %c0_16 = arith.constant 0 : index
    %c0_17 = arith.constant 0 : index
    %12 = vector.load %arg6[%c0_16, %c0_17] : memref<2x32xf32, #tpu.memory_space<vmem>>, vector<1x32xf32>
    %c1_18 = arith.constant 1 : index
    %c0_19 = arith.constant 0 : index
    %13 = vector.load %arg6[%c1_18, %c0_19] : memref<2x32xf32, #tpu.memory_space<vmem>>, vector<1x32xf32>
    %c0_20 = arith.constant 0 : index
    %c0_21 = arith.constant 0 : index
    %14 = memref.load %arg7[%c0_20, %c0_21] : memref<1x1xf32, #tpu.memory_space<smem>>
    %15 = arith.truncf %0 : vector<128x32xf32> to vector<128x32xbf16>
    %cst = arith.constant dense<0.000000e+00> : vector<128x32xf32>
    %16 = tpu.matmul %15, %4, %cst {dimension_numbers = #tpu.dot_dimension_numbers<[1], [0], [0], [1], [0, 0, 1, 1], [], []>} : vector<128x32xbf16>, vector<32x32xbf16>, vector<128x32xf32> -> vector<128x32xf32>
    %17 = math.tanh %16 : vector<128x32xf32>
    %18 = arith.truncf %17 : vector<128x32xf32> to vector<128x32xbf16>
    %cst_22 = arith.constant dense<0.000000e+00> : vector<128x32xf32>
    %19 = tpu.matmul %18, %6, %cst_22 {dimension_numbers = #tpu.dot_dimension_numbers<[1], [0], [0], [1], [0, 0, 1, 1], [], []>} : vector<128x32xbf16>, vector<32x32xbf16>, vector<128x32xf32> -> vector<128x32xf32>
    %20 = vector.broadcast %12 : vector<1x32xf32> to vector<128x32xf32>
    %21 = arith.addf %19, %20 : vector<128x32xf32>
    %22 = arith.mulf %21, %21 : vector<128x32xf32>
    %cst_23 = arith.constant dense<0.000000e+00> : vector<128xf32>
    %23 = vector.multi_reduction <add>, %22, %cst_23 [1] : vector<128x32xf32> to vector<128xf32>
    %24 = vector.shape_cast %23 : vector<128xf32> to vector<128x1xf32>
    %cst_24 = arith.constant 1.000000e+00 : f32
    %25 = vector.broadcast %cst_24 : f32 to vector<128x1xf32>
    %26 = arith.addf %25, %24 : vector<128x1xf32>
    %27 = arith.divf %24, %26 : vector<128x1xf32>
    %28 = vector.broadcast %27 : vector<128x1xf32> to vector<128x32xf32>
    %29 = arith.mulf %21, %28 : vector<128x32xf32>
    %30 = math.sqrt %24 : vector<128x1xf32>
    %cst_25 = arith.constant 9.99999993E-9 : f32
    %31 = vector.broadcast %cst_25 : f32 to vector<128x1xf32>
    %32 = arith.addf %30, %31 : vector<128x1xf32>
    %33 = vector.broadcast %32 : vector<128x1xf32> to vector<128x32xf32>
    %34 = arith.divf %29, %33 : vector<128x32xf32>
    %35 = arith.truncf %34 : vector<128x32xf32> to vector<128x32xbf16>
    %36 = arith.truncf %1 : vector<8x32xf32> to vector<8x32xbf16>
    %cst_26 = arith.constant dense<0.000000e+00> : vector<8x32xf32>
    %37 = tpu.matmul %36, %8, %cst_26 {dimension_numbers = #tpu.dot_dimension_numbers<[1], [0], [0], [1], [0, 0, 1, 1], [], []>} : vector<8x32xbf16>, vector<32x32xbf16>, vector<8x32xf32> -> vector<8x32xf32>
    %38 = vector.broadcast %13 : vector<1x32xf32> to vector<8x32xf32>
    %39 = arith.addf %37, %38 : vector<8x32xf32>
    %40 = arith.mulf %39, %39 : vector<8x32xf32>
    %cst_27 = arith.constant dense<0.000000e+00> : vector<8xf32>
    %41 = vector.multi_reduction <add>, %40, %cst_27 [1] : vector<8x32xf32> to vector<8xf32>
    %42 = vector.shape_cast %41 : vector<8xf32> to vector<8x1xf32>
    %cst_28 = arith.constant 1.000000e+00 : f32
    %43 = vector.broadcast %cst_28 : f32 to vector<8x1xf32>
    %44 = arith.addf %43, %42 : vector<8x1xf32>
    %45 = arith.divf %42, %44 : vector<8x1xf32>
    %46 = vector.broadcast %45 : vector<8x1xf32> to vector<8x32xf32>
    %47 = arith.mulf %39, %46 : vector<8x32xf32>
    %48 = math.sqrt %42 : vector<8x1xf32>
    %cst_29 = arith.constant 9.99999993E-9 : f32
    %49 = vector.broadcast %cst_29 : f32 to vector<8x1xf32>
    %50 = arith.addf %48, %49 : vector<8x1xf32>
    %51 = vector.broadcast %50 : vector<8x1xf32> to vector<8x32xf32>
    %52 = arith.divf %47, %51 : vector<8x32xf32>
    %53 = arith.truncf %52 : vector<8x32xf32> to vector<8x32xbf16>
    %cst_30 = arith.constant dense<0.000000e+00> : vector<8x32xf32>
    %54 = tpu.matmul %53, %10, %cst_30 {dimension_numbers = #tpu.dot_dimension_numbers<[1], [0], [0], [1], [0, 0, 1, 1], [], []>} : vector<8x32xbf16>, vector<32x32xbf16>, vector<8x32xf32> -> vector<8x32xf32>
    %cst_31 = arith.constant dense<0.000000e+00> : vector<128x128xf32>
    %55 = tpu.matmul %35, %11, %cst_31 {dimension_numbers = #tpu.dot_dimension_numbers<[1], [0], [0], [1], [0, 0, 1, 1], [], []>} : vector<128x32xbf16>, vector<32x128xbf16>, vector<128x128xf32> -> vector<128x128xf32>
    %56 = tpu.iota {dimensions = array<i32: 1>} : vector<128x128xi32>
    %c8_i32 = arith.constant 8 : i32
    %57 = vector.broadcast %c8_i32 : i32 to vector<128x128xi32>
    %58 = arith.cmpi slt, %56, %57 : vector<128x128xi32>
    %cst_32 = arith.constant -1.000000e+30 : f32
    %59 = vector.broadcast %cst_32 : f32 to vector<128x128xf32>
    %60 = arith.select %58, %55, %59 : vector<128x128xi1>, vector<128x128xf32>
    %cst_33 = arith.constant dense<0xFF800000> : vector<128xf32>
    %61 = vector.multi_reduction <maximumf>, %60, %cst_33 [1] : vector<128x128xf32> to vector<128xf32>
    %62 = vector.shape_cast %61 : vector<128xf32> to vector<128x1xf32>
    %63 = vector.broadcast %62 : vector<128x1xf32> to vector<128x128xf32>
    %64 = arith.subf %60, %63 : vector<128x128xf32>
    %65 = math.exp %64 : vector<128x128xf32>
    %cst_34 = arith.constant 0.000000e+00 : f32
    %66 = vector.broadcast %cst_34 : f32 to vector<128x128xf32>
    %67 = arith.select %58, %65, %66 : vector<128x128xi1>, vector<128x128xf32>
    %cst_35 = arith.constant dense<0.000000e+00> : vector<128xf32>
    %68 = vector.multi_reduction <add>, %67, %cst_35 [1] : vector<128x128xf32> to vector<128xf32>
    %69 = vector.shape_cast %68 : vector<128xf32> to vector<128x1xf32>
    %cst_36 = arith.constant 1.000000e+00 : f32
    %70 = vector.broadcast %cst_36 : f32 to vector<128x1xf32>
    %71 = arith.divf %70, %69 : vector<128x1xf32>
    %72 = vector.broadcast %71 : vector<128x1xf32> to vector<128x128xf32>
    %73 = arith.mulf %67, %72 : vector<128x128xf32>
    %74 = arith.truncf %73 : vector<128x128xf32> to vector<128x128xbf16>
    %75 = vector.extract_strided_slice %34 {offsets = [0, 0], sizes = [16, 32], strides = [1, 1]} : vector<128x32xf32> to vector<16x32xf32>
    %76 = vector.extract_strided_slice %54 {offsets = [0, 0], sizes = [1, 32], strides = [1, 1]} : vector<8x32xf32> to vector<1x32xf32>
    %77 = vector.broadcast %76 : vector<1x32xf32> to vector<16x32xf32>
    %78 = arith.mulf %75, %77 : vector<16x32xf32>
    %cst_37 = arith.constant dense<0.000000e+00> : vector<16xf32>
    %79 = vector.multi_reduction <add>, %78, %cst_37 [1] : vector<16x32xf32> to vector<16xf32>
    %80 = vector.shape_cast %79 : vector<16xf32> to vector<16x1xf32>
    %81 = vector.extract_strided_slice %2 {offsets = [0, 0], sizes = [16, 1], strides = [1, 1]} : vector<128x1xf32> to vector<16x1xf32>
    %cst_38 = arith.constant 5.000000e-01 : f32
    %82 = vector.broadcast %cst_38 : f32 to vector<16x1xf32>
    %83 = arith.cmpf ogt, %81, %82 : vector<16x1xf32>
    %cst_39 = arith.constant -1.000000e+30 : f32
    %84 = vector.broadcast %cst_39 : f32 to vector<16x1xf32>
    %85 = arith.select %83, %80, %84 : vector<16x1xi1>, vector<16x1xf32>
    %cst_40 = arith.constant dense<0xFF800000> : vector<1xf32>
    %86 = vector.multi_reduction <maximumf>, %85, %cst_40 [0] : vector<16x1xf32> to vector<1xf32>
    %87 = vector.shape_cast %86 : vector<1xf32> to vector<1x1xf32>
    %88 = vector.broadcast %87 : vector<1x1xf32> to vector<16x1xf32>
    %89 = arith.subf %85, %88 : vector<16x1xf32>
    %90 = math.exp %89 : vector<16x1xf32>
    %cst_41 = arith.constant 0.000000e+00 : f32
    %91 = vector.broadcast %cst_41 : f32 to vector<16x1xf32>
    %92 = arith.select %83, %90, %91 : vector<16x1xi1>, vector<16x1xf32>
    %cst_42 = arith.constant dense<0.000000e+00> : vector<1xf32>
    %93 = vector.multi_reduction <add>, %92, %cst_42 [0] : vector<16x1xf32> to vector<1xf32>
    %94 = vector.shape_cast %93 : vector<1xf32> to vector<1x1xf32>
    %cst_43 = arith.constant 9.99999993E-9 : f32
    %95 = vector.broadcast %cst_43 : f32 to vector<1x1xf32>
    %96 = arith.maximumf %94, %95 : vector<1x1xf32>
    %97 = vector.broadcast %14 : f32 to vector<1x1xf32>
    %98 = arith.divf %97, %96 : vector<1x1xf32>
    %99 = vector.broadcast %98 : vector<1x1xf32> to vector<16x1xf32>
    %100 = arith.mulf %92, %99 : vector<16x1xf32>
    %101 = vector.broadcast %100 : vector<16x1xf32> to vector<16x32xf32>
    %102 = arith.mulf %75, %101 : vector<16x32xf32>
    %103 = arith.truncf %102 : vector<16x32xf32> to vector<16x32xbf16>
    %104 = vector.extract_strided_slice %74 {offsets = [0, 0], sizes = [16, 128], strides = [1, 1]} : vector<128x128xbf16> to vector<16x128xbf16>
    %cst_44 = arith.constant dense<0.000000e+00> : vector<32x128xf32>
    %105 = tpu.matmul %103, %104, %cst_44 {dimension_numbers = #tpu.dot_dimension_numbers<[0], [0], [1], [1], [0, 1, 1, 1], [], []>} : vector<16x32xbf16>, vector<16x128xbf16>, vector<32x128xf32> -> vector<32x128xf32>
    %106 = arith.mulf %105, %105 : vector<32x128xf32>
    %cst_45 = arith.constant dense<0.000000e+00> : vector<128xf32>
    %107 = vector.multi_reduction <add>, %106, %cst_45 [0] : vector<32x128xf32> to vector<128xf32>
    %108 = vector.shape_cast %107 : vector<128xf32> to vector<1x128xf32>
    %109 = math.sqrt %108 : vector<1x128xf32>
    %cst_46 = arith.constant 1.000000e+00 : f32
    %110 = vector.broadcast %cst_46 : f32 to vector<1x128xf32>
    %111 = arith.addf %110, %108 : vector<1x128xf32>
    %112 = arith.divf %108, %111 : vector<1x128xf32>
    %cst_47 = arith.constant 9.99999993E-9 : f32
    %113 = vector.broadcast %cst_47 : f32 to vector<1x128xf32>
    %114 = arith.addf %109, %113 : vector<1x128xf32>
    %115 = arith.divf %109, %114 : vector<1x128xf32>
    %116 = arith.mulf %112, %115 : vector<1x128xf32>
    %117 = vector.extract_strided_slice %34 {offsets = [16, 0], sizes = [16, 32], strides = [1, 1]} : vector<128x32xf32> to vector<16x32xf32>
    %118 = vector.extract_strided_slice %54 {offsets = [1, 0], sizes = [1, 32], strides = [1, 1]} : vector<8x32xf32> to vector<1x32xf32>
    %119 = vector.broadcast %118 : vector<1x32xf32> to vector<16x32xf32>
    %120 = arith.mulf %117, %119 : vector<16x32xf32>
    %cst_48 = arith.constant dense<0.000000e+00> : vector<16xf32>
    %121 = vector.multi_reduction <add>, %120, %cst_48 [1] : vector<16x32xf32> to vector<16xf32>
    %122 = vector.shape_cast %121 : vector<16xf32> to vector<16x1xf32>
    %123 = vector.extract_strided_slice %2 {offsets = [16, 0], sizes = [16, 1], strides = [1, 1]} : vector<128x1xf32> to vector<16x1xf32>
    %cst_49 = arith.constant 5.000000e-01 : f32
    %124 = vector.broadcast %cst_49 : f32 to vector<16x1xf32>
    %125 = arith.cmpf ogt, %123, %124 : vector<16x1xf32>
    %cst_50 = arith.constant -1.000000e+30 : f32
    %126 = vector.broadcast %cst_50 : f32 to vector<16x1xf32>
    %127 = arith.select %125, %122, %126 : vector<16x1xi1>, vector<16x1xf32>
    %cst_51 = arith.constant dense<0xFF800000> : vector<1xf32>
    %128 = vector.multi_reduction <maximumf>, %127, %cst_51 [0] : vector<16x1xf32> to vector<1xf32>
    %129 = vector.shape_cast %128 : vector<1xf32> to vector<1x1xf32>
    %130 = vector.broadcast %129 : vector<1x1xf32> to vector<16x1xf32>
    %131 = arith.subf %127, %130 : vector<16x1xf32>
    %132 = math.exp %131 : vector<16x1xf32>
    %cst_52 = arith.constant 0.000000e+00 : f32
    %133 = vector.broadcast %cst_52 : f32 to vector<16x1xf32>
    %134 = arith.select %125, %132, %133 : vector<16x1xi1>, vector<16x1xf32>
    %cst_53 = arith.constant dense<0.000000e+00> : vector<1xf32>
    %135 = vector.multi_reduction <add>, %134, %cst_53 [0] : vector<16x1xf32> to vector<1xf32>
    %136 = vector.shape_cast %135 : vector<1xf32> to vector<1x1xf32>
    %cst_54 = arith.constant 9.99999993E-9 : f32
    %137 = vector.broadcast %cst_54 : f32 to vector<1x1xf32>
    %138 = arith.maximumf %136, %137 : vector<1x1xf32>
    %139 = vector.broadcast %14 : f32 to vector<1x1xf32>
    %140 = arith.divf %139, %138 : vector<1x1xf32>
    %141 = vector.broadcast %140 : vector<1x1xf32> to vector<16x1xf32>
    %142 = arith.mulf %134, %141 : vector<16x1xf32>
    %143 = vector.broadcast %142 : vector<16x1xf32> to vector<16x32xf32>
    %144 = arith.mulf %117, %143 : vector<16x32xf32>
    %145 = arith.truncf %144 : vector<16x32xf32> to vector<16x32xbf16>
    %146 = vector.extract_strided_slice %74 {offsets = [16, 0], sizes = [16, 128], strides = [1, 1]} : vector<128x128xbf16> to vector<16x128xbf16>
    %cst_55 = arith.constant dense<0.000000e+00> : vector<32x128xf32>
    %147 = tpu.matmul %145, %146, %cst_55 {dimension_numbers = #tpu.dot_dimension_numbers<[0], [0], [1], [1], [0, 1, 1, 1], [], []>} : vector<16x32xbf16>, vector<16x128xbf16>, vector<32x128xf32> -> vector<32x128xf32>
    %148 = arith.mulf %147, %147 : vector<32x128xf32>
    %cst_56 = arith.constant dense<0.000000e+00> : vector<128xf32>
    %149 = vector.multi_reduction <add>, %148, %cst_56 [0] : vector<32x128xf32> to vector<128xf32>
    %150 = vector.shape_cast %149 : vector<128xf32> to vector<1x128xf32>
    %151 = math.sqrt %150 : vector<1x128xf32>
    %cst_57 = arith.constant 1.000000e+00 : f32
    %152 = vector.broadcast %cst_57 : f32 to vector<1x128xf32>
    %153 = arith.addf %152, %150 : vector<1x128xf32>
    %154 = arith.divf %150, %153 : vector<1x128xf32>
    %cst_58 = arith.constant 9.99999993E-9 : f32
    %155 = vector.broadcast %cst_58 : f32 to vector<1x128xf32>
    %156 = arith.addf %151, %155 : vector<1x128xf32>
    %157 = arith.divf %151, %156 : vector<1x128xf32>
    %158 = arith.mulf %154, %157 : vector<1x128xf32>
    %159 = vector.extract_strided_slice %34 {offsets = [32, 0], sizes = [16, 32], strides = [1, 1]} : vector<128x32xf32> to vector<16x32xf32>
    %160 = vector.extract_strided_slice %54 {offsets = [2, 0], sizes = [1, 32], strides = [1, 1]} : vector<8x32xf32> to vector<1x32xf32>
    %161 = vector.broadcast %160 : vector<1x32xf32> to vector<16x32xf32>
    %162 = arith.mulf %159, %161 : vector<16x32xf32>
    %cst_59 = arith.constant dense<0.000000e+00> : vector<16xf32>
    %163 = vector.multi_reduction <add>, %162, %cst_59 [1] : vector<16x32xf32> to vector<16xf32>
    %164 = vector.shape_cast %163 : vector<16xf32> to vector<16x1xf32>
    %165 = vector.extract_strided_slice %2 {offsets = [32, 0], sizes = [16, 1], strides = [1, 1]} : vector<128x1xf32> to vector<16x1xf32>
    %cst_60 = arith.constant 5.000000e-01 : f32
    %166 = vector.broadcast %cst_60 : f32 to vector<16x1xf32>
    %167 = arith.cmpf ogt, %165, %166 : vector<16x1xf32>
    %cst_61 = arith.constant -1.000000e+30 : f32
    %168 = vector.broadcast %cst_61 : f32 to vector<16x1xf32>
    %169 = arith.select %167, %164, %168 : vector<16x1xi1>, vector<16x1xf32>
    %cst_62 = arith.constant dense<0xFF800000> : vector<1xf32>
    %170 = vector.multi_reduction <maximumf>, %169, %cst_62 [0] : vector<16x1xf32> to vector<1xf32>
    %171 = vector.shape_cast %170 : vector<1xf32> to vector<1x1xf32>
    %172 = vector.broadcast %171 : vector<1x1xf32> to vector<16x1xf32>
    %173 = arith.subf %169, %172 : vector<16x1xf32>
    %174 = math.exp %173 : vector<16x1xf32>
    %cst_63 = arith.constant 0.000000e+00 : f32
    %175 = vector.broadcast %cst_63 : f32 to vector<16x1xf32>
    %176 = arith.select %167, %174, %175 : vector<16x1xi1>, vector<16x1xf32>
    %cst_64 = arith.constant dense<0.000000e+00> : vector<1xf32>
    %177 = vector.multi_reduction <add>, %176, %cst_64 [0] : vector<16x1xf32> to vector<1xf32>
    %178 = vector.shape_cast %177 : vector<1xf32> to vector<1x1xf32>
    %cst_65 = arith.constant 9.99999993E-9 : f32
    %179 = vector.broadcast %cst_65 : f32 to vector<1x1xf32>
    %180 = arith.maximumf %178, %179 : vector<1x1xf32>
    %181 = vector.broadcast %14 : f32 to vector<1x1xf32>
    %182 = arith.divf %181, %180 : vector<1x1xf32>
    %183 = vector.broadcast %182 : vector<1x1xf32> to vector<16x1xf32>
    %184 = arith.mulf %176, %183 : vector<16x1xf32>
    %185 = vector.broadcast %184 : vector<16x1xf32> to vector<16x32xf32>
    %186 = arith.mulf %159, %185 : vector<16x32xf32>
    %187 = arith.truncf %186 : vector<16x32xf32> to vector<16x32xbf16>
    %188 = vector.extract_strided_slice %74 {offsets = [32, 0], sizes = [16, 128], strides = [1, 1]} : vector<128x128xbf16> to vector<16x128xbf16>
    %cst_66 = arith.constant dense<0.000000e+00> : vector<32x128xf32>
    %189 = tpu.matmul %187, %188, %cst_66 {dimension_numbers = #tpu.dot_dimension_numbers<[0], [0], [1], [1], [0, 1, 1, 1], [], []>} : vector<16x32xbf16>, vector<16x128xbf16>, vector<32x128xf32> -> vector<32x128xf32>
    %190 = arith.mulf %189, %189 : vector<32x128xf32>
    %cst_67 = arith.constant dense<0.000000e+00> : vector<128xf32>
    %191 = vector.multi_reduction <add>, %190, %cst_67 [0] : vector<32x128xf32> to vector<128xf32>
    %192 = vector.shape_cast %191 : vector<128xf32> to vector<1x128xf32>
    %193 = math.sqrt %192 : vector<1x128xf32>
    %cst_68 = arith.constant 1.000000e+00 : f32
    %194 = vector.broadcast %cst_68 : f32 to vector<1x128xf32>
    %195 = arith.addf %194, %192 : vector<1x128xf32>
    %196 = arith.divf %192, %195 : vector<1x128xf32>
    %cst_69 = arith.constant 9.99999993E-9 : f32
    %197 = vector.broadcast %cst_69 : f32 to vector<1x128xf32>
    %198 = arith.addf %193, %197 : vector<1x128xf32>
    %199 = arith.divf %193, %198 : vector<1x128xf32>
    %200 = arith.mulf %196, %199 : vector<1x128xf32>
    %201 = vector.extract_strided_slice %34 {offsets = [48, 0], sizes = [16, 32], strides = [1, 1]} : vector<128x32xf32> to vector<16x32xf32>
    %202 = vector.extract_strided_slice %54 {offsets = [3, 0], sizes = [1, 32], strides = [1, 1]} : vector<8x32xf32> to vector<1x32xf32>
    %203 = vector.broadcast %202 : vector<1x32xf32> to vector<16x32xf32>
    %204 = arith.mulf %201, %203 : vector<16x32xf32>
    %cst_70 = arith.constant dense<0.000000e+00> : vector<16xf32>
    %205 = vector.multi_reduction <add>, %204, %cst_70 [1] : vector<16x32xf32> to vector<16xf32>
    %206 = vector.shape_cast %205 : vector<16xf32> to vector<16x1xf32>
    %207 = vector.extract_strided_slice %2 {offsets = [48, 0], sizes = [16, 1], strides = [1, 1]} : vector<128x1xf32> to vector<16x1xf32>
    %cst_71 = arith.constant 5.000000e-01 : f32
    %208 = vector.broadcast %cst_71 : f32 to vector<16x1xf32>
    %209 = arith.cmpf ogt, %207, %208 : vector<16x1xf32>
    %cst_72 = arith.constant -1.000000e+30 : f32
    %210 = vector.broadcast %cst_72 : f32 to vector<16x1xf32>
    %211 = arith.select %209, %206, %210 : vector<16x1xi1>, vector<16x1xf32>
    %cst_73 = arith.constant dense<0xFF800000> : vector<1xf32>
    %212 = vector.multi_reduction <maximumf>, %211, %cst_73 [0] : vector<16x1xf32> to vector<1xf32>
    %213 = vector.shape_cast %212 : vector<1xf32> to vector<1x1xf32>
    %214 = vector.broadcast %213 : vector<1x1xf32> to vector<16x1xf32>
    %215 = arith.subf %211, %214 : vector<16x1xf32>
    %216 = math.exp %215 : vector<16x1xf32>
    %cst_74 = arith.constant 0.000000e+00 : f32
    %217 = vector.broadcast %cst_74 : f32 to vector<16x1xf32>
    %218 = arith.select %209, %216, %217 : vector<16x1xi1>, vector<16x1xf32>
    %cst_75 = arith.constant dense<0.000000e+00> : vector<1xf32>
    %219 = vector.multi_reduction <add>, %218, %cst_75 [0] : vector<16x1xf32> to vector<1xf32>
    %220 = vector.shape_cast %219 : vector<1xf32> to vector<1x1xf32>
    %cst_76 = arith.constant 9.99999993E-9 : f32
    %221 = vector.broadcast %cst_76 : f32 to vector<1x1xf32>
    %222 = arith.maximumf %220, %221 : vector<1x1xf32>
    %223 = vector.broadcast %14 : f32 to vector<1x1xf32>
    %224 = arith.divf %223, %222 : vector<1x1xf32>
    %225 = vector.broadcast %224 : vector<1x1xf32> to vector<16x1xf32>
    %226 = arith.mulf %218, %225 : vector<16x1xf32>
    %227 = vector.broadcast %226 : vector<16x1xf32> to vector<16x32xf32>
    %228 = arith.mulf %201, %227 : vector<16x32xf32>
    %229 = arith.truncf %228 : vector<16x32xf32> to vector<16x32xbf16>
    %230 = vector.extract_strided_slice %74 {offsets = [48, 0], sizes = [16, 128], strides = [1, 1]} : vector<128x128xbf16> to vector<16x128xbf16>
    %cst_77 = arith.constant dense<0.000000e+00> : vector<32x128xf32>
    %231 = tpu.matmul %229, %230, %cst_77 {dimension_numbers = #tpu.dot_dimension_numbers<[0], [0], [1], [1], [0, 1, 1, 1], [], []>} : vector<16x32xbf16>, vector<16x128xbf16>, vector<32x128xf32> -> vector<32x128xf32>
    %232 = arith.mulf %231, %231 : vector<32x128xf32>
    %cst_78 = arith.constant dense<0.000000e+00> : vector<128xf32>
    %233 = vector.multi_reduction <add>, %232, %cst_78 [0] : vector<32x128xf32> to vector<128xf32>
    %234 = vector.shape_cast %233 : vector<128xf32> to vector<1x128xf32>
    %235 = math.sqrt %234 : vector<1x128xf32>
    %cst_79 = arith.constant 1.000000e+00 : f32
    %236 = vector.broadcast %cst_79 : f32 to vector<1x128xf32>
    %237 = arith.addf %236, %234 : vector<1x128xf32>
    %238 = arith.divf %234, %237 : vector<1x128xf32>
    %cst_80 = arith.constant 9.99999993E-9 : f32
    %239 = vector.broadcast %cst_80 : f32 to vector<1x128xf32>
    %240 = arith.addf %235, %239 : vector<1x128xf32>
    %241 = arith.divf %235, %240 : vector<1x128xf32>
    %242 = arith.mulf %238, %241 : vector<1x128xf32>
    %243 = vector.extract_strided_slice %34 {offsets = [64, 0], sizes = [16, 32], strides = [1, 1]} : vector<128x32xf32> to vector<16x32xf32>
    %244 = vector.extract_strided_slice %54 {offsets = [4, 0], sizes = [1, 32], strides = [1, 1]} : vector<8x32xf32> to vector<1x32xf32>
    %245 = vector.broadcast %244 : vector<1x32xf32> to vector<16x32xf32>
    %246 = arith.mulf %243, %245 : vector<16x32xf32>
    %cst_81 = arith.constant dense<0.000000e+00> : vector<16xf32>
    %247 = vector.multi_reduction <add>, %246, %cst_81 [1] : vector<16x32xf32> to vector<16xf32>
    %248 = vector.shape_cast %247 : vector<16xf32> to vector<16x1xf32>
    %249 = vector.extract_strided_slice %2 {offsets = [64, 0], sizes = [16, 1], strides = [1, 1]} : vector<128x1xf32> to vector<16x1xf32>
    %cst_82 = arith.constant 5.000000e-01 : f32
    %250 = vector.broadcast %cst_82 : f32 to vector<16x1xf32>
    %251 = arith.cmpf ogt, %249, %250 : vector<16x1xf32>
    %cst_83 = arith.constant -1.000000e+30 : f32
    %252 = vector.broadcast %cst_83 : f32 to vector<16x1xf32>
    %253 = arith.select %251, %248, %252 : vector<16x1xi1>, vector<16x1xf32>
    %cst_84 = arith.constant dense<0xFF800000> : vector<1xf32>
    %254 = vector.multi_reduction <maximumf>, %253, %cst_84 [0] : vector<16x1xf32> to vector<1xf32>
    %255 = vector.shape_cast %254 : vector<1xf32> to vector<1x1xf32>
    %256 = vector.broadcast %255 : vector<1x1xf32> to vector<16x1xf32>
    %257 = arith.subf %253, %256 : vector<16x1xf32>
    %258 = math.exp %257 : vector<16x1xf32>
    %cst_85 = arith.constant 0.000000e+00 : f32
    %259 = vector.broadcast %cst_85 : f32 to vector<16x1xf32>
    %260 = arith.select %251, %258, %259 : vector<16x1xi1>, vector<16x1xf32>
    %cst_86 = arith.constant dense<0.000000e+00> : vector<1xf32>
    %261 = vector.multi_reduction <add>, %260, %cst_86 [0] : vector<16x1xf32> to vector<1xf32>
    %262 = vector.shape_cast %261 : vector<1xf32> to vector<1x1xf32>
    %cst_87 = arith.constant 9.99999993E-9 : f32
    %263 = vector.broadcast %cst_87 : f32 to vector<1x1xf32>
    %264 = arith.maximumf %262, %263 : vector<1x1xf32>
    %265 = vector.broadcast %14 : f32 to vector<1x1xf32>
    %266 = arith.divf %265, %264 : vector<1x1xf32>
    %267 = vector.broadcast %266 : vector<1x1xf32> to vector<16x1xf32>
    %268 = arith.mulf %260, %267 : vector<16x1xf32>
    %269 = vector.broadcast %268 : vector<16x1xf32> to vector<16x32xf32>
    %270 = arith.mulf %243, %269 : vector<16x32xf32>
    %271 = arith.truncf %270 : vector<16x32xf32> to vector<16x32xbf16>
    %272 = vector.extract_strided_slice %74 {offsets = [64, 0], sizes = [16, 128], strides = [1, 1]} : vector<128x128xbf16> to vector<16x128xbf16>
    %cst_88 = arith.constant dense<0.000000e+00> : vector<32x128xf32>
    %273 = tpu.matmul %271, %272, %cst_88 {dimension_numbers = #tpu.dot_dimension_numbers<[0], [0], [1], [1], [0, 1, 1, 1], [], []>} : vector<16x32xbf16>, vector<16x128xbf16>, vector<32x128xf32> -> vector<32x128xf32>
    %274 = arith.mulf %273, %273 : vector<32x128xf32>
    %cst_89 = arith.constant dense<0.000000e+00> : vector<128xf32>
    %275 = vector.multi_reduction <add>, %274, %cst_89 [0] : vector<32x128xf32> to vector<128xf32>
    %276 = vector.shape_cast %275 : vector<128xf32> to vector<1x128xf32>
    %277 = math.sqrt %276 : vector<1x128xf32>
    %cst_90 = arith.constant 1.000000e+00 : f32
    %278 = vector.broadcast %cst_90 : f32 to vector<1x128xf32>
    %279 = arith.addf %278, %276 : vector<1x128xf32>
    %280 = arith.divf %276, %279 : vector<1x128xf32>
    %cst_91 = arith.constant 9.99999993E-9 : f32
    %281 = vector.broadcast %cst_91 : f32 to vector<1x128xf32>
    %282 = arith.addf %277, %281 : vector<1x128xf32>
    %283 = arith.divf %277, %282 : vector<1x128xf32>
    %284 = arith.mulf %280, %283 : vector<1x128xf32>
    %285 = vector.extract_strided_slice %34 {offsets = [80, 0], sizes = [16, 32], strides = [1, 1]} : vector<128x32xf32> to vector<16x32xf32>
    %286 = vector.extract_strided_slice %54 {offsets = [5, 0], sizes = [1, 32], strides = [1, 1]} : vector<8x32xf32> to vector<1x32xf32>
    %287 = vector.broadcast %286 : vector<1x32xf32> to vector<16x32xf32>
    %288 = arith.mulf %285, %287 : vector<16x32xf32>
    %cst_92 = arith.constant dense<0.000000e+00> : vector<16xf32>
    %289 = vector.multi_reduction <add>, %288, %cst_92 [1] : vector<16x32xf32> to vector<16xf32>
    %290 = vector.shape_cast %289 : vector<16xf32> to vector<16x1xf32>
    %291 = vector.extract_strided_slice %2 {offsets = [80, 0], sizes = [16, 1], strides = [1, 1]} : vector<128x1xf32> to vector<16x1xf32>
    %cst_93 = arith.constant 5.000000e-01 : f32
    %292 = vector.broadcast %cst_93 : f32 to vector<16x1xf32>
    %293 = arith.cmpf ogt, %291, %292 : vector<16x1xf32>
    %cst_94 = arith.constant -1.000000e+30 : f32
    %294 = vector.broadcast %cst_94 : f32 to vector<16x1xf32>
    %295 = arith.select %293, %290, %294 : vector<16x1xi1>, vector<16x1xf32>
    %cst_95 = arith.constant dense<0xFF800000> : vector<1xf32>
    %296 = vector.multi_reduction <maximumf>, %295, %cst_95 [0] : vector<16x1xf32> to vector<1xf32>
    %297 = vector.shape_cast %296 : vector<1xf32> to vector<1x1xf32>
    %298 = vector.broadcast %297 : vector<1x1xf32> to vector<16x1xf32>
    %299 = arith.subf %295, %298 : vector<16x1xf32>
    %300 = math.exp %299 : vector<16x1xf32>
    %cst_96 = arith.constant 0.000000e+00 : f32
    %301 = vector.broadcast %cst_96 : f32 to vector<16x1xf32>
    %302 = arith.select %293, %300, %301 : vector<16x1xi1>, vector<16x1xf32>
    %cst_97 = arith.constant dense<0.000000e+00> : vector<1xf32>
    %303 = vector.multi_reduction <add>, %302, %cst_97 [0] : vector<16x1xf32> to vector<1xf32>
    %304 = vector.shape_cast %303 : vector<1xf32> to vector<1x1xf32>
    %cst_98 = arith.constant 9.99999993E-9 : f32
    %305 = vector.broadcast %cst_98 : f32 to vector<1x1xf32>
    %306 = arith.maximumf %304, %305 : vector<1x1xf32>
    %307 = vector.broadcast %14 : f32 to vector<1x1xf32>
    %308 = arith.divf %307, %306 : vector<1x1xf32>
    %309 = vector.broadcast %308 : vector<1x1xf32> to vector<16x1xf32>
    %310 = arith.mulf %302, %309 : vector<16x1xf32>
    %311 = vector.broadcast %310 : vector<16x1xf32> to vector<16x32xf32>
    %312 = arith.mulf %285, %311 : vector<16x32xf32>
    %313 = arith.truncf %312 : vector<16x32xf32> to vector<16x32xbf16>
    %314 = vector.extract_strided_slice %74 {offsets = [80, 0], sizes = [16, 128], strides = [1, 1]} : vector<128x128xbf16> to vector<16x128xbf16>
    %cst_99 = arith.constant dense<0.000000e+00> : vector<32x128xf32>
    %315 = tpu.matmul %313, %314, %cst_99 {dimension_numbers = #tpu.dot_dimension_numbers<[0], [0], [1], [1], [0, 1, 1, 1], [], []>} : vector<16x32xbf16>, vector<16x128xbf16>, vector<32x128xf32> -> vector<32x128xf32>
    %316 = arith.mulf %315, %315 : vector<32x128xf32>
    %cst_100 = arith.constant dense<0.000000e+00> : vector<128xf32>
    %317 = vector.multi_reduction <add>, %316, %cst_100 [0] : vector<32x128xf32> to vector<128xf32>
    %318 = vector.shape_cast %317 : vector<128xf32> to vector<1x128xf32>
    %319 = math.sqrt %318 : vector<1x128xf32>
    %cst_101 = arith.constant 1.000000e+00 : f32
    %320 = vector.broadcast %cst_101 : f32 to vector<1x128xf32>
    %321 = arith.addf %320, %318 : vector<1x128xf32>
    %322 = arith.divf %318, %321 : vector<1x128xf32>
    %cst_102 = arith.constant 9.99999993E-9 : f32
    %323 = vector.broadcast %cst_102 : f32 to vector<1x128xf32>
    %324 = arith.addf %319, %323 : vector<1x128xf32>
    %325 = arith.divf %319, %324 : vector<1x128xf32>
    %326 = arith.mulf %322, %325 : vector<1x128xf32>
    %327 = vector.extract_strided_slice %34 {offsets = [96, 0], sizes = [16, 32], strides = [1, 1]} : vector<128x32xf32> to vector<16x32xf32>
    %328 = vector.extract_strided_slice %54 {offsets = [6, 0], sizes = [1, 32], strides = [1, 1]} : vector<8x32xf32> to vector<1x32xf32>
    %329 = vector.broadcast %328 : vector<1x32xf32> to vector<16x32xf32>
    %330 = arith.mulf %327, %329 : vector<16x32xf32>
    %cst_103 = arith.constant dense<0.000000e+00> : vector<16xf32>
    %331 = vector.multi_reduction <add>, %330, %cst_103 [1] : vector<16x32xf32> to vector<16xf32>
    %332 = vector.shape_cast %331 : vector<16xf32> to vector<16x1xf32>
    %333 = vector.extract_strided_slice %2 {offsets = [96, 0], sizes = [16, 1], strides = [1, 1]} : vector<128x1xf32> to vector<16x1xf32>
    %cst_104 = arith.constant 5.000000e-01 : f32
    %334 = vector.broadcast %cst_104 : f32 to vector<16x1xf32>
    %335 = arith.cmpf ogt, %333, %334 : vector<16x1xf32>
    %cst_105 = arith.constant -1.000000e+30 : f32
    %336 = vector.broadcast %cst_105 : f32 to vector<16x1xf32>
    %337 = arith.select %335, %332, %336 : vector<16x1xi1>, vector<16x1xf32>
    %cst_106 = arith.constant dense<0xFF800000> : vector<1xf32>
    %338 = vector.multi_reduction <maximumf>, %337, %cst_106 [0] : vector<16x1xf32> to vector<1xf32>
    %339 = vector.shape_cast %338 : vector<1xf32> to vector<1x1xf32>
    %340 = vector.broadcast %339 : vector<1x1xf32> to vector<16x1xf32>
    %341 = arith.subf %337, %340 : vector<16x1xf32>
    %342 = math.exp %341 : vector<16x1xf32>
    %cst_107 = arith.constant 0.000000e+00 : f32
    %343 = vector.broadcast %cst_107 : f32 to vector<16x1xf32>
    %344 = arith.select %335, %342, %343 : vector<16x1xi1>, vector<16x1xf32>
    %cst_108 = arith.constant dense<0.000000e+00> : vector<1xf32>
    %345 = vector.multi_reduction <add>, %344, %cst_108 [0] : vector<16x1xf32> to vector<1xf32>
    %346 = vector.shape_cast %345 : vector<1xf32> to vector<1x1xf32>
    %cst_109 = arith.constant 9.99999993E-9 : f32
    %347 = vector.broadcast %cst_109 : f32 to vector<1x1xf32>
    %348 = arith.maximumf %346, %347 : vector<1x1xf32>
    %349 = vector.broadcast %14 : f32 to vector<1x1xf32>
    %350 = arith.divf %349, %348 : vector<1x1xf32>
    %351 = vector.broadcast %350 : vector<1x1xf32> to vector<16x1xf32>
    %352 = arith.mulf %344, %351 : vector<16x1xf32>
    %353 = vector.broadcast %352 : vector<16x1xf32> to vector<16x32xf32>
    %354 = arith.mulf %327, %353 : vector<16x32xf32>
    %355 = arith.truncf %354 : vector<16x32xf32> to vector<16x32xbf16>
    %356 = vector.extract_strided_slice %74 {offsets = [96, 0], sizes = [16, 128], strides = [1, 1]} : vector<128x128xbf16> to vector<16x128xbf16>
    %cst_110 = arith.constant dense<0.000000e+00> : vector<32x128xf32>
    %357 = tpu.matmul %355, %356, %cst_110 {dimension_numbers = #tpu.dot_dimension_numbers<[0], [0], [1], [1], [0, 1, 1, 1], [], []>} : vector<16x32xbf16>, vector<16x128xbf16>, vector<32x128xf32> -> vector<32x128xf32>
    %358 = arith.mulf %357, %357 : vector<32x128xf32>
    %cst_111 = arith.constant dense<0.000000e+00> : vector<128xf32>
    %359 = vector.multi_reduction <add>, %358, %cst_111 [0] : vector<32x128xf32> to vector<128xf32>
    %360 = vector.shape_cast %359 : vector<128xf32> to vector<1x128xf32>
    %361 = math.sqrt %360 : vector<1x128xf32>
    %cst_112 = arith.constant 1.000000e+00 : f32
    %362 = vector.broadcast %cst_112 : f32 to vector<1x128xf32>
    %363 = arith.addf %362, %360 : vector<1x128xf32>
    %364 = arith.divf %360, %363 : vector<1x128xf32>
    %cst_113 = arith.constant 9.99999993E-9 : f32
    %365 = vector.broadcast %cst_113 : f32 to vector<1x128xf32>
    %366 = arith.addf %361, %365 : vector<1x128xf32>
    %367 = arith.divf %361, %366 : vector<1x128xf32>
    %368 = arith.mulf %364, %367 : vector<1x128xf32>
    %369 = vector.extract_strided_slice %34 {offsets = [112, 0], sizes = [16, 32], strides = [1, 1]} : vector<128x32xf32> to vector<16x32xf32>
    %370 = vector.extract_strided_slice %54 {offsets = [7, 0], sizes = [1, 32], strides = [1, 1]} : vector<8x32xf32> to vector<1x32xf32>
    %371 = vector.broadcast %370 : vector<1x32xf32> to vector<16x32xf32>
    %372 = arith.mulf %369, %371 : vector<16x32xf32>
    %cst_114 = arith.constant dense<0.000000e+00> : vector<16xf32>
    %373 = vector.multi_reduction <add>, %372, %cst_114 [1] : vector<16x32xf32> to vector<16xf32>
    %374 = vector.shape_cast %373 : vector<16xf32> to vector<16x1xf32>
    %375 = vector.extract_strided_slice %2 {offsets = [112, 0], sizes = [16, 1], strides = [1, 1]} : vector<128x1xf32> to vector<16x1xf32>
    %cst_115 = arith.constant 5.000000e-01 : f32
    %376 = vector.broadcast %cst_115 : f32 to vector<16x1xf32>
    %377 = arith.cmpf ogt, %375, %376 : vector<16x1xf32>
    %cst_116 = arith.constant -1.000000e+30 : f32
    %378 = vector.broadcast %cst_116 : f32 to vector<16x1xf32>
    %379 = arith.select %377, %374, %378 : vector<16x1xi1>, vector<16x1xf32>
    %cst_117 = arith.constant dense<0xFF800000> : vector<1xf32>
    %380 = vector.multi_reduction <maximumf>, %379, %cst_117 [0] : vector<16x1xf32> to vector<1xf32>
    %381 = vector.shape_cast %380 : vector<1xf32> to vector<1x1xf32>
    %382 = vector.broadcast %381 : vector<1x1xf32> to vector<16x1xf32>
    %383 = arith.subf %379, %382 : vector<16x1xf32>
    %384 = math.exp %383 : vector<16x1xf32>
    %cst_118 = arith.constant 0.000000e+00 : f32
    %385 = vector.broadcast %cst_118 : f32 to vector<16x1xf32>
    %386 = arith.select %377, %384, %385 : vector<16x1xi1>, vector<16x1xf32>
    %cst_119 = arith.constant dense<0.000000e+00> : vector<1xf32>
    %387 = vector.multi_reduction <add>, %386, %cst_119 [0] : vector<16x1xf32> to vector<1xf32>
    %388 = vector.shape_cast %387 : vector<1xf32> to vector<1x1xf32>
    %cst_120 = arith.constant 9.99999993E-9 : f32
    %389 = vector.broadcast %cst_120 : f32 to vector<1x1xf32>
    %390 = arith.maximumf %388, %389 : vector<1x1xf32>
    %391 = vector.broadcast %14 : f32 to vector<1x1xf32>
    %392 = arith.divf %391, %390 : vector<1x1xf32>
    %393 = vector.broadcast %392 : vector<1x1xf32> to vector<16x1xf32>
    %394 = arith.mulf %386, %393 : vector<16x1xf32>
    %395 = vector.broadcast %394 : vector<16x1xf32> to vector<16x32xf32>
    %396 = arith.mulf %369, %395 : vector<16x32xf32>
    %397 = arith.truncf %396 : vector<16x32xf32> to vector<16x32xbf16>
    %398 = vector.extract_strided_slice %74 {offsets = [112, 0], sizes = [16, 128], strides = [1, 1]} : vector<128x128xbf16> to vector<16x128xbf16>
    %cst_121 = arith.constant dense<0.000000e+00> : vector<32x128xf32>
    %399 = tpu.matmul %397, %398, %cst_121 {dimension_numbers = #tpu.dot_dimension_numbers<[0], [0], [1], [1], [0, 1, 1, 1], [], []>} : vector<16x32xbf16>, vector<16x128xbf16>, vector<32x128xf32> -> vector<32x128xf32>
    %400 = arith.mulf %399, %399 : vector<32x128xf32>
    %cst_122 = arith.constant dense<0.000000e+00> : vector<128xf32>
    %401 = vector.multi_reduction <add>, %400, %cst_122 [0] : vector<32x128xf32> to vector<128xf32>
    %402 = vector.shape_cast %401 : vector<128xf32> to vector<1x128xf32>
    %403 = math.sqrt %402 : vector<1x128xf32>
    %cst_123 = arith.constant 1.000000e+00 : f32
    %404 = vector.broadcast %cst_123 : f32 to vector<1x128xf32>
    %405 = arith.addf %404, %402 : vector<1x128xf32>
    %406 = arith.divf %402, %405 : vector<1x128xf32>
    %cst_124 = arith.constant 9.99999993E-9 : f32
    %407 = vector.broadcast %cst_124 : f32 to vector<1x128xf32>
    %408 = arith.addf %403, %407 : vector<1x128xf32>
    %409 = arith.divf %403, %408 : vector<1x128xf32>
    %410 = arith.mulf %406, %409 : vector<1x128xf32>
    %411 = tpu.concatenate %116, %158, %200, %242, %284, %326, %368, %410 in 0 : vector<1x128xf32>, vector<1x128xf32>, vector<1x128xf32>, vector<1x128xf32>, vector<1x128xf32>, vector<1x128xf32>, vector<1x128xf32>, vector<1x128xf32> -> vector<8x128xf32>
    %c0_125 = arith.constant 0 : index
    %c0_126 = arith.constant 0 : index
    %412 = vector.load %arg8[%c0_125, %c0_126] : memref<8x128xf32, #tpu.memory_space<vmem>>, vector<8x128xf32>
    tpu.vector_store %arg8[%c0_125, %c0_126], %411 {strides = array<i32>} : memref<8x128xf32, #tpu.memory_space<vmem>>, vector<8x128xf32>,
    return
  }
  func.func @transform_0(%arg0: i32) -> (i32, i32) {
    %c0_i32 = arith.constant 0 : i32
    %c0_i32_0 = arith.constant 0 : i32
    return %arg0, %c0_i32 : i32, i32
  }
  func.func @transform_1(%arg0: i32) -> (i32, i32) {
    %c0_i32 = arith.constant 0 : i32
    %c0_i32_0 = arith.constant 0 : i32
    return %arg0, %c0_i32 : i32, i32
  }
  func.func @transform_2(%arg0: i32) -> (i32, i32) {
    %c0_i32 = arith.constant 0 : i32
    %c0_i32_0 = arith.constant 0 : i32
    return %arg0, %c0_i32 : i32, i32
  }
  func.func @transform_3(%arg0: i32) -> (i32, i32, i32) {
    %c0_i32 = arith.constant 0 : i32
    %c0_i32_0 = arith.constant 0 : i32
    %c0_i32_1 = arith.constant 0 : i32
    %c0_i32_2 = arith.constant 0 : i32
    return %c0_i32, %c0_i32_0, %c0_i32_1 : i32, i32, i32
  }
  func.func @transform_4(%arg0: i32) -> (i32, i32) {
    %c0_i32 = arith.constant 0 : i32
    %c0_i32_0 = arith.constant 0 : i32
    %c0_i32_1 = arith.constant 0 : i32
    return %c0_i32, %c0_i32_0 : i32, i32
  }
  func.func @transform_5(%arg0: i32) -> (i32, i32) {
    %c0_i32 = arith.constant 0 : i32
    %c0_i32_0 = arith.constant 0 : i32
    %c0_i32_1 = arith.constant 0 : i32
    return %c0_i32, %c0_i32_0 : i32, i32
  }
  func.func @transform_6(%arg0: i32) -> (i32, i32) {
    %c0_i32 = arith.constant 0 : i32
    %c0_i32_0 = arith.constant 0 : i32
    %c0_i32_1 = arith.constant 0 : i32
    return %c0_i32, %c0_i32_0 : i32, i32
  }
  func.func @transform_7(%arg0: i32) -> (i32, i32) {
    %c0_i32 = arith.constant 0 : i32
    %c0_i32_0 = arith.constant 0 : i32
    return %arg0, %c0_i32 : i32, i32
  }
}

</mosaic_0001>

<bundles_post_ra>
// kernel: forward.1
= control target key start
LH: loop header
LB: loop body
LE: loop exit
PB: predicated region body
PF: predicated region fallthrough
CT: control target
= control target key end

     0   :  { %s3441_s26 = smov 0   ;;  %s4713_s0 = inlined_call_operand.vmem [shape: f32[256,32], index: 0, kind: input, shape index: {}]   ;;  %s4714_s1 = inlined_call_operand.vmem [shape: f32[16,32], index: 1, kind: input, shape index: {}]   ;;  %s4715_s2 = inlined_call_operand.vmem [shape: f32[256,1], index: 2, kind: input, shape index: {}]   ;;  %s4716_s3 = inlined_call_operand.vmem [shape: bf16[4,32,32], index: 3, kind: input, shape index: {}]   ;;  %s4717_s4 = inlined_call_operand.vmem [shape: bf16[32,128], index: 4, kind: input, shape index: {}]   ;;  %s4718_s5 = inlined_call_operand.vmem [shape: f32[2,32], index: 5, kind: input, shape index: {}]   ;;  %s4719_s6 = inlined_call_operand.<no memory space> [shape: f32[1,1], index: 6, kind: input, shape index: {}]   ;;  %s4720_s7 = inlined_call_operand.vmem [shape: f32[16,128], index: 7, kind: output, shape index: {}]  }
   0x1   :  { %12 = sst [smem:[#allocation2]] %s4719_s6 }
   0x2 LB: > { %s3447_s27 = sadd.s32 4294967295, %s3393_s26   ;;  %p2811_p0 = scmp.ge.s32.totalorder %s3393_s26, 1  ;;  %s3393_s26 = sphi %s3441_s26, %s18_s26  }
   0x3   : > { %p259_p1 = scmp.lt.s32.totalorder %s3393_s26, 3 }
   0x5   : > { %p260_p2 = pnand %p2811_p0, %p259_p1 }
   0x7   : > { %263 = sbr.rel (%p260_p2) target bundleno = 1684 (0x694), region = 48 }
   0xe   : > { %v3083_v0 = vld [vmem:[%s4716_s3] sm:$0xff]   ;;  %s2812_s6 = sshll.u32 %s3447_s27, 4  ;;  %v3084_v1 = vld [vmem:[%s4716_s3 + $0x8] sm:$0xff]   ;;  %vm399_vm0 = vcmask 261120   ;;  %v3395_v10 = vmov 0.0   ;;  %p305_p4 = scmp.lt.s32.totalorder %s3447_s27, 1 }
   0xf   : > { %p300_p3 = scmp.lt.s32.totalorder %s2812_s6, 31  ;;  %2946 = vmatprep.subr.bf16.mxu0 %v3083_v0  ;;  %v3085_v2 = vld [vmem:[%s4716_s3 + $0x20] sm:$0xff]   ;;  %v3086_v15 = vld [vmem:[%s4716_s3 + $0x28] sm:$0xff]   ;;  %vm3396_vm1 = vmmov 0   ;;  %v3087_v31 = vld [vmem:[%s4716_s3 + $0x10] sm:$0xff]  }
  0x10   : > { %2947 = vmatpush3.bf16.msra.mxu0 %v3083_v0  ;;  %s4752_s27 = smov (!%p305_p4, %s3447_s27), 1  ;;  %2966 = vmatprep.subr.bf16.mxu1 %v3087_v31  ;;  %v3088_v32 = vld [vmem:[%s4716_s3 + $0x18] sm:$0xff]  }
  0x11   : > { %s4750_s6 = smov (!%p300_p3, %s2812_s6), 31  ;;  %2948 = vmatprep.subr.bf16.mxu0 %v3084_v1  ;;  %s2814_s17 = sshll.u32 %s4752_s27, 3  ;;  %2967 = vmatpush3.bf16.msra.mxu1 %v3087_v31 }
  0x12   : > { %s2813_s9 = sshll.u32 %s4750_s6, 3  ;;  %s308_s20 = scalar_lea.vmem %s4714_s1, %s2814_s17  ;;  %2968 = vmatprep.subr.bf16.mxu1 %v3088_v32 }
  0x13   : > { %s3466_s12 = scalar_lea.vmem %s4713_s0, %s2813_s9  ;;  %v336_v29 = vld [vmem:[%s308_s20] sm:$0xff]  ;;  %s4053_s20 = scalar_lea.vmem %s4715_s2, %s2813_s9 }
  0x14   : > { %2949 = vmatpush3.bf16.msra.mxu0 %v3084_v1  ;;  %v320_v3 = vld [vmem:[%s3466_s12] sm:$0xff]  ;;  %v321_v4 = vld [vmem:[%s3466_s12 + $0x8] sm:$0xff]  ;;  %v322_v5 = vld [vmem:[%s3466_s12 + $0x10] sm:$0xff]  ;;  %v978_v30 = vpack.c.bf16 %v336_v29, %v336_v29  ;;  %s378_s6 = sld [smem:[#allocation2]]  ;;  %s318_s22 = scalar_lea.vmem %s4720_s7, %s2814_s17 }
  0x15   : > { %v379_v6 = vpack.c.bf16 %v321_v4, %v320_v3  ;;  %v323_v7 = vld [vmem:[%s3466_s12 + $0x18] sm:$0xff]  ;;  %v324_v8 = vld [vmem:[%s3466_s12 + $0x20] sm:$0xff]  ;;  %v325_v9 = vld [vmem:[%s3466_s12 + $0x28] sm:$0xff]  ;;  %2986 = vmatprep.subr.bf16.mxu0 %v3395_v10  ;;  %2969 = vmatpush3.bf16.msra.mxu1 %v3088_v32 }
  0x16   : > { %v380_v11 = vpack.c.bf16 %v323_v7, %v322_v5  ;;  %v381_v12 = vpack.c.bf16 %v325_v9, %v324_v8  ;;  %v326_v13 = vld [vmem:[%s3466_s12 + $0x30] sm:$0xff]  ;;  %v327_v14 = vld [vmem:[%s3466_s12 + $0x38] sm:$0xff]  ;;  %v328_v16 = vld [vmem:[%s3466_s12 + $0x40] sm:$0xff]  ;;  %2994 = vmatprep.subr.bf16.mxu1 %v3395_v10 }
  0x17   : > { %2950 = vmatprep.mubr.msk.bf16.mxu0 %vm399_vm0, %v379_v6  ;;  %v329_v17 = vld [vmem:[%s3466_s12 + $0x48] sm:$0xff]  ;;  %v382_v18 = vpack.c.bf16 %v327_v14, %v326_v13  ;;  %v330_v20 = vld [vmem:[%s3466_s12 + $0x50] sm:$0xff]  ;;  %v331_v21 = vld [vmem:[%s3466_s12 + $0x58] sm:$0xff] }
  0x18   : > { %2951 = vmatmul.mubr.msk.bf16.vlgmr.msra.gmra.mrb[0].mxu0 %vm399_vm0, %v380_v11  ;;  %v383_v19 = vpack.c.bf16 %v329_v17, %v328_v16  ;;  %v332_v22 = vld [vmem:[%s3466_s12 + $0x60] sm:$0xff]  ;;  %v333_v23 = vld [vmem:[%s3466_s12 + $0x68] sm:$0xff]  ;;  %v384_v24 = vpack.c.bf16 %v331_v21, %v330_v20  ;;  %v334_v26 = vld [vmem:[%s3466_s12 + $0x70] sm:$0xff] }
  0x19   : > { %2954 = vmatprep.mubr.msk.bf16.mxu0 %vm399_vm0, %v381_v12  ;;  %2987 = vmatpush3.bf16.msra.mxu0 %v3085_v2  ;;  %v385_v25 = vpack.c.bf16 %v333_v23, %v332_v22  ;;  %v335_v27 = vld [vmem:[%s3466_s12 + $0x78] sm:$0xff]  ;;  %v2851_v1 = vld [vmem:[%s4718_s5 + $0x1] ss:$0 sm:$0xff] }
  0x1a   : > { %2988 = vmatprep.subr.bf16.mxu0 %v3395_v10  ;;  %v386_v28 = vpack.c.bf16 %v335_v27, %v334_v26 }
  0x1d   : > { %2989 = vmatpush3.bf16.msra.mxu0 %v3086_v15 }
  0x20   : > { %2955 = vmatmul.mubr.msk.bf16.gmra.mrb[4].mxu0 %vm399_vm0, %v382_v18  ;;  %v3089_v18 = vld [vmem:[%s4716_s3 + $0x30] sm:$0xff]  }
  0x21   : > { %2958 = vmatprep.mubr.msk.bf16.mxu0 %vm399_vm0, %v383_v19  ;;  %v3090_v19 = vld [vmem:[%s4716_s3 + $0x38] sm:$0xff]  }
  0x28   : > { %2959 = vmatmul.mubr.msk.bf16.gmra.mrb[8].mxu0 %vm399_vm0, %v384_v24 }
  0x29   : > { %2962 = vmatprep.mubr.msk.bf16.mxu0 %vm399_vm0, %v385_v25 }
  0x30   : > { %2963 = vmatmul.mubr.msk.bf16.gmra.mrb[12].mxu0 %vm399_vm0, %v386_v28 }
  0x31   : > { %2990 = vmatprep.mubr.msk.bf16.mxu0 %vm3396_vm1, %v3395_v10 }
  0x38   : > { %2991 = vmatmul.mubr.msk.bf16.vlgmr.msra.gmra.mrb[16].mxu0 %vm399_vm0, %v978_v30 }
  0xeb   : > { %v2952_v33 = vpop.f32.mrb[0].mxu0 }
  0xec   : > { %3093 = vtanh.f32 %v2952_v33  ;;  %v458_v34 = vpop.f32.mrb[1].mxu0  ;;  %v3545_v33 = vld [vmem:[%s4718_s5] ss:$0 sm:$0xff] }
  0xed   : > { %3095 = vtanh.f32 %v458_v34  ;;  %v2953_v35 = vpop.f32.mrb[2].mxu0 }
  0xee   : > { %3097 = vtanh.f32 %v2953_v35  ;;  %v461_v36 = vpop.f32.mrb[3].mxu0 }
  0xef   : > { %3099 = vtanh.f32 %v461_v36 }
  0xf3   : > { %v2956_v37 = vpop.f32.mrb[4].mxu0 }
  0xf4   : > { %3101 = vtanh.f32 %v2956_v37  ;;  %v474_v38 = vpop.f32.mrb[5].mxu0 }
  0xf5   : > { %3103 = vtanh.f32 %v474_v38  ;;  %v2957_v39 = vpop.f32.mrb[6].mxu0 }
  0xf6   : > { %v3094_v40 = vpop.eup %3093  ;;  %3105 = vtanh.f32 %v2957_v39  ;;  %v477_v41 = vpop.f32.mrb[7].mxu0 }
  0xf7   : > { %v3096_v42 = vpop.eup %3095  ;;  %3107 = vtanh.f32 %v477_v41 }
  0xf8   : > { %v3098_v43 = vpop.eup %3097 }
  0xf9   : > { %v3100_v44 = vpop.eup %3099  ;;  %v538_v45 = vpack.c.bf16 %v3098_v43, %v3094_v40 }
  0xfa   : > { %v537_v46 = vpack.c.bf16 %v3100_v44, %v3096_v42 }
  0xfb   : > { %v2960_v47 = vpop.f32.mrb[8].mxu0 }
  0xfc   : > { %3109 = vtanh.f32 %v2960_v47  ;;  %v490_v48 = vpop.f32.mrb[9].mxu0  ;;  %2970 = vmatprep.mubr.msk.bf16.mxu1 %vm399_vm0, %v537_v46 }
  0xfd   : > { %3111 = vtanh.f32 %v490_v48  ;;  %v2961_v49 = vpop.f32.mrb[10].mxu0  ;;  %2971 = vmatmul.mubr.msk.bf16.vlgmr.msra.gmra.mrb[0].mxu1 %vm399_vm0, %v538_v45 }
  0xfe   : > { %v3102_v50 = vpop.eup %3101  ;;  %3113 = vtanh.f32 %v2961_v49  ;;  %v493_v51 = vpop.f32.mrb[11].mxu0  ;;  %2995 = vmatpush3.bf16.msra.mxu1 %v3089_v18 }
  0xff   : > { %v3104_v52 = vpop.eup %3103  ;;  %3115 = vtanh.f32 %v493_v51  ;;  %2996 = vmatprep.subr.bf16.mxu1 %v3395_v10 }
 0x100   : > { %v3106_v53 = vpop.eup %3105 }
 0x101   : > { %v3108_v54 = vpop.eup %3107  ;;  %v540_v55 = vpack.c.bf16 %v3106_v53, %v3102_v50 }
 0x102   : > { %v539_v56 = vpack.c.bf16 %v3108_v54, %v3104_v52  ;;  %2997 = vmatpush3.bf16.msra.mxu1 %v3090_v19 }
 0x103   : > { %v2964_v57 = vpop.f32.mrb[12].mxu0 }
 0x104   : > { %3117 = vtanh.f32 %v2964_v57  ;;  %v506_v58 = vpop.f32.mrb[13].mxu0  ;;  %2974 = vmatprep.mubr.msk.bf16.mxu1 %vm399_vm0, %v539_v56 }
 0x105   : > { %3119 = vtanh.f32 %v506_v58  ;;  %v2965_v59 = vpop.f32.mrb[14].mxu0  ;;  %2975 = vmatmul.mubr.msk.bf16.gmra.mrb[4].mxu1 %vm399_vm0, %v540_v55 }
 0x106   : > { %v3110_v60 = vpop.eup %3109  ;;  %3121 = vtanh.f32 %v2965_v59  ;;  %v509_v61 = vpop.f32.mrb[15].mxu0 }
 0x107   : > { %v3112_v62 = vpop.eup %3111  ;;  %3123 = vtanh.f32 %v509_v61 }
 0x108   : > { %v3114_v63 = vpop.eup %3113 }
 0x109   : > { %v3116_v0 = vpop.eup %3115  ;;  %v542_v2 = vpack.c.bf16 %v3114_v63, %v3110_v60 }
 0x10a   : > { %v541_v3 = vpack.c.bf16 %v3116_v0, %v3112_v62 }
 0x10b   : > { %v1032_v4 = vpop.f32.mrb[16].mxu0 }
 0x10c   : > { %v1033_v5 = vadd.f32 %v2851_v1, %v1032_v4  ;;  %2978 = vmatprep.mubr.msk.bf16.mxu1 %vm399_vm0, %v541_v3  ;;  %v2992_v6 = vpop.f32.mrb[17].mxu0 }
 0x10d   : > { %2979 = vmatmul.mubr.msk.bf16.gmra.mrb[8].mxu1 %vm399_vm0, %v542_v2  ;;  %v1035_v7 = vpop.f32.mrb[18].mxu0 }
 0x10e   : > { %v3118_v8 = vpop.eup %3117  ;;  %v1038_v9 = vmul.f32 %v1033_v5, %v1033_v5  ;;  %v2993_v11 = vpop.f32.mrb[19].mxu0 }
 0x10f   : > { %v3120_v12 = vpop.eup %3119 }
 0x110   : > { %v3122_v13 = vpop.eup %3121  ;;  %v1039_v14 = vsel %vm399_vm0, %v1038_v9, 0.0 }
 0x111   : > { %v3124_v15 = vpop.eup %3123  ;;  %1040 = vadd.xlane.f32.xlu0 %v1039_v14  ;;  %v544_v16 = vpack.c.bf16 %v3122_v13, %v3118_v8 }
 0x112   : > { %v543_v17 = vpack.c.bf16 %v3124_v15, %v3120_v12 }
 0x114   : > { %2982 = vmatprep.mubr.msk.bf16.mxu1 %vm399_vm0, %v543_v17 }
 0x115   : > { %2983 = vmatmul.mubr.msk.bf16.gmra.mrb[12].mxu1 %vm399_vm0, %v544_v16 }
 0x116   : > { %2998 = vmatprep.mubr.msk.bf16.mxu1 %vm3396_vm1, %v3395_v10 }
 0x19e   : > { %v1041_v20 = vpop.xlane.xlu0 %1040 }
 0x19f   : > { %3125 = vrsqrt.f32 %v1041_v20  ;;  %v1042_v21 = vadd.f32 1.0, %v1041_v20  ;;  %vm1048_vm2 = vcmp.eq.f32.partialorder %v1041_v20, inf  ;;  %v1051_v23 = vand.u32 2147483648, %v1041_v20 }
 0x1a0   : > { %vm1050_vm3 = vcmp.eq.f32.partialorder %v1041_v20, 0.0 }
 0x1a1   : > { %3127 = vrcp.f32 %v1042_v21 }
 0x1a9   : > { %v3126_v22 = vpop.eup %3125 }
 0x1aa   : > { %v1047_v24 = vmul.f32 %v3126_v22, %v1041_v20 }
 0x1ab   : > { %v3128_v28 = vpop.eup %3127 }
 0x1ac   : > { %v1049_v25 = vsel %vm1048_vm2, %v1041_v20, %v1047_v24  ;;  %v1044_v29 = vmul.f32 %v3128_v28, %v1041_v20 }
 0x1ad   : > { %v1052_v26 = vsel %vm1050_vm3, %v1051_v23, %v1049_v25 }
 0x1ae   : > { %v1053_v27 = vadd.f32 1e-08, %v1052_v26  ;;  %v1045_v30 = vmul.f32 %v1044_v29, %v1033_v5 }
 0x1b0   : > { %3129 = vrcp.f32 %v1053_v27 }
 0x1ba   : > { %v3130_v31 = vpop.eup %3129 }
 0x1bb   : > { %v1055_v32 = vmul.f32 %v3130_v31, %v1045_v30 }
 0x1bd   : > { %v1056_v10 = vpack.c.bf16 %v1055_v32, %v1055_v32 }
 0x1bf   : > { %2999 = vmatmul.mubr.msk.bf16.vlgmr.msra.gmra.mrb[16].mxu1 %vm399_vm0, %v1056_v10 }
 0x1d0   : > { %v2972_v34 = vpop.f32.mrb[0].mxu1 }
 0x1d1   : > { %v619_v35 = vpop.f32.mrb[1].mxu1  ;;  %v3551_v38 = vadd.f32 %v2972_v34, %v3545_v33  ;;  %v3091_v34 = vld [vmem:[%s4717_s4] sm:$0xff]  }
 0x1d2   : > { %v3548_v36 = vadd.f32 %v3545_v33, %v619_v35  ;;  %v2973_v37 = vpop.f32.mrb[2].mxu1  ;;  %3002 = vmatprep.subr.bf16.mxu0 %v3091_v34  ;;  %v3092_v35 = vld [vmem:[%s4717_s4 + $0x8] sm:$0xff]  }
 0x1d3   : > { %v3554_v39 = vadd.f32 %v2973_v37, %v3545_v33  ;;  %v622_v40 = vpop.f32.mrb[3].mxu1  ;;  %v684_v46 = vmul.f32 %v3551_v38, %v3551_v38  ;;  %3003 = vmatpush3.bf16.msra.mxu0 %v3091_v34 }
 0x1d4   : > { %v3557_v41 = vadd.f32 %v3545_v33, %v622_v40  ;;  %v682_v42 = vmul.f32 %v3548_v36, %v3548_v36  ;;  %3004 = vmatprep.subr.bf16.mxu0 %v3092_v35 }
 0x1d5   : > { %v685_v45 = vmul.f32 %v3554_v39, %v3554_v39  ;;  %v704_v54 = vsel %vm399_vm0, %v684_v46, 0.0 }
 0x1d6   : > { %v698_v43 = vsel %vm399_vm0, %v682_v42, 0.0  ;;  %v683_v44 = vmul.f32 %v3557_v41, %v3557_v41  ;;  %v4721_v42 = vlaneseq }
 0x1d7   : > { %699 = vadd.xlane.f32.xlu0 %v698_v43  ;;  %v707_v52 = vsel %vm399_vm0, %v685_v45, 0.0  ;;  %3005 = vmatpush3.bf16.msra.mxu0 %v3092_v35 }
 0x1d8   : > { %v2976_v47 = vpop.f32.mrb[4].mxu1  ;;  %v701_v48 = vsel %vm399_vm0, %v683_v44, 0.0  ;;  %v3662_v46 = vshrl.u32 %v4721_v42, 7 }
 0x1d9   : > { %702 = vadd.xlane.f32.xlu1 %v701_v48  ;;  %v635_v49 = vpop.f32.mrb[5].mxu1  ;;  %v3575_v55 = vadd.f32 %v2976_v47, %v3545_v33 }
 0x1da   : > { %v3570_v50 = vadd.f32 %v3545_v33, %v635_v49  ;;  %v2977_v51 = vpop.f32.mrb[6].mxu1 }
 0x1db   : > { %v638_v53 = vpop.f32.mrb[7].mxu1  ;;  %708 = vadd.xlane.f32.xlu0 %v707_v52  ;;  %v3578_v56 = vadd.f32 %v2977_v51, %v3545_v33  ;;  %v688_v63 = vmul.f32 %v3575_v55, %v3575_v55  ;;  %v1450_v52 = vsub.s32 0, %v3662_v46 }
 0x1dc   : > { %v3581_v57 = vadd.f32 %v3545_v33, %v638_v53  ;;  %v686_v58 = vmul.f32 %v3570_v50, %v3570_v50 }
 0x1dd   : > { %705 = vadd.xlane.f32.xlu1 %v704_v54  ;;  %v689_v0 = vmul.f32 %v3578_v56, %v3578_v56  ;;  %v716_v8 = vsel %vm399_vm0, %v688_v63, 0.0 }
 0x1de   : > { %v687_v59 = vmul.f32 %v3581_v57, %v3581_v57  ;;  %v710_v61 = vsel %vm399_vm0, %v686_v58, 0.0 }
 0x1df   : > { %v719_v9 = vsel %vm399_vm0, %v689_v0, 0.0 }
 0x1e0   : > { %v2980_v60 = vpop.f32.mrb[8].mxu1  ;;  %v713_v62 = vsel %vm399_vm0, %v687_v59, 0.0 }
 0x1e1   : > { %711 = vadd.xlane.f32.xlu1 %v710_v61  ;;  %v651_v1 = vpop.f32.mrb[9].mxu1  ;;  %714 = vadd.xlane.f32.xlu0 %v713_v62  ;;  %v3594_v2 = vadd.f32 %v2980_v60, %v3545_v33 }
 0x1e2   : > { %v3597_v3 = vadd.f32 %v3545_v33, %v651_v1  ;;  %v2981_v4 = vpop.f32.mrb[10].mxu1 }
 0x1e3   : > { %v3600_v5 = vadd.f32 %v2981_v4, %v3545_v33  ;;  %v654_v6 = vpop.f32.mrb[11].mxu1  ;;  %v692_v14 = vmul.f32 %v3594_v2, %v3594_v2 }
 0x1e4   : > { %v3603_v7 = vadd.f32 %v3545_v33, %v654_v6  ;;  %v690_v11 = vmul.f32 %v3597_v3, %v3597_v3 }
 0x1e5   : > { %717 = vadd.xlane.f32.xlu1 %v716_v8  ;;  %720 = vadd.xlane.f32.xlu0 %v719_v9  ;;  %v693_v15 = vmul.f32 %v3600_v5, %v3600_v5  ;;  %v728_v22 = vsel %vm399_vm0, %v692_v14, 0.0 }
 0x1e6   : > { %v722_v12 = vsel %vm399_vm0, %v690_v11, 0.0  ;;  %v691_v13 = vmul.f32 %v3603_v7, %v3603_v7 }
 0x1e7   : > { %v731_v23 = vsel %vm399_vm0, %v693_v15, 0.0 }
 0x1e8   : > { %v2984_v16 = vpop.f32.mrb[12].mxu1  ;;  %v725_v17 = vsel %vm399_vm0, %v691_v13, 0.0 }
 0x1e9   : > { %723 = vadd.xlane.f32.xlu1 %v722_v12  ;;  %726 = vadd.xlane.f32.xlu0 %v725_v17  ;;  %v667_v18 = vpop.f32.mrb[13].mxu1  ;;  %v3618_v19 = vadd.f32 %v2984_v16, %v3545_v33 }
 0x1ea   : > { %v3621_v20 = vadd.f32 %v3545_v33, %v667_v18  ;;  %v2985_v21 = vpop.f32.mrb[14].mxu1 }
 0x1eb   : > { %v3626_v24 = vadd.f32 %v2985_v21, %v3545_v33  ;;  %v670_v25 = vpop.f32.mrb[15].mxu1  ;;  %v696_v31 = vmul.f32 %v3618_v19, %v3618_v19 }
 0x1ec   : > { %v3629_v26 = vadd.f32 %v3545_v33, %v670_v25  ;;  %v694_v27 = vmul.f32 %v3621_v20, %v3621_v20 }
 0x1ed   : > { %729 = vadd.xlane.f32.xlu1 %v728_v22  ;;  %732 = vadd.xlane.f32.xlu0 %v731_v23  ;;  %v697_v30 = vmul.f32 %v3626_v24, %v3626_v24  ;;  %v740_v33 = vsel %vm399_vm0, %v696_v31, 0.0 }
 0x1ee   : > { %v695_v28 = vmul.f32 %v3629_v26, %v3629_v26  ;;  %v734_v29 = vsel %vm399_vm0, %v694_v27, 0.0 }
 0x1ef   : > { %v743_v10 = vsel %vm399_vm0, %v697_v30, 0.0 }
 0x1f0   : > { %v737_v32 = vsel %vm399_vm0, %v695_v28, 0.0 }
 0x1f1   : > { %738 = vadd.xlane.f32.xlu0 %v737_v32  ;;  %735 = vadd.xlane.f32.xlu1 %v734_v29 }
 0x1f5   : > { %744 = vadd.xlane.f32.xlu0 %v743_v10  ;;  %741 = vadd.xlane.f32.xlu1 %v740_v33 }
 0x264   : > { %v3649_v37 = vpop.xlane.xlu0 %699 }
 0x265   : > { %3131 = vrsqrt.f32 %v3649_v37  ;;  %v746_v44 = vadd.f32 1.0, %v3649_v37  ;;  %vm812_vm4 = vcmp.eq.f32.partialorder %v3649_v37, inf  ;;  %vm814_vm5 = vcmp.eq.f32.partialorder %v3649_v37, 0.0 }
 0x266   : > { %v3652_v40 = vpop.xlane.xlu1 %702  ;;  %v815_v63 = vand.u32 2147483648, %v3649_v37 }
 0x267   : > { %3133 = vrsqrt.f32 %v3652_v40  ;;  %v747_v47 = vadd.f32 1.0, %v3652_v40  ;;  %vm819_vm6 = vcmp.eq.f32.partialorder %v3652_v40, inf  ;;  %vm821_vm7 = vcmp.eq.f32.partialorder %v3652_v40, 0.0 }
 0x268   : > { %v3655_v43 = vpop.xlane.xlu0 %708  ;;  %v822_v15 = vand.u32 2147483648, %v3652_v40 }
 0x269   : > { %3135 = vrsqrt.f32 %v3655_v43  ;;  %v749_v48 = vadd.f32 1.0, %v3655_v43  ;;  %vm833_vm8 = vcmp.eq.f32.partialorder %v3655_v43, inf  ;;  %vm835_vm9 = vcmp.eq.f32.partialorder %v3655_v43, 0.0 }
 0x26a   : > { %v3659_v45 = vpop.xlane.xlu1 %705  ;;  %v836_v22 = vand.u32 2147483648, %v3655_v43 }
 0x26b   : > { %3137 = vrsqrt.f32 %v3659_v45  ;;  %v748_v62 = vadd.f32 1.0, %v3659_v45  ;;  %vm826_vm10 = vcmp.eq.f32.partialorder %v3659_v45, inf  ;;  %vm828_vm11 = vcmp.eq.f32.partialorder %v3659_v45, 0.0 }
 0x26c   : > { %3139 = vrcp.f32 %v746_v44 }
 0x26e   : > { %v3667_v49 = vpop.xlane.xlu1 %711  ;;  %v3669_v51 = vpop.xlane.xlu0 %714 }
 0x26f   : > { %v3132_v54 = vpop.eup %3131  ;;  %3141 = vrsqrt.f32 %v3667_v49  ;;  %v750_v0 = vadd.f32 1.0, %v3667_v49  ;;  %v751_v6 = vadd.f32 1.0, %v3669_v51  ;;  %vm840_vm12 = vcmp.eq.f32.partialorder %v3667_v49, inf }
 0x270   : > { %v811_v61 = vmul.f32 %v3132_v54, %v3649_v37  ;;  %3143 = vrsqrt.f32 %v3669_v51  ;;  %vm842_vm13 = vcmp.eq.f32.partialorder %v3667_v49, 0.0  ;;  %v843_v33 = vand.u32 2147483648, %v3667_v49 }
 0x271   : > { %3145 = vrcp.f32 %v747_v47  ;;  %v3134_v1 = vpop.eup %3133  ;;  %vm847_vm14 = vcmp.eq.f32.partialorder %v3669_v51, inf  ;;  %vm849_vm15 = vcmp.eq.f32.partialorder %v3669_v51, 0.0 }
 0x272   : > { %v813_v4 = vsel %vm812_vm4, %v3649_v37, %v811_v61  ;;  %3147 = vrcp.f32 %v749_v48  ;;  %v3687_v8 = vpop.xlane.xlu1 %717  ;;  %v3689_v9 = vpop.xlane.xlu0 %720  ;;  %v818_v12 = vmul.f32 %v3134_v1, %v3652_v40 }
 0x273   : > { %v816_v11 = vsel %vm814_vm5, %v815_v63, %v813_v4  ;;  %v752_v13 = vadd.f32 1.0, %v3687_v8  ;;  %3149 = vrsqrt.f32 %v3687_v8  ;;  %v3136_v14 = vpop.eup %3135  ;;  %v753_v27 = vadd.f32 1.0, %v3689_v9 }
 0x274   : > { %3151 = vrcp.f32 %v748_v62  ;;  %v922_v16 = vadd.f32 1e-08, %v816_v11  ;;  %v820_v17 = vsel %vm819_vm6, %v3652_v40, %v818_v12  ;;  %v832_v18 = vmul.f32 %v3136_v14, %v3655_v43 }
 0x275   : > { %3153 = vrcp.f32 %v750_v0  ;;  %v823_v21 = vsel %vm821_vm7, %v822_v15, %v820_v17  ;;  %v3138_v23 = vpop.eup %3137  ;;  %v850_v63 = vand.u32 2147483648, %v3669_v51  ;;  %vm854_vm1 = vcmp.eq.f32.partialorder %v3687_v8, inf }
 0x276   : > { %3155 = vrcp.f32 %v751_v6  ;;  %v834_v25 = vsel %vm833_vm8, %v3655_v43, %v832_v18  ;;  %v3704_v28 = vpop.xlane.xlu1 %723  ;;  %v3706_v29 = vpop.xlane.xlu0 %726  ;;  %v923_v31 = vadd.f32 1e-08, %v823_v21  ;;  %v825_v35 = vmul.f32 %v3138_v23, %v3659_v45 }
 0x277   : > { %3157 = vrcp.f32 %v752_v13  ;;  %v3140_v30 = vpop.eup %3139  ;;  %v837_v32 = vsel %vm835_vm9, %v836_v22, %v834_v25  ;;  %v754_v0 = vadd.f32 1.0, %v3704_v28  ;;  %v755_v11 = vadd.f32 1.0, %v3706_v29 }
 0x278   : > { %3159 = vrsqrt.f32 %v3689_v9  ;;  %v925_v48 = vadd.f32 1e-08, %v837_v32  ;;  %v827_v14 = vsel %vm826_vm10, %v3659_v45, %v825_v35  ;;  %v829_v22 = vand.u32 2147483648, %v3659_v45 }
 0x279   : > { %v3142_v10 = vpop.eup %3141  ;;  %3161 = vrcp.f32 %v922_v16  ;;  %v857_v23 = vand.u32 2147483648, %v3687_v8  ;;  %vm856_vm2 = vcmp.eq.f32.partialorder %v3687_v8, 0.0  ;;  %vm861_vm3 = vcmp.eq.f32.partialorder %v3689_v9, inf }
 0x27a   : > { %v3144_v34 = vpop.eup %3143  ;;  %v839_v44 = vmul.f32 %v3142_v10, %v3667_v49  ;;  %3163 = vrsqrt.f32 %v3704_v28  ;;  %v3729_v12 = vpop.xlane.xlu0 %732  ;;  %v830_v10 = vsel %vm828_vm11, %v829_v22, %v827_v14  ;;  %vm863_vm4 = vcmp.eq.f32.partialorder %v3689_v9, 0.0 }
 0x27b   : > { %v3717_v47 = vpop.eup %3145  ;;  %v846_v54 = vmul.f32 %v3144_v34, %v3669_v51  ;;  %3165 = vrcp.f32 %v753_v27  ;;  %v3739_v18 = vpop.xlane.xlu1 %729  ;;  %vm868_vm5 = vcmp.eq.f32.partialorder %v3704_v28, inf  ;;  %vm870_vm6 = vcmp.eq.f32.partialorder %v3704_v28, 0.0 }
 0x27c   : > { %v3148_v61 = vpop.eup %3147  ;;  %3167 = vrcp.f32 %v923_v31  ;;  %v841_v62 = vsel %vm840_vm12, %v3667_v49, %v839_v44  ;;  %v756_v34 = vadd.f32 1.0, %v3739_v18  ;;  %vm875_vm7 = vcmp.eq.f32.partialorder %v3706_v29, inf }
 0x27d   : > { %v3150_v1 = vpop.eup %3149  ;;  %v844_v4 = vsel %vm842_vm13, %v843_v33, %v841_v62  ;;  %v848_v6 = vsel %vm847_vm14, %v3669_v51, %v846_v54  ;;  %3169 = vrsqrt.f32 %v3706_v29  ;;  %v3756_v44 = vmul.f32 %v3148_v61, %v3655_v43 }
 0x27e   : > { %v3731_v13 = vpop.eup %3151  ;;  %v926_v15 = vadd.f32 1e-08, %v844_v4  ;;  %v851_v16 = vsel %vm849_vm15, %v850_v63, %v848_v6  ;;  %v853_v17 = vmul.f32 %v3150_v1, %v3687_v8  ;;  %3171 = vrcp.f32 %v925_v48 }
 0x27f   : > { %v3741_v21 = vpop.eup %3153  ;;  %v927_v27 = vadd.f32 1e-08, %v851_v16  ;;  %3173 = vrcp.f32 %v754_v0  ;;  %v3760_v48 = vmul.f32 %v3140_v30, %v3649_v37  ;;  %v3767_v0 = vpop.xlane.xlu0 %738  ;;  %v3769_v43 = vadd.f32 1e-08, %v830_v10 }
 0x280   : > { %v3746_v25 = vpop.eup %3155  ;;  %v855_v31 = vsel %vm854_vm1, %v3687_v8, %v853_v17  ;;  %3175 = vrcp.f32 %v755_v11  ;;  %v864_v61 = vand.u32 2147483648, %v3689_v9  ;;  %v757_v6 = vadd.f32 1.0, %v3729_v12  ;;  %v3781_v16 = vpop.xlane.xlu1 %735 }
 0x281   : > { %v3750_v32 = vpop.eup %3157  ;;  %v858_v33 = vsel %vm856_vm2, %v857_v23, %v855_v31  ;;  %3177 = vrcp.f32 %v926_v15  ;;  %v759_v15 = vadd.f32 1.0, %v3767_v0  ;;  %v871_v23 = vand.u32 2147483648, %v3704_v28 }
 0x282   : > { %v3160_v35 = vpop.eup %3159  ;;  %v928_v62 = vadd.f32 1e-08, %v858_v33  ;;  %3179 = vrsqrt.f32 %v3739_v18  ;;  %vm877_vm8 = vcmp.eq.f32.partialorder %v3706_v29, 0.0  ;;  %v878_v31 = vand.u32 2147483648, %v3706_v29 }
 0x283   : > { %v3762_v54 = vpop.eup %3161  ;;  %v860_v63 = vmul.f32 %v3160_v35, %v3689_v9  ;;  %3181 = vrcp.f32 %v927_v27  ;;  %vm882_vm9 = vcmp.eq.f32.partialorder %v3739_v18, inf  ;;  %vm884_vm10 = vcmp.eq.f32.partialorder %v3739_v18, 0.0 }
 0x284   : > { %v3164_v1 = vpop.eup %3163  ;;  %3183 = vrcp.f32 %v756_v34  ;;  %v758_v34 = vadd.f32 1.0, %v3781_v16  ;;  %vm889_vm11 = vcmp.eq.f32.partialorder %v3729_v12, inf  ;;  %vm891_vm12 = vcmp.eq.f32.partialorder %v3729_v12, 0.0 }
 0x285   : > { %v3773_v37 = vpop.eup %3165  ;;  %v862_v30 = vsel %vm861_vm3, %v3689_v9, %v860_v63  ;;  %v867_v4 = vmul.f32 %v3164_v1, %v3704_v28  ;;  %3185 = vrsqrt.f32 %v3729_v12  ;;  %vm903_vm13 = vcmp.eq.f32.partialorder %v3767_v0, inf }
 0x286   : > { %v3168_v11 = vpop.eup %3167  ;;  %v865_v14 = vsel %vm863_vm4, %v864_v61, %v862_v30  ;;  %3187 = vrcp.f32 %v928_v62  ;;  %v885_v62 = vand.u32 2147483648, %v3739_v18  ;;  %v892_v61 = vand.u32 2147483648, %v3729_v12 }
 0x287   : > { %v3170_v17 = vpop.eup %3169  ;;  %v929_v22 = vadd.f32 1e-08, %v865_v14  ;;  %3189 = vrsqrt.f32 %v3767_v0  ;;  %v869_v33 = vsel %vm868_vm5, %v3704_v28, %v867_v4  ;;  %v765_v14 = vmul.f32 %v3717_v47, %v3652_v40 }
 0x288   : > { %v874_v27 = vmul.f32 %v3170_v17, %v3706_v29  ;;  %v3789_v10 = vpop.eup %3171  ;;  %3191 = vrcp.f32 %v757_v6  ;;  %v872_v4 = vsel %vm870_vm6, %v871_v23, %v869_v33  ;;  %v3814_v6 = vpop.xlane.xlu0 %744  ;;  %vm905_vm14 = vcmp.eq.f32.partialorder %v3767_v0, 0.0 }
 0x289   : > { %v3796_v35 = vpop.eup %3173  ;;  %3193 = vrcp.f32 %v759_v15  ;;  %v906_v17 = vand.u32 2147483648, %v3767_v0  ;;  %vm896_vm15 = vcmp.eq.f32.partialorder %v3781_v16, inf  ;;  %v794_v40 = vmul.f32 %v3760_v48, %v3548_v36 }
 0x28a   : > { %v3801_v63 = vpop.eup %3175  ;;  %3195 = vrcp.f32 %v929_v22  ;;  %v876_v1 = vsel %vm875_vm7, %v3706_v29, %v874_v27  ;;  %v899_v22 = vand.u32 2147483648, %v3781_v16  ;;  %v3821_v27 = vpop.xlane.xlu1 %741  ;;  %v795_v47 = vmul.f32 %v765_v14, %v3557_v41 }
 0x28b   : > { %v3808_v30 = vpop.eup %3177  ;;  %3197 = vrsqrt.f32 %v3781_v16  ;;  %v879_v33 = vsel %vm877_vm8, %v878_v31, %v876_v1  ;;  %vm898_vm1 = vcmp.eq.f32.partialorder %v3781_v16, 0.0  ;;  %v761_v59 = vadd.f32 1.0, %v3814_v6 }
 0x28c   : > { %v3180_v15 = vpop.eup %3179  ;;  %3199 = vrcp.f32 %v758_v34  ;;  %v930_v34 = vadd.f32 1e-08, %v872_v4  ;;  %v760_v36 = vadd.f32 1.0, %v3821_v27  ;;  %v3843_v41 = vmul.f32 %v3762_v54, %v794_v40 }
 0x28d   : > { %v3823_v23 = vpop.eup %3181  ;;  %v881_v42 = vmul.f32 %v3180_v15, %v3739_v18  ;;  %3201 = vrsqrt.f32 %v3814_v6  ;;  %v3845_v48 = vmul.f32 %v3168_v11, %v795_v47  ;;  %v931_v14 = vadd.f32 1e-08, %v879_v33 }
 0x28e   : > { %v3832_v60 = vpop.eup %3183  ;;  %4729 = vst [vmem:[#allocation3_spill] sm:$0xff] %v3843_v41  ;;  %vm917_vm2 = vcmp.eq.f32.partialorder %v3814_v6, inf  ;;  %3203 = vrsqrt.f32 %v3821_v27  ;;  %v767_v53 = vmul.f32 %v3731_v13, %v3659_v45  ;;  %vm919_vm3 = vcmp.eq.f32.partialorder %v3814_v6, 0.0 }
 0x28f   : > { %v3186_v1 = vpop.eup %3185  ;;  %v883_v15 = vsel %vm882_vm9, %v3739_v18, %v881_v42  ;;  %4730 = vst [vmem:[#allocation4_spill] sm:$0xff] %v3845_v48  ;;  %v970_v54 = vpack.c.bf16 %v3845_v48, %v3843_v41  ;;  %3205 = vrcp.f32 %v3769_v43  ;;  %v771_v11 = vmul.f32 %v3741_v21, %v3667_v49 }
 0x290   : > { %v3847_v4 = vpop.eup %3187  ;;  %v888_v58 = vmul.f32 %v3186_v1, %v3729_v12  ;;  %v886_v31 = vsel %vm884_vm10, %v885_v62, %v883_v15  ;;  %3207 = vrcp.f32 %v930_v34  ;;  %v773_v62 = vmul.f32 %v3746_v25, %v3669_v51 }
 0x291   : > { %v3190_v42 = vpop.eup %3189  ;;  %vm910_vm4 = vcmp.eq.f32.partialorder %v3821_v27, inf  ;;  %vm912_vm5 = vcmp.eq.f32.partialorder %v3821_v27, 0.0  ;;  %v913_v21 = vand.u32 2147483648, %v3821_v27  ;;  %3006 = vmatprep.mubr.msk.bf16.mxu0 %vm399_vm0, %v970_v54  ;;  %3209 = vrcp.f32 %v931_v14 }
 0x292   : > { %v3862_v33 = vpop.f32.mrb[16].mxu1  ;;  %v3864_v40 = vpop.eup %3191  ;;  %v890_v45 = vsel %vm889_vm11, %v3729_v12, %v888_v58  ;;  %v902_v13 = vmul.f32 %v3190_v42, %v3767_v0  ;;  %v932_v34 = vadd.f32 1e-08, %v886_v31  ;;  %v797_v25 = vmul.f32 %v3756_v44, %v3554_v39 }
 0x293   : > { %v3000_v47 = vpop.f32.mrb[17].mxu1  ;;  %v3872_v1 = vpop.eup %3193  ;;  %v893_v49 = vsel %vm891_vm12, %v892_v61, %v890_v45  ;;  %3211 = vrcp.f32 %v761_v59  ;;  %v796_v45 = vmul.f32 %v767_v53, %v3551_v38  ;;  %v798_v54 = vmul.f32 %v771_v11, %v3570_v50 }
 0x294   : > { %v1109_v58 = vpop.f32.mrb[18].mxu1  ;;  %v3196_v43 = vpop.eup %3195  ;;  %v904_v51 = vsel %vm903_vm13, %v3767_v0, %v902_v13  ;;  %v933_v31 = vadd.f32 1e-08, %v893_v49  ;;  %v3893_v13 = vmul.f32 %v3789_v10, %v797_v25  ;;  %v799_v39 = vmul.f32 %v773_v62, %v3581_v57 }
 0x295   : > { %v3001_v61 = vpop.f32.mrb[19].mxu1  ;;  %v3198_v15 = vpop.eup %3197  ;;  %v907_v42 = vsel %vm905_vm14, %v906_v17, %v904_v51  ;;  %3213 = vrcp.f32 %v760_v36  ;;  %v3897_v58 = vmul.f32 %v3808_v30, %v798_v54  ;;  %v1451_v38 = vrot.slane %v3862_v33, %v1450_v52 }
 0x296   : > { %v3889_v47 = vpop.eup %3199  ;;  %v895_v14 = vmul.f32 %v3198_v15, %v3781_v16  ;;  %v935_v44 = vadd.f32 1e-08, %v907_v42  ;;  %3215 = vrcp.f32 %v932_v34  ;;  %v3906_v59 = vmul.f32 %v3823_v23, %v799_v39 }
 0x297   : > { %v3202_v50 = vpop.eup %3201  ;;  %v775_v57 = vmul.f32 %v3750_v32, %v3687_v8  ;;  %v777_v52 = vmul.f32 %v3773_v37, %v3689_v9  ;;  %v779_v17 = vmul.f32 %v3796_v35, %v3704_v28  ;;  %3217 = vrcp.f32 %v933_v31 }
 0x298   : > { %v897_v53 = vsel %vm896_vm15, %v3781_v16, %v895_v14  ;;  %v916_v30 = vmul.f32 %v3202_v50, %v3814_v6  ;;  %v3204_v36 = vpop.eup %3203  ;;  %v1453_v11 = vmul.f32 %v1451_v38, %v3845_v48  ;;  %v1452_v8 = vmul.f32 %v1451_v38, %v3843_v41 }
 0x299   : > { %v900_v10 = vsel %vm898_vm1, %v899_v22, %v897_v53  ;;  %v3206_v32 = vpop.eup %3205  ;;  %3219 = vrcp.f32 %v935_v44  ;;  %v909_v62 = vmul.f32 %v3204_v36, %v3821_v27  ;;  %v781_v9 = vmul.f32 %v3801_v63, %v3706_v29 }
 0x29a   : > { %v934_v23 = vadd.f32 1e-08, %v900_v10  ;;  %v918_v22 = vsel %vm917_vm2, %v3814_v6, %v916_v30  ;;  %v3208_v37 = vpop.eup %3207  ;;  %v4731_v28 = vand.u32 2147483648, %v3814_v6  ;;  %v3931_v49 = vmul.f32 %v3206_v32, %v796_v45 }
 0x29b   : > { %v800_v34 = vmul.f32 %v775_v57, %v3575_v55  ;;  %v911_v51 = vsel %vm910_vm4, %v3821_v27, %v909_v62  ;;  %v972_v25 = vpack.c.bf16 %v3906_v59, %v3897_v58  ;;  %v1457_v29 = vsel %vm399_vm0, %v1453_v11, 0.0  ;;  %v3210_v61 = vpop.eup %3209 }
 0x29c   : > { %3221 = vrcp.f32 %v934_v23  ;;  %v921_v35 = vsel %vm919_vm3, %v4731_v28, %v918_v22  ;;  %v1454_v63 = vsel %vm399_vm0, %v1452_v8, 0.0  ;;  %v914_v42 = vsel %vm912_vm5, %v913_v21, %v911_v51  ;;  %1458 = vadd.xlane.f32.xlu0 %v1457_v29 }
 0x29d   : > { %v937_v15 = vadd.f32 1e-08, %v921_v35  ;;  %v971_v45 = vpack.c.bf16 %v3893_v13, %v3931_v49  ;;  %v801_v55 = vmul.f32 %v777_v52, %v3578_v56  ;;  %1455 = vadd.xlane.f32.xlu1 %v1454_v63  ;;  %v3212_v54 = vpop.eup %3211  ;;  %v936_v31 = vadd.f32 1e-08, %v914_v42 }
 0x29e   : > { %v802_v14 = vmul.f32 %v779_v17, %v3597_v3  ;;  %v803_v39 = vmul.f32 %v781_v9, %v3603_v7  ;;  %v4732_v44 = vsub.s32 1, %v3662_v46  ;;  %v3953_v21 = vmul.f32 %v3847_v4, %v800_v34 }
 0x29f   : > { %3007 = vmatmul.mubr.msk.bf16.vlgmr.msra.gmra.mrb[20].mxu0 %vm399_vm0, %v971_v45  ;;  %v3955_v50 = vmul.f32 %v3196_v43, %v801_v55  ;;  %v783_v56 = vmul.f32 %v3832_v60, %v3739_v18  ;;  %v4733_v53 = vsub.s32 2, %v3662_v46  ;;  %v3214_v57 = vpop.eup %3213  ;;  %3223 = vrcp.f32 %v937_v15 }
 0x2a0   : > { %v1612_v38 = vrot.slane %v3862_v33, %v4732_v44  ;;  %3010 = vmatprep.mubr.msk.bf16.mxu0 %vm399_vm0, %v972_v25  ;;  %v3963_v7 = vmul.f32 %v3208_v37, %v802_v14  ;;  %v3965_v10 = vmul.f32 %v3210_v61, %v803_v39  ;;  %v3216_v43 = vpop.eup %3215  ;;  %v785_v60 = vmul.f32 %v3864_v40, %v3729_v12 }
 0x2a1   : > { %v1770_v3 = vrot.slane %v3862_v33, %v4733_v53  ;;  %v787_v18 = vmul.f32 %v3889_v47, %v3781_v16  ;;  %v789_v52 = vmul.f32 %v3872_v1, %v3767_v0  ;;  %3225 = vrcp.f32 %v936_v31  ;;  %v3218_v11 = vpop.eup %3217 }
 0x2a2   : > { %v1614_v30 = vmul.f32 %v1612_v38, %v3893_v13  ;;  %v1613_v4 = vmul.f32 %v1612_v38, %v3931_v49  ;;  %v973_v8 = vpack.c.bf16 %v3955_v50, %v3953_v21  ;;  %v974_v16 = vpack.c.bf16 %v3965_v10, %v3963_v7 }
 0x2a3   : > { %v1772_v23 = vmul.f32 %v1770_v3, %v3906_v59  ;;  %v1771_v12 = vmul.f32 %v1770_v3, %v3897_v58  ;;  %v3220_v40 = vpop.eup %3219  ;;  %v4734_v0 = vsub.s32 3, %v3662_v46  ;;  %v804_v32 = vmul.f32 %v783_v56, %v3594_v2 }
 0x2a4   : > { %v1618_v17 = vsel %vm399_vm0, %v1614_v30, 0.0  ;;  %v1615_v36 = vsel %vm399_vm0, %v1613_v4, 0.0  ;;  %v805_v22 = vmul.f32 %v785_v60, %v3600_v5  ;;  %v806_v62 = vmul.f32 %v787_v18, %v3621_v20 }
 0x2a5   : > { %1619 = vadd.xlane.f32.xlu0 %v1618_v17  ;;  %1616 = vadd.xlane.f32.xlu1 %v1615_v36  ;;  %v1928_v1 = vrot.slane %v3862_v33, %v4734_v0  ;;  %v807_v9 = vmul.f32 %v789_v52, %v3629_v26  ;;  %v1776_v37 = vsel %vm399_vm0, %v1772_v23, 0.0  ;;  %v4735_v35 = vsub.s32 4, %v3662_v46  ;;  %v4059_v0 = vld [vmem:[%s4053_s20] sm:$0xff] }
 0x2a6   : > { %v3222_v47 = vpop.eup %3221  ;;  %v3996_v51 = vmul.f32 %v3216_v43, %v804_v32  ;;  %v3998_v25 = vmul.f32 %v3218_v11, %v805_v22  ;;  %v1773_v2 = vsel %vm399_vm0, %v1771_v12, 0.0  ;;  %v793_v29 = vmul.f32 %v3212_v54, %v3814_v6 }
 0x2a7   : > { %v1930_v28 = vmul.f32 %v1928_v1, %v3955_v50  ;;  %v2086_v34 = vrot.slane %v3862_v33, %v4735_v35  ;;  %3011 = vmatmul.mubr.msk.bf16.gmra.mrb[24].mxu0 %vm399_vm0, %v973_v8  ;;  %v1929_v5 = vmul.f32 %v1928_v1, %v3953_v21  ;;  %v4003_v20 = vmul.f32 %v3222_v47, %v806_v62  ;;  %v4072_v62 = vld [vmem:[%s4053_s20 + $0x18] sm:$0xff] }
 0x2a8   : > { %3014 = vmatprep.mubr.msk.bf16.mxu0 %vm399_vm0, %v974_v16  ;;  %v4005_v26 = vmul.f32 %v3220_v40, %v807_v9  ;;  %v2243_v63 = vsub.s32 5, %v3662_v46  ;;  %v791_v61 = vmul.f32 %v3214_v57, %v3821_v27  ;;  %v975_v55 = vpack.c.bf16 %v3998_v25, %v3996_v51  ;;  %v4075_v9 = vld [vmem:[%s4053_s20 + $0x10] sm:$0xff] }
 0x2a9   : > { %1777 = vadd.xlane.f32.xlu0 %v1776_v37  ;;  %4736 = vst [vmem:[#allocation5_spill] sm:$0xff] %v4003_v20  ;;  %1774 = vadd.xlane.f32.xlu1 %v1773_v2  ;;  %v1934_v15 = vsel %vm399_vm0, %v1930_v28, 0.0  ;;  %v2088_v42 = vmul.f32 %v2086_v34, %v3965_v10  ;;  %v3224_v45 = vpop.eup %3223  ;;  %v1931_v31 = vsel %vm399_vm0, %v1929_v5, 0.0  ;;  %v2087_v14 = vmul.f32 %v2086_v34, %v3963_v7  ;;  %v4084_v2 = vld [vmem:[%s4053_s20 + $0x28] sm:$0xff] }
 0x2aa   : > { %4737 = vst [vmem:[#allocation6_spill] sm:$0xff] %v4005_v26  ;;  %v976_v6 = vpack.c.bf16 %v4005_v26, %v4003_v20  ;;  %v809_v54 = vmul.f32 %v793_v29, %v3626_v24  ;;  %v2244_v27 = vrot.slane %v3862_v33, %v2243_v63  ;;  %v2559_v44 = vsub.s32 7, %v3662_v46  ;;  %v4087_v63 = vld [vmem:[%s4053_s20 + $0x20] sm:$0xff] }
 0x2ab   : > { %v3226_v39 = vpop.eup %3225  ;;  %v808_v38 = vmul.f32 %v791_v61, %v3618_v19  ;;  %v2092_v53 = vsel %vm399_vm0, %v2088_v42, 0.0  ;;  %v2089_v24 = vsel %vm399_vm0, %v2087_v14, 0.0  ;;  %v2401_v4 = vsub.s32 6, %v3662_v46 }
 0x2ac   : > { %v4022_v56 = vmul.f32 %v3224_v45, %v809_v54  ;;  %v2246_v3 = vmul.f32 %v2244_v27, %v3998_v25  ;;  %v2245_v30 = vmul.f32 %v2244_v27, %v3996_v51  ;;  %v2560_v19 = vrot.slane %v3862_v33, %v2559_v44  ;;  %v4107_v54 = vld [vmem:[%s4053_s20 + $0x30] sm:$0xff] }
 0x2ad   : > { %1935 = vadd.xlane.f32.xlu0 %v1934_v15  ;;  %1932 = vadd.xlane.f32.xlu1 %v1931_v31  ;;  %v4027_v57 = vmul.f32 %v3226_v39, %v808_v38  ;;  %v2402_v36 = vrot.slane %v3862_v33, %v2401_v4  ;;  %v3397_v16 = vmov 0   ;;  %v4056_v33 = vld [vmem:[%s4053_s20 + $0x8] sm:$0xff]  ;;  %vm1460_vm6 = vcmp.gt.f32.partialorder %v4059_v0, 0.5  ;;  %v4104_v39 = vld [vmem:[%s4053_s20 + $0x38] sm:$0xff] }
 0x2ae   : > { %v2250_v43 = vsel %vm399_vm0, %v2246_v3, 0.0  ;;  %v2562_v60 = vmul.f32 %v2560_v19, %v4022_v56  ;;  %v2247_v52 = vsel %vm399_vm0, %v2245_v30, 0.0  ;;  %3082 = vset.pattern.permute.xlu0 %v3397_v16  ;;  %3081 = vset.pattern.permute.xlu1 %v3397_v16  ;;  %vm1464_vm7 = vcmask 7168  }
 0x2af   : > { %3015 = vmatmul.mubr.msk.bf16.gmra.mrb[28].mxu0 %vm399_vm0, %v975_v55  ;;  %v977_v18 = vpack.c.bf16 %v4022_v56, %v4027_v57  ;;  %v2561_v17 = vmul.f32 %v2560_v19, %v4027_v57  ;;  %v2404_v46 = vmul.f32 %v2402_v36, %v4005_v26  ;;  %v2403_v8 = vmul.f32 %v2402_v36, %v4003_v20 }
 0x2b0   : > { %3018 = vmatprep.mubr.msk.bf16.mxu0 %vm399_vm0, %v976_v6  ;;  %v2566_v23 = vsel %vm399_vm0, %v2562_v60, 0.0  ;;  %vm1622_vm8 = vcmp.gt.f32.partialorder %v4072_v62, 0.5  ;;  %vm1621_vm9 = vcmp.gt.f32.partialorder %v4075_v9, 0.5  ;;  %vm1780_vm10 = vcmp.gt.f32.partialorder %v4084_v2, 0.5 }
 0x2b1   : > { %2093 = vadd.xlane.f32.xlu0 %v2092_v53  ;;  %2090 = vadd.xlane.f32.xlu1 %v2089_v24  ;;  %v2563_v11 = vsel %vm399_vm0, %v2561_v17, 0.0  ;;  %v2408_v12 = vsel %vm399_vm0, %v2404_v46, 0.0  ;;  %v2405_v40 = vsel %vm399_vm0, %v2403_v8, 0.0  ;;  %vm1779_vm11 = vcmp.gt.f32.partialorder %v4087_v63, 0.5 }
 0x2b2   : > { %vm1938_vm12 = vcmp.gt.f32.partialorder %v4104_v39, 0.5  ;;  %vm1937_vm13 = vcmp.gt.f32.partialorder %v4107_v54, 0.5 }
 0x2b5   : > { %2251 = vadd.xlane.f32.xlu0 %v2250_v43  ;;  %2248 = vadd.xlane.f32.xlu1 %v2247_v52  ;;  %v4127_v52 = vld [vmem:[%s4053_s20 + $0x40] sm:$0xff] }
 0x2b6   : > { %vm2095_vm15 = vcmp.gt.f32.partialorder %v4127_v52, 0.5 }
 0x2b7   : > { %3019 = vmatmul.mubr.msk.bf16.gmra.mrb[32].mxu0 %vm399_vm0, %v977_v18  ;;  %vm1461_vm0 = vcmp.gt.f32.partialorder %v4056_v33, 0.5  ;;  %v4124_v18 = vld [vmem:[%s4053_s20 + $0x48] sm:$0xff] }
 0x2b8   : > { %vm2096_vm14 = vcmp.gt.f32.partialorder %v4124_v18, 0.5 }
 0x2b9   : > { %2567 = vadd.xlane.f32.xlu0 %v2566_v23  ;;  %2564 = vadd.xlane.f32.xlu1 %v2563_v11 }
 0x2bd   : > { %2409 = vadd.xlane.f32.xlu0 %v2408_v12  ;;  %2406 = vadd.xlane.f32.xlu1 %v2405_v40  ;;  %v4140_v40 = vld [vmem:[%s4053_s20 + $0x58] sm:$0xff] }
 0x2be   : > { %vm2254_vm1 = vcmp.gt.f32.partialorder %v4140_v40, 0.5 }
 0x329   : > { %v1459_v1 = vpop.xlane.xlu0 %1458 }
 0x32a   : > { %v1456_v47 = vpop.xlane.xlu1 %1455  ;;  %v4065_v32 = vsel %vm1461_vm0, %v1459_v1, -1e+30 }
 0x32b   : > { %v4069_v22 = vsel %vm1460_vm6, %v1456_v47, -1e+30  ;;  %v1466_v37 = vsel %vm1464_vm7, %v4065_v32, -inf }
 0x32c   : > { %v1465_v28 = vsel %vm1464_vm7, %v4069_v22, -inf }
 0x32d   : > { %v1467_v35 = vmax.f32 %v1465_v28, %v1466_v37 }
 0x32f   : > { %v1468_v34 = vrot.slane %v1467_v35, 4 }
 0x331   : > { %v1469_v61 = vmax.f32 %v1467_v35, %v1468_v34 }
 0x332   : > { %v1620_v5 = vpop.xlane.xlu0 %1619  ;;  %v1617_v29 = vpop.xlane.xlu1 %1616 }
 0x333   : > { %v4091_v15 = vsel %vm1622_vm8, %v1620_v5, -1e+30  ;;  %v4095_v42 = vsel %vm1621_vm9, %v1617_v29, -1e+30  ;;  %v1470_v31 = vrot.slane %v1469_v61, 2 }
 0x334   : > { %v1626_v45 = vsel %vm1464_vm7, %v4091_v15, -inf  ;;  %v1625_v55 = vsel %vm1464_vm7, %v4095_v42, -inf }
 0x335   : > { %v1627_v14 = vmax.f32 %v1625_v55, %v1626_v45  ;;  %v1471_v27 = vmax.f32 %v1469_v61, %v1470_v31  ;;  %v4150_v61 = vld [vmem:[%s4053_s20 + $0x50] sm:$0xff] }
 0x336   : > { %v1778_v6 = vpop.xlane.xlu0 %1777  ;;  %v1775_v53 = vpop.xlane.xlu1 %1774  ;;  %vm2253_vm2 = vcmp.gt.f32.partialorder %v4150_v61, 0.5 }
 0x337   : > { %v1628_v44 = vrot.slane %v1627_v14, 4  ;;  %v4111_v38 = vsel %vm1780_vm10, %v1778_v6, -1e+30  ;;  %v4117_v24 = vsel %vm1779_vm11, %v1775_v53, -1e+30  ;;  %v1472_v30 = vrot.slane %v1471_v27, 1 }
 0x338   : > { %v1784_v3 = vsel %vm1464_vm7, %v4111_v38, -inf  ;;  %v1783_v4 = vsel %vm1464_vm7, %v4117_v24, -inf }
 0x339   : > { %v1629_v19 = vmax.f32 %v1627_v14, %v1628_v44  ;;  %v1785_v43 = vmax.f32 %v1783_v4, %v1784_v3  ;;  %v1473_v17 = vmax.f32 %v1471_v27, %v1472_v30 }
 0x33a   : > { %v1936_v60 = vpop.xlane.xlu0 %1935  ;;  %v1933_v46 = vpop.xlane.xlu1 %1932 }
 0x33b   : > { %v1630_v36 = vrot.slane %v1629_v19, 2  ;;  %v4131_v23 = vsel %vm1938_vm12, %v1936_v60, -1e+30  ;;  %v1786_v11 = vrot.slane %v1785_v43, 4  ;;  %v4137_v12 = vsel %vm1937_vm13, %v1933_v46, -1e+30 }
 0x33c   : > { %v1942_v8 = vsel %vm1464_vm7, %v4131_v23, -inf  ;;  %v1941_v1 = vsel %vm1464_vm7, %v4137_v12, -inf  ;;  %v1474_v35 = vsub.f32 %v4069_v22, %v1473_v17  ;;  %v1475_v34 = vsub.f32 %v4065_v32, %v1473_v17 }
 0x33d   : > { %v1631_v16 = vmax.f32 %v1629_v19, %v1630_v36  ;;  %v1787_v47 = vmax.f32 %v1785_v43, %v1786_v11  ;;  %v1943_v37 = vmax.f32 %v1941_v1, %v1942_v8 }
 0x33e   : > { %v2094_v28 = vpop.xlane.xlu0 %2093  ;;  %v2091_v29 = vpop.xlane.xlu1 %2090  ;;  %v1476_v3 = vmul.f32 1.442695, %v1474_v35  ;;  %v1478_v43 = vmul.f32 1.442695, %v1475_v34 }
 0x33f   : > { %v1632_v5 = vrot.slane %v1631_v16, 1  ;;  %v1788_v45 = vrot.slane %v1787_v47, 2  ;;  %v1944_v55 = vrot.slane %v1943_v37, 4  ;;  %v4154_v31 = vsel %vm2096_vm14, %v2094_v28, -1e+30 }
 0x340   : > { %v4158_v14 = vsel %vm2095_vm15, %v2091_v29, -1e+30  ;;  %v2100_v22 = vsel %vm1464_vm7, %v4154_v31, -inf  ;;  %3227 = vpow2.f32 %v1476_v3 }
 0x341   : > { %v2099_v32 = vsel %vm1464_vm7, %v4158_v14, -inf  ;;  %v1633_v6 = vmax.f32 %v1631_v16, %v1632_v5  ;;  %v1945_v27 = vmax.f32 %v1943_v37, %v1944_v55  ;;  %v1789_v30 = vmax.f32 %v1787_v47, %v1788_v45 }
 0x342   : > { %v2101_v44 = vmax.f32 %v2099_v32, %v2100_v22  ;;  %v2252_v53 = vpop.xlane.xlu0 %2251  ;;  %v2249_v4 = vpop.xlane.xlu1 %2248  ;;  %3229 = vpow2.f32 %v1478_v43  ;;  %v4187_v32 = vld [vmem:[%s4053_s20 + $0x60] sm:$0xff] }
 0x343   : > { %v4167_v19 = vsel %vm2254_vm1, %v2252_v53, -1e+30  ;;  %v1946_v60 = vrot.slane %v1945_v27, 2  ;;  %v4173_v46 = vsel %vm2253_vm2, %v2249_v4, -1e+30  ;;  %v1634_v11 = vsub.f32 %v4095_v42, %v1633_v6  ;;  %v4184_v42 = vld [vmem:[%s4053_s20 + $0x68] sm:$0xff] }
 0x344   : > { %v2102_v17 = vrot.slane %v2101_v44, 4  ;;  %v2258_v36 = vsel %vm1464_vm7, %v4167_v19, -inf  ;;  %v2257_v1 = vsel %vm1464_vm7, %v4173_v46, -inf  ;;  %v1635_v37 = vsub.f32 %v4091_v15, %v1633_v6 }
 0x345   : > { %v1947_v8 = vmax.f32 %v1945_v27, %v1946_v60  ;;  %v1790_v28 = vrot.slane %v1789_v30, 1  ;;  %v2259_v35 = vmax.f32 %v2257_v1, %v2258_v36  ;;  %v1636_v55 = vmul.f32 1.442695, %v1634_v11 }
 0x346   : > { %v2103_v16 = vmax.f32 %v2101_v44, %v2102_v17  ;;  %v4178_v47 = vpop.xlane.xlu0 %2567  ;;  %v4181_v34 = vpop.xlane.xlu1 %2564  ;;  %v1638_v27 = vmul.f32 1.442695, %v1635_v37  ;;  %vm2412_vm3 = vcmp.gt.f32.partialorder %v4184_v42, 0.5  ;;  %vm2411_vm4 = vcmp.gt.f32.partialorder %v4187_v32, 0.5 }
 0x347   : > { %v1948_v5 = vrot.slane %v1947_v8, 1  ;;  %v2260_v45 = vrot.slane %v2259_v35, 4  ;;  %v1791_v44 = vmax.f32 %v1789_v30, %v1790_v28  ;;  %3231 = vpow2.f32 %v1636_v55 }
 0x348   : > { %v2104_v29 = vrot.slane %v2103_v16, 2  ;;  %3233 = vpow2.f32 %v1638_v27 }
 0x349   : > { %v1949_v22 = vmax.f32 %v1947_v8, %v1948_v5  ;;  %v2261_v6 = vmax.f32 %v2259_v35, %v2260_v45  ;;  %v1792_v11 = vsub.f32 %v4117_v24, %v1791_v44 }
 0x34a   : > { %v2105_v53 = vmax.f32 %v2103_v16, %v2104_v29  ;;  %v2410_v4 = vpop.xlane.xlu0 %2409  ;;  %v2407_v60 = vpop.xlane.xlu1 %2406 }
 0x34b   : > { %v1950_v3 = vsub.f32 %v4137_v12, %v1949_v22  ;;  %v1951_v15 = vsub.f32 %v4131_v23, %v1949_v22  ;;  %v4196_v12 = vsel %vm2412_vm3, %v2410_v4, -1e+30  ;;  %v1793_v23 = vsub.f32 %v4111_v38, %v1791_v44  ;;  %v3228_v1 = vpop.eup %3227 }
 0x34c   : > { %v2106_v43 = vrot.slane %v2105_v53, 1  ;;  %v2262_v8 = vrot.slane %v2261_v6, 2  ;;  %v4201_v16 = vsel %vm2411_vm4, %v2407_v60, -1e+30  ;;  %v3230_v24 = vpop.eup %3229  ;;  %v2416_v35 = vsel %vm1464_vm7, %v4196_v12, -inf }
 0x34d   : > { %v1952_v17 = vmul.f32 1.442695, %v1950_v3  ;;  %v1954_v36 = vmul.f32 1.442695, %v1951_v15  ;;  %v2415_v5 = vsel %vm1464_vm7, %v4201_v16, -inf  ;;  %v4211_v27 = vsel %vm1460_vm6, %v3228_v1, 0.0 }
 0x34e   : > { %v2107_v30 = vmax.f32 %v2105_v53, %v2106_v43  ;;  %v1794_v29 = vmul.f32 1.442695, %v1792_v11  ;;  %v1796_v45 = vmul.f32 1.442695, %v1793_v23  ;;  %v2263_v22 = vmax.f32 %v2261_v6, %v2262_v8 }
 0x34f   : > { %3235 = vpow2.f32 %v1952_v17  ;;  %v1482_v3 = vsel %vm1464_vm7, %v4211_v27, 0.0 }
 0x350   : > { %3237 = vpow2.f32 %v1954_v36  ;;  %v2108_v37 = vsub.f32 %v4158_v14, %v2107_v30  ;;  %v2109_v28 = vsub.f32 %v4154_v31, %v2107_v30  ;;  %v4215_v14 = vsel %vm1461_vm0, %v3230_v24, 0.0 }
 0x351   : > { %v2417_v31 = vmax.f32 %v2415_v5, %v2416_v35  ;;  %v3232_v53 = vpop.eup %3231  ;;  %v1483_v15 = vsel %vm1464_vm7, %v4215_v14, 0.0  ;;  %v2264_v6 = vrot.slane %v2263_v22, 1 }
 0x352   : > { %v2110_v38 = vmul.f32 1.442695, %v2108_v37  ;;  %v2112_v55 = vmul.f32 1.442695, %v2109_v28  ;;  %v3234_v0 = vpop.eup %3233  ;;  %v1484_v60 = vadd.f32 %v1483_v15, %v1482_v3  ;;  %v4231_v30 = vsel %vm1621_vm9, %v3232_v53, 0.0 }
 0x353   : > { %v2418_v44 = vrot.slane %v2417_v31, 4  ;;  %v2265_v11 = vmax.f32 %v2263_v22, %v2264_v6  ;;  %v4235_v8 = vsel %vm1622_vm8, %v3234_v0, 0.0  ;;  %v1642_v9 = vsel %vm1464_vm7, %v4231_v30, 0.0 }
 0x354   : > { %3239 = vpow2.f32 %v2110_v38  ;;  %v1485_v37 = vrot.slane %v1484_v60, 4  ;;  %v1643_v62 = vsel %vm1464_vm7, %v4235_v8, 0.0 }
 0x355   : > { %3241 = vpow2.f32 %v2112_v55  ;;  %v2419_v43 = vmax.f32 %v2417_v31, %v2418_v44  ;;  %v2266_v35 = vsub.f32 %v4173_v46, %v2265_v11  ;;  %v1644_v53 = vadd.f32 %v1643_v62, %v1642_v9 }
 0x356   : > { %3243 = vpow2.f32 %v1794_v29  ;;  %v2267_v29 = vsub.f32 %v4167_v19, %v2265_v11  ;;  %v1486_v31 = vadd.f32 %v1485_v37, %v1484_v60 }
 0x357   : > { %3245 = vpow2.f32 %v1796_v45  ;;  %v2420_v23 = vrot.slane %v2419_v43, 2  ;;  %v2268_v3 = vmul.f32 1.442695, %v2266_v35  ;;  %v1645_v11 = vrot.slane %v1644_v53, 4  ;;  %v4277_v35 = vld [vmem:[%s4053_s20 + $0x78] sm:$0xff] }
 0x358   : > { %v2270_v15 = vmul.f32 1.442695, %v2267_v29  ;;  %v1487_v60 = vrot.slane %v1486_v31, 2  ;;  %v4280_v29 = vld [vmem:[%s4053_s20 + $0x70] sm:$0xff]  ;;  %vm2570_vm5 = vcmp.gt.f32.partialorder %v4277_v35, 0.5 }
 0x359   : > { %v3236_v4 = vpop.eup %3235  ;;  %v2421_v28 = vmax.f32 %v2419_v43, %v2420_v23  ;;  %3247 = vpow2.f32 %v2268_v3  ;;  %vm2569_vm6 = vcmp.gt.f32.partialorder %v4280_v29, 0.5 }
 0x35a   : > { %v3238_v33 = vpop.eup %3237  ;;  %v4223_v17 = vsel %vm1937_vm13, %v3236_v4, 0.0  ;;  %3249 = vpow2.f32 %v2270_v15  ;;  %v4288_v15 = vsel %vm2570_vm5, %v4178_v47, -1e+30 }
 0x35b   : > { %v4227_v36 = vsel %vm1938_vm12, %v3238_v33, 0.0  ;;  %v1958_v54 = vsel %vm1464_vm7, %v4223_v17, 0.0  ;;  %v2422_v44 = vrot.slane %v2421_v28, 1 }
 0x35c   : > { %v1959_v39 = vsel %vm1464_vm7, %v4227_v36, 0.0 }
 0x35d   : > { %v1960_v55 = vadd.f32 %v1959_v39, %v1958_v54  ;;  %v2423_v6 = vmax.f32 %v2421_v28, %v2422_v44  ;;  %v4738_v28 = vlaneseq }
 0x35e   : > { %v3240_v1 = vpop.eup %3239 }
 0x35f   : > { %v3242_v24 = vpop.eup %3241  ;;  %v4248_v5 = vsel %vm2095_vm15, %v3240_v1, 0.0  ;;  %v1961_v0 = vrot.slane %v1960_v55, 4  ;;  %v2424_v43 = vsub.f32 %v4201_v16, %v2423_v6  ;;  %v2425_v33 = vsub.f32 %v4196_v12, %v2423_v6 }
 0x360   : > { %v4252_v38 = vsel %vm2096_vm14, %v3242_v24, 0.0  ;;  %v3244_v45 = vpop.eup %3243  ;;  %v2116_v46 = vsel %vm1464_vm7, %v4248_v5, 0.0  ;;  %v1646_v16 = vadd.f32 %v1645_v11, %v1644_v53  ;;  %v1488_v12 = vadd.f32 %v1487_v60, %v1486_v31 }
 0x361   : > { %v3246_v22 = vpop.eup %3245  ;;  %v2117_v52 = vsel %vm1464_vm7, %v4252_v38, 0.0  ;;  %v4261_v18 = vsel %vm1779_vm11, %v3244_v45, 0.0  ;;  %v2426_v2 = vmul.f32 1.442695, %v2424_v43  ;;  %v2428_v1 = vmul.f32 1.442695, %v2425_v33 }
 0x362   : > { %v4265_v19 = vsel %vm1780_vm10, %v3246_v22, 0.0  ;;  %v2118_v4 = vadd.f32 %v2117_v52, %v2116_v46  ;;  %v1800_v63 = vsel %vm1464_vm7, %v4261_v18, 0.0  ;;  %v1962_v37 = vadd.f32 %v1961_v0, %v1960_v55 }
 0x363   : > { %v1801_v23 = vsel %vm1464_vm7, %v4265_v19, 0.0  ;;  %3251 = vpow2.f32 %v2426_v2  ;;  %v4274_v24 = vand.u32 127, %v4738_v28  ;;  %v1647_v45 = vrot.slane %v1646_v16, 2  ;;  %v3248_v55 = vpop.eup %3247 }
 0x364   : > { %v2119_v54 = vrot.slane %v2118_v4, 4  ;;  %v1802_v39 = vadd.f32 %v1801_v23, %v1800_v63  ;;  %3253 = vpow2.f32 %v2428_v1  ;;  %v1963_v9 = vrot.slane %v1962_v37, 2  ;;  %v3250_v31 = vpop.eup %3249 }
 0x365   : > { %v1489_v44 = vrot.slane %v1488_v12, 1  ;;  %vm1247_vm0 = vcmp.lt.s32.totalorder %v4274_v24, 8  ;;  %v1648_v52 = vadd.f32 %v1647_v45, %v1646_v16  ;;  %v4293_v43 = vsel %vm2569_vm6, %v4181_v34, -1e+30 }
 0x366   : > { %v2120_v62 = vadd.f32 %v2119_v54, %v2118_v4  ;;  %v1803_v22 = vrot.slane %v1802_v39, 4  ;;  %v1964_v53 = vadd.f32 %v1963_v9, %v1962_v37  ;;  %v4301_v23 = vsel %vm2253_vm2, %v3248_v55, 0.0 }
 0x367   : > { %v1490_v4 = vadd.f32 %v1489_v44, %v1488_v12  ;;  %v4305_v47 = vsel %vm2254_vm1, %v3250_v31, 0.0  ;;  %v1649_v16 = vrot.slane %v1648_v52, 1  ;;  %v2274_v42 = vsel %vm1464_vm7, %v4301_v23, 0.0 }
 0x368   : > { %v2121_v46 = vrot.slane %v2120_v62, 2  ;;  %v1804_v3 = vadd.f32 %v1803_v22, %v1802_v39  ;;  %v1965_v63 = vrot.slane %v1964_v53, 1  ;;  %v2275_v12 = vsel %vm1464_vm7, %v4305_v47, 0.0 }
 0x369   : > { %v2574_v45 = vsel %vm1464_vm7, %v4288_v15, -inf  ;;  %v2573_v22 = vsel %vm1464_vm7, %v4293_v43, -inf  ;;  %vm2715_vm15 = vcmask 1040384   ;;  %vm2717_vm2 = vcmask 1041408  }
 0x36a   : > { %v2122_v1 = vadd.f32 %v2121_v46, %v2120_v62  ;;  %v1805_v32 = vrot.slane %v1804_v3, 2  ;;  %v1491_v62 = vmax.f32 %v1490_v4, 1e-08  ;;  %v1966_v44 = vadd.f32 %v1965_v63, %v1964_v53 }
 0x36b   : > { %v2575_v4 = vmax.f32 %v2573_v22, %v2574_v45 }
 0x36c   : > { %v2123_v55 = vrot.slane %v2122_v1, 1  ;;  %3255 = vrcp.f32 %v1491_v62  ;;  %v1967_v63 = vmax.f32 %v1966_v44, 1e-08 }
 0x36d   : > { %v3252_v0 = vpop.eup %3251 }
 0x36e   : > { %v3254_v11 = vpop.eup %3253  ;;  %v4309_v2 = vsel %vm2411_vm4, %v3252_v0, 0.0  ;;  %v1806_v0 = vadd.f32 %v1805_v32, %v1804_v3  ;;  %3257 = vrcp.f32 %v1967_v63 }
 0x36f   : > { %v4314_v37 = vsel %vm2412_vm3, %v3254_v11, 0.0  ;;  %v2432_v61 = vsel %vm1464_vm7, %v4309_v2, 0.0  ;;  %vm2719_vm3 = vcmask 1042432  }
 0x370   : > { %v2433_v39 = vsel %vm1464_vm7, %v4314_v37, 0.0  ;;  %v1807_v32 = vrot.slane %v1806_v0, 1 }
 0x371   : > { %v2434_v28 = vadd.f32 %v2433_v39, %v2432_v61 }
 0x372   : > { %v3008_v6 = vpop.f32.mrb[20].mxu0 }
 0x373   : > { %v1182_v33 = vpop.f32.mrb[21].mxu0  ;;  %v4297_v60 = vsel %vm1247_vm0, %v3008_v6, -1e+30  ;;  %v2435_v31 = vrot.slane %v2434_v28, 4  ;;  %v1650_v6 = vadd.f32 %v1649_v16, %v1648_v52 }
 0x374   : > { %4739 = vst [vmem:[#allocation7_spill] sm:$0xff] %v4297_v60  ;;  %v3009_v34 = vpop.f32.mrb[22].mxu0  ;;  %1268 = vmax.xlane.f32.xlu1 %v4297_v60  ;;  %v4331_v9 = vsel %vm1247_vm0, %v1182_v33, -1e+30  ;;  %v2276_v33 = vadd.f32 %v2275_v12, %v2274_v42  ;;  %v2576_v12 = vrot.slane %v2575_v4, 4 }
 0x375   : > { %v1185_v54 = vpop.f32.mrb[23].mxu0  ;;  %v4320_v40 = vsel %vm1247_vm0, %v3009_v34, -1e+30  ;;  %4740 = vst [vmem:[#allocation8_spill] sm:$0xff] %v4331_v9  ;;  %v2436_v34 = vadd.f32 %v2435_v31, %v2434_v28  ;;  %v1651_v16 = vmax.f32 %v1650_v6, 1e-08 }
 0x376   : > { %1270 = vmax.xlane.f32.xlu0 %v4320_v40  ;;  %v4340_v46 = vsel %vm1247_vm0, %v1185_v54, -1e+30  ;;  %v2124_v54 = vadd.f32 %v2123_v55, %v2122_v1  ;;  %v2277_v42 = vrot.slane %v2276_v33, 4  ;;  %v1808_v1 = vadd.f32 %v1807_v32, %v1806_v0  ;;  %v3256_v63 = vpop.eup %3255 }
 0x377   : > { %v2437_v52 = vrot.slane %v2436_v34, 2  ;;  %3259 = vrcp.f32 %v1651_v16  ;;  %v2577_v31 = vmax.f32 %v2575_v4, %v2576_v12 }
 0x378   : > { %1264 = vmax.xlane.f32.xlu1 %v4331_v9  ;;  %v2125_v22 = vmax.f32 %v2124_v54, 1e-08  ;;  %v2278_v44 = vadd.f32 %v2277_v42, %v2276_v33  ;;  %v4365_v54 = vstv %s378_s6  ;;  %v3258_v32 = vpop.eup %3257 }
 0x379   : > { %v2438_v28 = vadd.f32 %v2437_v52, %v2436_v34  ;;  %v1809_v52 = vmax.f32 %v1808_v1, 1e-08  ;;  %v2578_v16 = vrot.slane %v2577_v31, 2  ;;  %v1494_v0 = vmul.f32 %v3256_v63, %v4365_v54 }
 0x37a   : > { %v3012_v11 = vpop.f32.mrb[24].mxu0  ;;  %1266 = vmax.xlane.f32.xlu0 %v4340_v46  ;;  %3261 = vrcp.f32 %v2125_v22  ;;  %v2279_v26 = vrot.slane %v2278_v44, 2  ;;  %v1969_v1 = vmul.f32 %v3258_v32, %v4365_v54 }
 0x37b   : > { %v1198_v61 = vpop.f32.mrb[25].mxu0  ;;  %v4345_v39 = vsel %vm1247_vm0, %v3012_v11, -1e+30  ;;  %v2439_v62 = vrot.slane %v2438_v28, 1  ;;  %v2579_v42 = vmax.f32 %v2577_v31, %v2578_v16 }
 0x37c   : > { %v4347_v53 = vpop.f32.mrb[26].mxu0  ;;  %1276 = vmax.xlane.f32.xlu1 %v4345_v39  ;;  %v4354_v45 = vsel %vm1247_vm0, %v1198_v61, -1e+30  ;;  %v2280_v33 = vadd.f32 %v2279_v26, %v2278_v44  ;;  %v1971_v48 = vmul.f32 %v1969_v1, %v4227_v36 }
 0x37d   : > { %v4350_v3 = vpop.f32.mrb[27].mxu0  ;;  %4741 = vst [vmem:[#allocation9_spill] sm:$0xff] %v4354_v45  ;;  %v2440_v6 = vadd.f32 %v2439_v62, %v2438_v28  ;;  %v2580_v44 = vrot.slane %v2579_v42, 1 }
 0x37e   : > { %v4414_v35 = vsel %vm1247_vm0, %v4350_v3, -1e+30 }
 0x37f   : > { %v2441_v34 = vmax.f32 %v2440_v6, 1e-08  ;;  %v2281_v6 = vrot.slane %v2280_v33, 1  ;;  %v2581_v60 = vmax.f32 %v2579_v42, %v2580_v44 }
 0x380   : > { %1272 = vmax.xlane.f32.xlu1 %v4354_v45 }
 0x381   : > { %3263 = vrcp.f32 %v2441_v34  ;;  %v3260_v28 = vpop.eup %3259  ;;  %v1496_v34 = vmul.f32 %v1494_v0, %v4215_v14  ;;  %v2282_v16 = vadd.f32 %v2281_v6, %v2280_v33  ;;  %v2583_v36 = vsub.f32 %v4288_v15, %v2581_v60 }
 0x382   : > { %v4357_v55 = vpop.f32.mrb[28].mxu0  ;;  %3265 = vrcp.f32 %v1809_v52  ;;  %v1495_v52 = vmul.f32 %v1494_v0, %v4211_v27  ;;  %v1653_v26 = vmul.f32 %v3260_v28, %v4365_v54 }
 0x383   : > { %v4359_v11 = vpop.f32.mrb[29].mxu0  ;;  %v2283_v27 = vmax.f32 %v2282_v16, 1e-08  ;;  %v2586_v42 = vmul.f32 1.442695, %v2583_v36 }
 0x384   : > { %v4361_v20 = vpop.f32.mrb[30].mxu0  ;;  %v3262_v45 = vpop.eup %3261  ;;  %v1654_v32 = vmul.f32 %v1653_v26, %v4231_v30  ;;  %v1655_v33 = vmul.f32 %v1653_v26, %v4235_v8  ;;  %v4408_v26 = vsel %vm1247_vm0, %v4347_v53, -1e+30  ;;  %v4421_v53 = vsel %vm1247_vm0, %v4357_v55, -1e+30 }
 0x385   : > { %v4363_v61 = vpop.f32.mrb[31].mxu0  ;;  %v2127_v63 = vmul.f32 %v3262_v45, %v4365_v54  ;;  %v2582_v45 = vsub.f32 %v4293_v43, %v2581_v60  ;;  %3267 = vrcp.f32 %v2283_v27 }
 0x387   : > { %v2129_v0 = vmul.f32 %v2127_v63, %v4252_v38  ;;  %v1970_v38 = vmul.f32 %v1969_v1, %v4223_v17  ;;  %v2128_v8 = vmul.f32 %v2127_v63, %v4248_v5 }
 0x38a   : > { %v4368_v4 = vpop.f32.mrb[32].mxu0 }
 0x38b   : > { %v4370_v12 = vpop.f32.mrb[33].mxu0  ;;  %v3264_v31 = vpop.eup %3263 }
 0x38c   : > { %v4372_v22 = vpop.f32.mrb[34].mxu0  ;;  %v2443_v9 = vmul.f32 %v3264_v31, %v4365_v54  ;;  %v3266_v14 = vpop.eup %3265 }
 0x38d   : > { %v4374_v62 = vpop.f32.mrb[35].mxu0  ;;  %v1811_v28 = vmul.f32 %v3266_v14, %v4365_v54  ;;  %v4440_v55 = vsel %vm1247_vm0, %v4372_v22, -1e+30  ;;  %v4460_v22 = vsel %vm1247_vm0, %v4359_v11, -1e+30 }
 0x38e   : > { %v4385_v41 = vmul.f32 %v2443_v9, %v4309_v2  ;;  %v2584_v2 = vmul.f32 1.442695, %v2582_v45 }
 0x38f   : > { %v1812_v30 = vmul.f32 %v1811_v28, %v4261_v18  ;;  %v3268_v43 = vpop.eup %3267 }
 0x390   : > { %1504 = vperm.xlu0 %3082, %v1496_v34   ;;  %3269 = vpow2.f32 %v2584_v2  ;;  %v2285_v15 = vmul.f32 %v3268_v43, %v4365_v54 }
 0x391   : > { %1499 = vperm.xlu1 %3081, %v1495_v52   ;;  %3271 = vpow2.f32 %v2586_v42 }
 0x392   : > { %v2286_v18 = vmul.f32 %v2285_v15, %v4301_v23  ;;  %v2287_v17 = vmul.f32 %v2285_v15, %v4305_v47 }
 0x394   : > { %1979 = vperm.xlu0 %3082, %v1971_v48   ;;  %v1813_v48 = vmul.f32 %v1811_v28, %v4265_v19 }
 0x395   : > { %1658 = vperm.xlu1 %3081, %v1654_v32   ;;  %v2445_v32 = vmul.f32 %v2443_v9, %v4314_v37  ;;  %v4428_v37 = vsel %vm1247_vm0, %v4361_v20, -1e+30  ;;  %v4434_v9 = vsel %vm1247_vm0, %v4363_v61, -1e+30  ;;  %v4446_v20 = vsel %vm1247_vm0, %v4374_v62, -1e+30 }
 0x398   : > { %2137 = vperm.xlu0 %3082, %v2129_v0  }
 0x399   : > { %1663 = vperm.xlu1 %3081, %v1655_v33  }
 0x39a   : > { %v3270_v60 = vpop.eup %3269 }
 0x39b   : > { %v3272_v6 = vpop.eup %3271  ;;  %v2588_v34 = vsel %vm2569_vm6, %v3270_v60, 0.0 }
 0x39c   : > { %v2589_v19 = vsel %vm2570_vm5, %v3272_v6, 0.0  ;;  %v2590_v1 = vsel %vm1464_vm7, %v2588_v34, 0.0 }
 0x39d   : > { %1816 = vperm.xlu1 %3081, %v1812_v30   ;;  %v2591_v5 = vsel %vm1464_vm7, %v2589_v19, 0.0  ;;  %vm1526_vm7 = vcmask 130048  }
 0x39e   : > { %v2592_v52 = vadd.f32 %v2591_v5, %v2590_v1 }
 0x3a0   : > { %v2593_v23 = vrot.slane %v2592_v52, 4 }
 0x3a1   : > { %1821 = vperm.xlu1 %3081, %v1813_v48  }
 0x3a2   : > { %v2594_v29 = vadd.f32 %v2593_v23, %v2592_v52 }
 0x3a4   : > { %v2595_v47 = vrot.slane %v2594_v29, 2 }
 0x3a5   : > { %1974 = vperm.xlu1 %3081, %v1970_v38  }
 0x3a6   : > { %v2596_v44 = vadd.f32 %v2595_v47, %v2594_v29 }
 0x3a8   : > { %v2597_v31 = vrot.slane %v2596_v44, 1 }
 0x3a9   : > { %2132 = vperm.xlu1 %3081, %v2128_v8  }
 0x3aa   : > { %v2598_v63 = vadd.f32 %v2597_v31, %v2596_v44 }
 0x3ac   : > { %v2599_v16 = vmax.f32 %v2598_v63, 1e-08 }
 0x3ad   : > { %2290 = vperm.xlu1 %3081, %v2286_v18  }
 0x3ae   : > { %3273 = vrcp.f32 %v2599_v16 }
 0x3b1   : > { %2295 = vperm.xlu1 %3081, %v2287_v17  }
 0x3b7   : > { %1278 = vmax.xlane.f32.xlu0 %v4408_v26 }
 0x3b8   : > { %v3274_v3 = vpop.eup %3273 }
 0x3b9   : > { %v2601_v14 = vmul.f32 %v3274_v3, %v4365_v54 }
 0x3bb   : > { %1274 = vmax.xlane.f32.xlu0 %v4414_v35  ;;  %v2602_v27 = vmul.f32 %v2601_v14, %v2588_v34  ;;  %v2603_v0 = vmul.f32 %v2601_v14, %v2589_v19 }
 0x3d1   : > { %2453 = vperm.xlu0 %3082, %v2445_v32  }
 0x3d5   : > { %1284 = vmax.xlane.f32.xlu1 %v4421_v53 }
 0x3e6   : > { %2606 = vperm.xlu1 %3081, %v2602_v27  }
 0x3ea   : > { %2611 = vperm.xlu1 %3081, %v2603_v0  }
 0x3f0   : > { %1286 = vmax.xlane.f32.xlu0 %v4428_v37 }
 0x3f4   : > { %1282 = vmax.xlane.f32.xlu0 %v4434_v9 }
 0x3f8   : > { %1294 = vmax.xlane.f32.xlu0 %v4440_v55 }
 0x3fc   : > { %1290 = vmax.xlane.f32.xlu0 %v4446_v20 }
 0x401   : > { %v4449_v54 = vpop.xlane.xlu1 %1268 }
 0x403   : > { %v1271_v33 = vpop.xlane.xlu0 %1270 }
 0x404   : > { %v1299_v60 = vsub.f32 %v4320_v40, %v1271_v33 }
 0x405   : > { %v4451_v61 = vpop.xlane.xlu1 %1264 }
 0x406   : > { %v1318_v17 = vmul.f32 1.442695, %v1299_v60 }
 0x407   : > { %v1267_v30 = vpop.xlane.xlu0 %1266 }
 0x408   : > { %v1297_v1 = vsub.f32 %v4340_v46, %v1267_v30  ;;  %3275 = vpow2.f32 %v1318_v17 }
 0x409   : > { %v4453_v28 = vpop.xlane.xlu1 %1276 }
 0x40a   : > { %v1314_v40 = vmul.f32 1.442695, %v1297_v1  ;;  %v1302_v0 = vsub.f32 %v4345_v39, %v4453_v28  ;;  %v4744_v39 = vld [vmem:[#allocation4_spill] sm:$0xff] }
 0x40c   : > { %3277 = vpow2.f32 %v1314_v40 }
 0x40d   : > { %v4455_v45 = vpop.xlane.xlu1 %1272 }
 0x40e   : > { %1280 = vmax.xlane.f32.xlu1 %v4460_v22 }
 0x40f   : > { %v1505_v42 = vpop.permute.xlu0 %1504 }
 0x410   : > { %v1508_v28 = vmul.f32 %v1505_v42, %v4744_v39 }
 0x411   : > { %v1500_v62 = vpop.permute.xlu1 %1499 }
 0x412   : > { %v3276_v29 = vpop.eup %3275 }
 0x413   : > { %v1980_v38 = vpop.permute.xlu0 %1979 }
 0x415   : > { %v1659_v36 = vpop.permute.xlu1 %1658 }
 0x416   : > { %v1666_v18 = vmul.f32 %v1659_v36, %v3931_v49  ;;  %v3278_v47 = vpop.eup %3277 }
 0x417   : > { %v2138_v19 = vpop.permute.xlu0 %2137  ;;  %v4499_v44 = vsel %vm1247_vm0, %v3278_v47, 0.0 }
 0x419   : > { %v1664_v2 = vpop.permute.xlu1 %1663 }
 0x41a   : > { %v1667_v11 = vmul.f32 %v1664_v2, %v3893_v13  ;;  %v4742_v2 = vld [vmem:[#allocation3_spill] sm:$0xff] }
 0x41d   : > { %v1817_v48 = vpop.permute.xlu1 %1816 }
 0x41e   : > { %v4465_v8 = vmul.f32 %v1817_v48, %v3897_v58  ;;  %v1507_v48 = vmul.f32 %v1500_v62, %v4742_v2 }
 0x41f   : > { %2448 = vperm.xlu1 %3081, %v4385_v41   ;;  %v1668_v41 = vpack.c.bf16 %v1667_v11, %v1666_v18  ;;  %v4745_v11 = vld [vmem:[#allocation8_spill] sm:$0xff]  ;;  %v4746_v18 = vld [vmem:[#allocation9_spill] sm:$0xff] }
 0x421   : > { %v1822_v43 = vpop.permute.xlu1 %1821 }
 0x422   : > { %v4468_v15 = vmul.f32 %v1822_v43, %v3906_v59  ;;  %v4477_v59 = vmul.f32 %v2138_v19, %v3965_v10  ;;  %v1509_v43 = vpack.c.bf16 %v1508_v28, %v1507_v48  ;;  %v4748_v48 = vld [vmem:[#allocation5_spill] sm:$0xff] }
 0x424   : > { %v1826_v6 = vpack.c.bf16 %v4468_v15, %v4465_v8 }
 0x425   : > { %v1975_v34 = vpop.permute.xlu1 %1974 }
 0x426   : > { %v1982_v32 = vmul.f32 %v1975_v34, %v3953_v21  ;;  %v1300_v34 = vsub.f32 %v4746_v18, %v4455_v45 }
 0x428   : > { %v1320_v62 = vmul.f32 1.442695, %v1300_v34 }
 0x429   : > { %1669 = vxpose.xlu0.c.b16.start.end [1/1] (short) (narrow) %v1668_v41, 32  ;;  %v2133_v58 = vpop.permute.xlu1 %2132 }
 0x42a   : > { %v4480_v13 = vmul.f32 %v2133_v58, %v3963_v7  ;;  %v4494_v7 = vsel %vm1247_vm0, %v3276_v29, 0.0 }
 0x42c   : > { %v2142_v5 = vpack.c.bf16 %v4477_v59, %v4480_v13 }
 0x42d   : > { %v2291_v49 = vpop.permute.xlu1 %2290 }
 0x42e   : > { %v4485_v23 = vmul.f32 %v2291_v49, %v3996_v51  ;;  %v4505_v51 = vsel %vm1247_vm0, %v4368_v4, -1e+30  ;;  %v1983_v4 = vmul.f32 %v1980_v38, %v3955_v50  ;;  %v4743_v50 = vld [vmem:[#allocation7_spill] sm:$0xff] }
 0x42f   : > { %v1298_v38 = vsub.f32 %v4743_v50, %v4449_v54 }
 0x430   : > { %v1984_v27 = vpack.c.bf16 %v1983_v4, %v1982_v32 }
 0x431   : > { %v2296_v52 = vpop.permute.xlu1 %2295 }
 0x432   : > { %v4488_v46 = vmul.f32 %v2296_v52, %v3998_v25  ;;  %v4511_v25 = vsel %vm1247_vm0, %v4370_v12, -1e+30 }
 0x434   : > { %v2300_v10 = vpack.c.bf16 %v4488_v46, %v4485_v23 }
 0x43a   : > { %1366 = vadd.xlane.f32.xlu0 %v4494_v7 }
 0x43e   : > { %1362 = vadd.xlane.f32.xlu0 %v4499_v44 }
 0x443   : > { %1292 = vmax.xlane.f32.xlu1 %v4505_v51 }
 0x444   : > { %v1279_v31 = vpop.xlane.xlu0 %1278 }
 0x445   : > { %v1303_v41 = vsub.f32 %v4408_v26, %v1279_v31 }
 0x447   : > { %1288 = vmax.xlane.f32.xlu1 %v4511_v25 }
 0x448   : > { %v1275_v16 = vpop.xlane.xlu0 %1274 }
 0x449   : > { %v1301_v3 = vsub.f32 %v4414_v35, %v1275_v16  ;;  %v1324_v35 = vmul.f32 1.442695, %v1302_v0 }
 0x44b   : > { %v1322_v33 = vmul.f32 1.442695, %v1301_v3 }
 0x44d   : > { %3279 = vpow2.f32 %v1322_v33 }
 0x44e   : > { %3281 = vpow2.f32 %v1324_v35  ;;  %v4747_v35 = vld [vmem:[#allocation6_spill] sm:$0xff] }
 0x450   : > { %v2454_v29 = vpop.permute.xlu0 %2453 }
 0x451   : > { %v4572_v2 = vmul.f32 %v2454_v29, %v4747_v35 }
 0x457   : > { %v3280_v19 = vpop.eup %3279 }
 0x458   : > { %v4540_v54 = vsel %vm1247_vm0, %v3280_v19, 0.0  ;;  %v3282_v42 = vpop.eup %3281 }
 0x459   : > { %v4545_v17 = vsel %vm1247_vm0, %v3282_v42, 0.0 }
 0x462   : > { %v4514_v63 = vpop.xlane.xlu1 %1284 }
 0x466   : > { %v2607_v14 = vpop.permute.xlu1 %2606 }
 0x467   : > { %v4522_v36 = vmul.f32 %v2607_v14, %v4027_v57  ;;  %v1316_v57 = vmul.f32 1.442695, %v1298_v38 }
 0x469   : > { %3283 = vpow2.f32 %v1316_v57 }
 0x46a   : > { %v2612_v12 = vpop.permute.xlu1 %2611 }
 0x46b   : > { %v4525_v30 = vmul.f32 %v2612_v12, %v4022_v56  ;;  %1985 = vxpose.xlu0.c.b16.start.end [1/1] (short) (narrow) %v1984_v27, 32  ;;  %v1296_v56 = vsub.f32 %v4745_v11, %v4451_v61  ;;  %v1326_v61 = vmul.f32 1.442695, %v1303_v41 }
 0x46d   : > { %v2616_v21 = vpack.c.bf16 %v4525_v30, %v4522_v36  ;;  %v1312_v60 = vmul.f32 1.442695, %v1296_v56 }
 0x46f   : > { %3285 = vpow2.f32 %v1312_v60 }
 0x470   : > { %3287 = vpow2.f32 %v1320_v62  ;;  %v1306_v62 = vsub.f32 %v4421_v53, %v4514_v63 }
 0x471   : > { %3289 = vpow2.f32 %v1326_v61 }
 0x472   : > { %v1332_v42 = vmul.f32 1.442695, %v1306_v62 }
 0x473   : > { %v3284_v45 = vpop.eup %3283 }
 0x474   : > { %1510 = vxpose.xlu1.c.b16.start.end [1/1] (short) (narrow) %v1509_v43, 32  ;;  %v4550_v26 = vsel %vm1247_vm0, %v3284_v45, 0.0 }
 0x479   : > { %v3286_v1 = vpop.eup %3285 }
 0x47a   : > { %v4555_v58 = vsel %vm1247_vm0, %v3286_v1, 0.0  ;;  %v3288_v40 = vpop.eup %3287 }
 0x47b   : > { %v4560_v49 = vsel %vm1247_vm0, %v3288_v40, 0.0  ;;  %v3290_v52 = vpop.eup %3289 }
 0x47c   : > { %1370 = vadd.xlane.f32.xlu0 %v4540_v54  ;;  %v4565_v47 = vsel %vm1247_vm0, %v3290_v52, 0.0 }
 0x47d   : > { %v1287_v31 = vpop.xlane.xlu0 %1286 }
 0x47e   : > { %v1307_v32 = vsub.f32 %v4428_v37, %v1287_v31 }
 0x480   : > { %1372 = vadd.xlane.f32.xlu0 %v4545_v17  ;;  %v1334_v27 = vmul.f32 1.442695, %v1307_v32 }
 0x481   : > { %v1283_v16 = vpop.xlane.xlu0 %1282 }
 0x482   : > { %v1305_v0 = vsub.f32 %v4434_v9, %v1283_v16 }
 0x484   : > { %v1330_v38 = vmul.f32 1.442695, %v1305_v0 }
 0x485   : > { %1364 = vadd.xlane.f32.xlu1 %v4550_v26  ;;  %v1295_v4 = vpop.xlane.xlu0 %1294 }
 0x486   : > { %v1311_v37 = vsub.f32 %v4440_v55, %v1295_v4 }
 0x488   : > { %v1342_v28 = vmul.f32 1.442695, %v1311_v37 }
 0x489   : > { %1360 = vadd.xlane.f32.xlu1 %v4555_v58  ;;  %v1291_v39 = vpop.xlane.xlu0 %1290 }
 0x48a   : > { %v1309_v9 = vsub.f32 %v4446_v20, %v1291_v39 }
 0x48c   : > { %v1338_v57 = vmul.f32 1.442695, %v1309_v9 }
 0x48d   : > { %1368 = vadd.xlane.f32.xlu1 %v4560_v49 }
 0x491   : > { %1374 = vadd.xlane.f32.xlu1 %v4565_v47 }
 0x49b   : > { %v1281_v3 = vpop.xlane.xlu1 %1280 }
 0x49c   : > { %v1304_v14 = vsub.f32 %v4460_v22, %v1281_v3 }
 0x49e   : > { %v1328_v33 = vmul.f32 1.442695, %v1304_v14 }
 0x49f   : > { %v2449_v12 = vpop.permute.xlu1 %2448 }
 0x4a0   : > { %3291 = vpow2.f32 %v1328_v33  ;;  %v4575_v50 = vmul.f32 %v2449_v12, %v4748_v48 }
 0x4a1   : > { %3293 = vpow2.f32 %v1334_v27 }
 0x4a2   : > { %v2458_v22 = vpack.c.bf16 %v4572_v2, %v4575_v50  ;;  %3295 = vpow2.f32 %v1330_v38 }
 0x4a3   : > { %3297 = vpow2.f32 %v1342_v28 }
 0x4a4   : > { %3299 = vpow2.f32 %v1338_v57 }
 0x4a5   : > { %3301 = vpow2.f32 %v1332_v42 }
 0x4aa   : > { %v3292_v43 = vpop.eup %3291 }
 0x4ab   : > { %v4583_v11 = vsel %vm1247_vm0, %v3292_v43, 0.0  ;;  %v3294_v56 = vpop.eup %3293 }
 0x4ac   : > { %1376 = vadd.xlane.f32.xlu0 %v4583_v11  ;;  %v4588_v55 = vsel %vm1247_vm0, %v3294_v56, 0.0  ;;  %v3296_v60 = vpop.eup %3295 }
 0x4ad   : > { %v4593_v20 = vsel %vm1247_vm0, %v3296_v60, 0.0  ;;  %v3298_v18 = vpop.eup %3297 }
 0x4ae   : > { %v4598_v34 = vsel %vm1247_vm0, %v3298_v18, 0.0  ;;  %v3300_v19 = vpop.eup %3299 }
 0x4af   : > { %v4605_v41 = vsel %vm1247_vm0, %v3300_v19, 0.0  ;;  %v3302_v61 = vpop.eup %3301 }
 0x4b0   : > { %1382 = vadd.xlane.f32.xlu0 %v4588_v55  ;;  %v4613_v45 = vsel %vm1247_vm0, %v3302_v61, 0.0 }
 0x4b4   : > { %1378 = vadd.xlane.f32.xlu0 %v4593_v20 }
 0x4b8   : > { %1390 = vadd.xlane.f32.xlu0 %v4598_v34 }
 0x4bc   : > { %1386 = vadd.xlane.f32.xlu0 %v4605_v41 }
 0x4be   : > { %1827 = vxpose.xlu1.c.b16.start.end [1/1] (short) (narrow) %v1826_v6, 32 }
 0x4cf   : > { %1380 = vadd.xlane.f32.xlu1 %v4613_v45 }
 0x4d0   : > { %v1293_v53 = vpop.xlane.xlu1 %1292 }
 0x4d1   : > { %v1310_v63 = vsub.f32 %v4505_v51, %v1293_v53 }
 0x4d3   : > { %v1340_v1 = vmul.f32 1.442695, %v1310_v63 }
 0x4d4   : > { %v1289_v40 = vpop.xlane.xlu1 %1288 }
 0x4d5   : > { %3303 = vpow2.f32 %v1340_v1  ;;  %v1308_v52 = vsub.f32 %v4511_v25, %v1289_v40  ;;  %v1677_v25 = vpop.trf.xlu0 }
 0x4d7   : > { %v1336_v29 = vmul.f32 1.442695, %v1308_v52 }
 0x4d9   : > { %3305 = vpow2.f32 %v1336_v29  ;;  %v1678_v16 = vpop.trf.xlu0 }
 0x4da   : > { %v1518_v8 = vpop.trf.xlu1 }
 0x4db   : > { %3024 = vmatprep.mubr.msk.bf16.mxu1 %vm1526_vm7, %v1518_v8 }
 0x4dd   : > { %v1367_v32 = vpop.xlane.xlu0 %1366 }
 0x4de   : > { %v1519_v4 = vpop.trf.xlu1 }
 0x4df   : > { %v3304_v15 = vpop.eup %3303 }
 0x4e0   : > { %v4621_v6 = vsel %vm1247_vm0, %v3304_v15, 0.0 }
 0x4e1   : > { %1388 = vadd.xlane.f32.xlu1 %v4621_v6  ;;  %v1363_v3 = vpop.xlane.xlu0 %1362 }
 0x4e2   : > { %3307 = vrcp.f32 %v1363_v3 }
 0x4e3   : > { %v3306_v31 = vpop.eup %3305 }
 0x4e4   : > { %v4626_v51 = vsel %vm1247_vm0, %v3306_v31, 0.0 }
 0x4e5   : > { %1384 = vadd.xlane.f32.xlu1 %v4626_v51  ;;  %v1993_v14 = vpop.trf.xlu0 }
 0x4e9   : > { %2301 = vxpose.xlu0.c.b16.start.end [1/1] (short) (narrow) %v2300_v10, 32  ;;  %v1994_v27 = vpop.trf.xlu0 }
 0x4ec   : > { %v3308_v36 = vpop.eup %3307 }
 0x4ed   : > { %v1425_v33 = vmul.f32 %v3308_v36, %v4499_v44 }
 0x4ee   : > { %2617 = vxpose.xlu0.c.b16.start.end [1/1] (short) (narrow) %v2616_v21, 32 }
 0x509   : > { %v1371_v46 = vpop.xlane.xlu0 %1370 }
 0x50d   : > { %v1373_v59 = vpop.xlane.xlu0 %1372 }
 0x512   : > { %2143 = vxpose.xlu1.c.b16.start.end [1/1] (short) (narrow) %v2142_v5, 32  ;;  %v1365_v24 = vpop.xlane.xlu1 %1364 }
 0x513   : > { %3309 = vrcp.f32 %v1365_v24 }
 0x514   : > { %3311 = vrcp.f32 %v1367_v32 }
 0x516   : > { %v1361_v23 = vpop.xlane.xlu1 %1360 }
 0x517   : > { %3313 = vrcp.f32 %v1361_v23  ;;  %2459 = vxpose.xlu1.c.b16.start.end [1/1] (short) (narrow) %v2458_v22, 32 }
 0x518   : > { %3315 = vrcp.f32 %v1371_v46 }
 0x51a   : > { %v1369_v10 = vpop.xlane.xlu1 %1368 }
 0x51b   : > { %3317 = vrcp.f32 %v1369_v10 }
 0x51d   : > { %v3310_v21 = vpop.eup %3309 }
 0x51e   : > { %v1375_v30 = vpop.xlane.xlu1 %1374  ;;  %v3312_v0 = vpop.eup %3311  ;;  %v1426_v12 = vmul.f32 %v3310_v21, %v4550_v26 }
 0x51f   : > { %3319 = vrcp.f32 %v1375_v30  ;;  %v1427_v48 = vmul.f32 %v3312_v0, %v4494_v7 }
 0x520   : > { %3321 = vrcp.f32 %v1373_v59 }
 0x521   : > { %v3314_v13 = vpop.eup %3313  ;;  %v1441_v38 = vpack.c.bf16 %v1427_v48, %v1426_v12 }
 0x522   : > { %v1424_v5 = vmul.f32 %v3314_v13, %v4555_v58  ;;  %v3316_v35 = vpop.eup %3315 }
 0x523   : > { %v1429_v22 = vmul.f32 %v3316_v35, %v4540_v54 }
 0x524   : > { %v1440_v2 = vpack.c.bf16 %v1425_v33, %v1424_v5  ;;  %v1835_v28 = vpop.trf.xlu1 }
 0x525   : > { %v3318_v50 = vpop.eup %3317 }
 0x526   : > { %3022 = vmatprep.subr.bf16.mxu1 %v1440_v2  ;;  %v1428_v37 = vmul.f32 %v3318_v50, %v4560_v49 }
 0x527   : > { %3023 = vmatpush3.bf16.msra.mxu1 %v1440_v2 }
 0x528   : > { %3028 = vmatprep.subr.bf16.mxu1 %v1441_v38  ;;  %v1442_v58 = vpack.c.bf16 %v1429_v22, %v1428_v37  ;;  %v1836_v54 = vpop.trf.xlu1 }
 0x529   : > { %v3320_v44 = vpop.eup %3319 }
 0x52a   : > { %3025 = vmatmul.mubr.msk.bf16.vlgmr.msra.gmra.mrb[20].mxu1 %vm1526_vm7, %v1519_v4  ;;  %v3322_v26 = vpop.eup %3321  ;;  %v1431_v7 = vmul.f32 %v3320_v44, %v4565_v47 }
 0x52b   : > { %3029 = vmatpush3.bf16.msra.mxu1 %v1441_v38  ;;  %3030 = vmatprep.mubr.msk.bf16.mxu1 %vm1526_vm7, %v1677_v25  ;;  %v1430_v39 = vmul.f32 %v3322_v26, %v4545_v17 }
 0x52c   : > { %3034 = vmatprep.subr.bf16.mxu1 %v1442_v58 }
 0x52d   : > { %v1443_v49 = vpack.c.bf16 %v1431_v7, %v1430_v39 }
 0x532   : > { %3031 = vmatmul.mubr.msk.bf16.vlgmr.msra.gmra.mrb[24].mxu1 %vm1526_vm7, %v1678_v16 }
 0x533   : > { %3035 = vmatpush3.bf16.msra.mxu1 %v1442_v58  ;;  %3036 = vmatprep.mubr.msk.bf16.mxu1 %vm1526_vm7, %v1835_v28 }
 0x534   : > { %3040 = vmatprep.subr.bf16.mxu1 %v1443_v49 }
 0x539   : > { %v1377_v9 = vpop.xlane.xlu0 %1376 }
 0x53a   : > { %3037 = vmatmul.mubr.msk.bf16.vlgmr.msra.gmra.mrb[28].mxu1 %vm1526_vm7, %v1836_v54  ;;  %3323 = vrcp.f32 %v1377_v9 }
 0x53b   : > { %3041 = vmatpush3.bf16.msra.mxu1 %v1443_v49  ;;  %3042 = vmatprep.mubr.msk.bf16.mxu1 %vm1526_vm7, %v1993_v14 }
 0x53d   : > { %v1383_v43 = vpop.xlane.xlu0 %1382 }
 0x541   : > { %v1379_v47 = vpop.xlane.xlu0 %1378 }
 0x542   : > { %3325 = vrcp.f32 %v1379_v47  ;;  %3043 = vmatmul.mubr.msk.bf16.vlgmr.msra.gmra.mrb[32].mxu1 %vm1526_vm7, %v1994_v27 }
 0x543   : > { %3327 = vrcp.f32 %v1383_v43 }
 0x544   : > { %v3324_v57 = vpop.eup %3323 }
 0x545   : > { %v1391_v17 = vpop.xlane.xlu0 %1390  ;;  %v1432_v18 = vmul.f32 %v3324_v57, %v4583_v11 }
 0x549   : > { %v1387_v56 = vpop.xlane.xlu0 %1386 }
 0x54c   : > { %v3326_v60 = vpop.eup %3325 }
 0x54d   : > { %v1433_v19 = vmul.f32 %v3326_v60, %v4593_v20  ;;  %v3328_v53 = vpop.eup %3327 }
 0x54e   : > { %v1435_v40 = vmul.f32 %v3328_v53, %v4588_v55 }
 0x54f   : > { %v1444_v62 = vpack.c.bf16 %v1433_v19, %v1432_v18  ;;  %v2309_v42 = vpop.trf.xlu0 }
 0x550   : > { %3054 = vmatprep.mubr.msk.bf16.mxu1 %vm1526_vm7, %v2309_v42 }
 0x551   : > { %3046 = vmatprep.subr.bf16.mxu0 %v1444_v62 }
 0x552   : > { %3047 = vmatpush3.bf16.msra.mxu0 %v1444_v62 }
 0x553   : > { %v2310_v11 = vpop.trf.xlu0 }
 0x557   : > { %v2625_v29 = vpop.trf.xlu0 }
 0x55b   : > { %v2626_v24 = vpop.trf.xlu0 }
 0x55c   : > { %v1381_v61 = vpop.xlane.xlu1 %1380 }
 0x55d   : > { %3329 = vrcp.f32 %v1381_v61 }
 0x55e   : > { %3331 = vrcp.f32 %v1391_v17 }
 0x567   : > { %v3330_v63 = vpop.eup %3329 }
 0x568   : > { %v1434_v1 = vmul.f32 %v3330_v63, %v4613_v45  ;;  %v3332_v15 = vpop.eup %3331 }
 0x569   : > { %v1439_v25 = vmul.f32 %v3332_v15, %v4598_v34 }
 0x56a   : > { %v1445_v52 = vpack.c.bf16 %v1435_v40, %v1434_v1 }
 0x56c   : > { %3052 = vmatprep.subr.bf16.mxu1 %v1445_v52 }
 0x56d   : > { %3053 = vmatpush3.bf16.msra.mxu1 %v1445_v52 }
 0x56e   : > { %v1389_v20 = vpop.xlane.xlu1 %1388 }
 0x56f   : > { %3333 = vrcp.f32 %v1389_v20 }
 0x570   : > { %3055 = vmatmul.mubr.msk.bf16.vlgmr.msra.gmra.mrb[36].mxu1 %vm1526_vm7, %v2310_v11  ;;  %3335 = vrcp.f32 %v1387_v56 }
 0x571   : > { %3066 = vmatprep.mubr.msk.bf16.mxu1 %vm1526_vm7, %v2625_v29 }
 0x572   : > { %v1385_v8 = vpop.xlane.xlu1 %1384 }
 0x573   : > { %3337 = vrcp.f32 %v1385_v8 }
 0x578   : > { %v2151_v31 = vpop.trf.xlu1 }
 0x579   : > { %v3334_v45 = vpop.eup %3333  ;;  %3048 = vmatprep.mubr.msk.bf16.mxu0 %vm1526_vm7, %v2151_v31 }
 0x57a   : > { %v1438_v55 = vmul.f32 %v3334_v45, %v4621_v6  ;;  %v3336_v16 = vpop.eup %3335 }
 0x57b   : > { %v1437_v27 = vmul.f32 %v3336_v16, %v4605_v41 }
 0x57c   : > { %v2152_v32 = vpop.trf.xlu1  ;;  %v1447_v3 = vpack.c.bf16 %v1439_v25, %v1438_v55 }
 0x57d   : > { %v3338_v14 = vpop.eup %3337  ;;  %3049 = vmatmul.mubr.msk.bf16.vlgmr.msra.gmra.mrb[36].mxu0 %vm1526_vm7, %v2152_v32 }
 0x57e   : > { %3064 = vmatprep.subr.bf16.mxu1 %v1447_v3  ;;  %v1436_v4 = vmul.f32 %v3338_v14, %v4626_v51 }
 0x57f   : > { %3065 = vmatpush3.bf16.msra.mxu1 %v1447_v3 }
 0x580   : > { %v2467_v23 = vpop.trf.xlu1  ;;  %v1446_v46 = vpack.c.bf16 %v1437_v27, %v1436_v4 }
 0x581   : > { %3060 = vmatprep.mubr.msk.bf16.mxu0 %vm1526_vm7, %v2467_v23 }
 0x582   : > { %3058 = vmatprep.subr.bf16.mxu0 %v1446_v46  ;;  %3067 = vmatmul.mubr.msk.bf16.vlgmr.msra.gmra.mrb[40].mxu1 %vm1526_vm7, %v2626_v24 }
 0x583   : > { %3059 = vmatpush3.bf16.msra.mxu0 %v1446_v46 }
 0x584   : > { %v2468_v34 = vpop.trf.xlu1 }
 0x586   : > { %3061 = vmatmul.mubr.msk.bf16.vlgmr.msra.gmra.mrb[40].mxu0 %vm1526_vm7, %v2468_v34 }
 0x5fd   : > { %v3026_v6 = vpop.f32.mrb[20].mxu1 }
 0x5fe   : > { %v1567_v10 = vpop.f32.mrb[21].mxu1  ;;  %v1584_v21 = vmul.f32 %v3026_v6, %v3026_v6 }
 0x5ff   : > { %v1582_v36 = vmul.f32 %v1567_v10, %v1567_v10  ;;  %v3027_v30 = vpop.f32.mrb[22].mxu1 }
 0x600   : > { %v1570_v51 = vpop.f32.mrb[23].mxu1  ;;  %v1585_v0 = vmul.f32 %v3027_v30, %v3027_v30 }
 0x601   : > { %v1583_v41 = vmul.f32 %v1570_v51, %v1570_v51 }
 0x603   : > { %v1586_v59 = vadd.f32 %v1583_v41, %v1582_v36 }
 0x605   : > { %v1587_v13 = vadd.f32 %v1586_v59, %v1584_v21  ;;  %v3032_v5 = vpop.f32.mrb[24].mxu1 }
 0x606   : > { %v1725_v33 = vpop.f32.mrb[25].mxu1  ;;  %v1742_v38 = vmul.f32 %v3032_v5, %v3032_v5 }
 0x607   : > { %v1588_v12 = vadd.f32 %v1587_v13, %v1585_v0  ;;  %v1740_v35 = vmul.f32 %v1725_v33, %v1725_v33  ;;  %v3033_v2 = vpop.f32.mrb[26].mxu1 }
 0x608   : > { %v1728_v48 = vpop.f32.mrb[27].mxu1  ;;  %v1743_v58 = vmul.f32 %v3033_v2, %v3033_v2 }
 0x609   : > { %v1589_v50 = vrot.slane %v1588_v12, 4  ;;  %v1741_v37 = vmul.f32 %v1728_v48, %v1728_v48 }
 0x60b   : > { %v1590_v22 = vadd.f32 %v1589_v50, %v1588_v12  ;;  %v1744_v44 = vadd.f32 %v1741_v37, %v1740_v35 }
 0x60d   : > { %v1591_v26 = vrot.slane %v1590_v22, 2  ;;  %v1745_v7 = vadd.f32 %v1744_v44, %v1742_v38  ;;  %v3038_v39 = vpop.f32.mrb[28].mxu1 }
 0x60e   : > { %v1883_v28 = vpop.f32.mrb[29].mxu1  ;;  %v1900_v60 = vmul.f32 %v3038_v39, %v3038_v39 }
 0x60f   : > { %v1592_v49 = vadd.f32 %v1591_v26, %v1590_v22  ;;  %v1746_v54 = vadd.f32 %v1745_v7, %v1743_v58  ;;  %v1898_v9 = vmul.f32 %v1883_v28, %v1883_v28  ;;  %v3039_v43 = vpop.f32.mrb[30].mxu1 }
 0x610   : > { %v1886_v47 = vpop.f32.mrb[31].mxu1  ;;  %v1901_v42 = vmul.f32 %v3039_v43, %v3039_v43 }
 0x611   : > { %v1593_v17 = vrot.slane %v1592_v49, 1  ;;  %v1747_v57 = vrot.slane %v1746_v54, 4  ;;  %v1899_v56 = vmul.f32 %v1886_v47, %v1886_v47 }
 0x613   : > { %v4672_v18 = vadd.f32 %v1593_v17, %v1592_v49  ;;  %v1748_v19 = vadd.f32 %v1747_v57, %v1746_v54  ;;  %v1902_v62 = vadd.f32 %v1899_v56, %v1898_v9 }
 0x615   : > { %3339 = vrsqrt.f32 %v4672_v18  ;;  %v3044_v61 = vpop.f32.mrb[32].mxu1  ;;  %v1749_v53 = vrot.slane %v1748_v19, 2  ;;  %v1903_v63 = vadd.f32 %v1902_v62, %v1900_v60  ;;  %vm1597_vm8 = vcmp.eq.f32.partialorder %v4672_v18, inf }
 0x616   : > { %v2041_v1 = vpop.f32.mrb[33].mxu1  ;;  %v2058_v8 = vmul.f32 %v3044_v61, %v3044_v61  ;;  %v1600_v23 = vand.u32 2147483648, %v4672_v18  ;;  %vm1599_vm9 = vcmp.eq.f32.partialorder %v4672_v18, 0.0  ;;  %v1602_v59 = vadd.f32 1.0, %v4672_v18 }
 0x617   : > { %v2056_v40 = vmul.f32 %v2041_v1, %v2041_v1  ;;  %v3045_v52 = vpop.f32.mrb[34].mxu1  ;;  %v1750_v11 = vadd.f32 %v1749_v53, %v1748_v19  ;;  %v1904_v20 = vadd.f32 %v1903_v63, %v1901_v42 }
 0x618   : > { %v2044_v29 = vpop.f32.mrb[35].mxu1  ;;  %v2059_v55 = vmul.f32 %v3045_v52, %v3045_v52 }
 0x619   : > { %v2057_v15 = vmul.f32 %v2044_v29, %v2044_v29  ;;  %v1751_v31 = vrot.slane %v1750_v11, 1  ;;  %v1905_v45 = vrot.slane %v1904_v20, 4 }
 0x61b   : > { %v2060_v25 = vadd.f32 %v2057_v15, %v2056_v40  ;;  %v1752_v16 = vadd.f32 %v1751_v31, %v1750_v11  ;;  %v1906_v32 = vadd.f32 %v1905_v45, %v1904_v20 }
 0x61d   : > { %v2061_v3 = vadd.f32 %v2060_v25, %v2058_v8  ;;  %3341 = vrsqrt.f32 %v1752_v16  ;;  %v1907_v4 = vrot.slane %v1906_v32, 2  ;;  %v1760_v33 = vadd.f32 1.0, %v1752_v16 }
 0x61e   : > { %vm1755_vm10 = vcmp.eq.f32.partialorder %v1752_v16, inf  ;;  %v1758_v12 = vand.u32 2147483648, %v1752_v16  ;;  %vm1757_vm11 = vcmp.eq.f32.partialorder %v1752_v16, 0.0 }
 0x61f   : > { %v3340_v14 = vpop.eup %3339  ;;  %v2062_v27 = vadd.f32 %v2061_v3, %v2059_v55  ;;  %v1908_v46 = vadd.f32 %v1907_v4, %v1906_v32 }
 0x620   : > { %v1596_v24 = vmul.f32 %v3340_v14, %v4672_v18 }
 0x621   : > { %v2063_v34 = vrot.slane %v2062_v27, 4  ;;  %v1909_v10 = vrot.slane %v1908_v46, 1 }
 0x622   : > { %v1598_v6 = vsel %vm1597_vm8, %v4672_v18, %v1596_v24 }
 0x623   : > { %v2064_v36 = vadd.f32 %v2063_v34, %v2062_v27  ;;  %v1601_v30 = vsel %vm1599_vm9, %v1600_v23, %v1598_v6  ;;  %v1910_v51 = vadd.f32 %v1909_v10, %v1908_v46 }
 0x624   : > { %v1605_v41 = vadd.f32 1e-08, %v1601_v30 }
 0x625   : > { %v2065_v21 = vrot.slane %v2064_v36, 2  ;;  %3343 = vrsqrt.f32 %v1910_v51  ;;  %v1918_v37 = vadd.f32 1.0, %v1910_v51  ;;  %vm1913_vm12 = vcmp.eq.f32.partialorder %v1910_v51, inf }
 0x626   : > { %3345 = vrcp.f32 %v1605_v41  ;;  %v1916_v58 = vand.u32 2147483648, %v1910_v51  ;;  %vm1915_vm13 = vcmp.eq.f32.partialorder %v1910_v51, 0.0 }
 0x627   : > { %v3342_v0 = vpop.eup %3341  ;;  %v2066_v13 = vadd.f32 %v2065_v21, %v2064_v36  ;;  %3347 = vrcp.f32 %v1602_v59 }
 0x628   : > { %v1754_v5 = vmul.f32 %v3342_v0, %v1752_v16  ;;  %3349 = vrcp.f32 %v1760_v33 }
 0x629   : > { %v2067_v35 = vrot.slane %v2066_v13, 1 }
 0x62a   : > { %v1756_v2 = vsel %vm1755_vm10, %v1752_v16, %v1754_v5 }
 0x62b   : > { %v1759_v48 = vsel %vm1757_vm11, %v1758_v12, %v1756_v2  ;;  %v2068_v50 = vadd.f32 %v2067_v35, %v2066_v13  ;;  %vm2721_vm11 = vcmask 1043456  }
 0x62c   : > { %v1763_v38 = vadd.f32 1e-08, %v1759_v48 }
 0x62d   : > { %3351 = vrsqrt.f32 %v2068_v50  ;;  %v2076_v56 = vadd.f32 1.0, %v2068_v50  ;;  %vm2071_vm14 = vcmp.eq.f32.partialorder %v2068_v50, inf  ;;  %v2074_v62 = vand.u32 2147483648, %v2068_v50 }
 0x62e   : > { %3353 = vrcp.f32 %v1763_v38  ;;  %vm2073_vm1 = vcmp.eq.f32.partialorder %v2068_v50, 0.0 }
 0x62f   : > { %v3344_v22 = vpop.eup %3343  ;;  %3355 = vrcp.f32 %v1918_v37 }
 0x630   : > { %v1912_v44 = vmul.f32 %v3344_v22, %v1910_v51  ;;  %v3346_v7 = vpop.eup %3345 }
 0x631   : > { %v3348_v28 = vpop.eup %3347  ;;  %v1607_v43 = vmul.f32 %v3346_v7, %v1601_v30 }
 0x632   : > { %v1914_v26 = vsel %vm1913_vm12, %v1910_v51, %v1912_v44  ;;  %v3350_v54 = vpop.eup %3349  ;;  %v1604_v17 = vmul.f32 %v3348_v28, %v4672_v18  ;;  %vm2723_vm12 = vcmask 1044480  }
 0x633   : > { %v1917_v39 = vsel %vm1915_vm13, %v1916_v58, %v1914_v26  ;;  %v1762_v60 = vmul.f32 %v3350_v54, %v1752_v16  ;;  %vm2725_vm13 = vcmask 1045504  }
 0x634   : > { %v1921_v49 = vadd.f32 1e-08, %v1917_v39  ;;  %v1608_v61 = vmul.f32 %v1607_v43, %v1604_v17 }
 0x636   : > { %3357 = vrcp.f32 %v1921_v49 }
 0x637   : > { %v3352_v9 = vpop.eup %3351  ;;  %3359 = vrcp.f32 %v2076_v56 }
 0x638   : > { %v3354_v47 = vpop.eup %3353  ;;  %v2070_v57 = vmul.f32 %v3352_v9, %v2068_v50 }
 0x639   : > { %v1765_v19 = vmul.f32 %v3354_v47, %v1759_v48  ;;  %v3356_v40 = vpop.eup %3355 }
 0x63a   : > { %v2072_v42 = vsel %vm2071_vm14, %v2068_v50, %v2070_v57  ;;  %v1920_v11 = vmul.f32 %v3356_v40, %v1910_v51  ;;  %vm2727_vm14 = vcmask 1046528  }
 0x63b   : > { %v1766_v53 = vmul.f32 %v1765_v19, %v1762_v60  ;;  %v2075_v63 = vsel %vm2073_vm1, %v2074_v62, %v2072_v42 }
 0x63c   : > { %v2079_v1 = vadd.f32 1e-08, %v2075_v63 }
 0x63d   : > { %v2716_v52 = vsel %vm2715_vm15, %v1608_v61, %v1766_v53 }
 0x63e   : > { %3361 = vrcp.f32 %v2079_v1 }
 0x640   : > { %v3358_v20 = vpop.eup %3357 }
 0x641   : > { %v1923_v18 = vmul.f32 %v3358_v20, %v1917_v39  ;;  %v3360_v25 = vpop.eup %3359 }
 0x642   : > { %v2078_v24 = vmul.f32 %v3360_v25, %v2068_v50 }
 0x643   : > { %v3056_v29 = vpop.f32.mrb[36].mxu1  ;;  %v1924_v15 = vmul.f32 %v1923_v18, %v1920_v11 }
 0x644   : > { %v2357_v8 = vpop.f32.mrb[37].mxu1  ;;  %v2374_v32 = vmul.f32 %v3056_v29, %v3056_v29 }
 0x645   : > { %v2372_v31 = vmul.f32 %v2357_v8, %v2357_v8  ;;  %v3057_v45 = vpop.f32.mrb[38].mxu1  ;;  %v2718_v16 = vsel %vm2717_vm2, %v2716_v52, %v1924_v15 }
 0x646   : > { %v2360_v55 = vpop.f32.mrb[39].mxu1  ;;  %v2375_v4 = vmul.f32 %v3057_v45, %v3057_v45 }
 0x647   : > { %v2373_v3 = vmul.f32 %v2360_v55, %v2360_v55 }
 0x648   : > { %v3362_v14 = vpop.eup %3361 }
 0x649   : > { %v2376_v27 = vadd.f32 %v2373_v3, %v2372_v31  ;;  %v2081_v23 = vmul.f32 %v3362_v14, %v2075_v63 }
 0x64b   : > { %v2377_v46 = vadd.f32 %v2376_v27, %v2374_v32  ;;  %v2082_v34 = vmul.f32 %v2081_v23, %v2078_v24 }
 0x64d   : > { %v2378_v6 = vadd.f32 %v2377_v46, %v2375_v4  ;;  %v4682_v10 = vsel %vm2719_vm3, %v2718_v16, %v2082_v34 }
 0x64f   : > { %v2379_v36 = vrot.slane %v2378_v6, 4 }
 0x650   : > { %v3050_v30 = vpop.f32.mrb[36].mxu0 }
 0x651   : > { %v2380_v51 = vadd.f32 %v2379_v36, %v2378_v6  ;;  %v2199_v21 = vpop.f32.mrb[37].mxu0  ;;  %v2216_v35 = vmul.f32 %v3050_v30, %v3050_v30 }
 0x652   : > { %v3051_v41 = vpop.f32.mrb[38].mxu0  ;;  %v2214_v13 = vmul.f32 %v2199_v21, %v2199_v21 }
 0x653   : > { %v2381_v0 = vrot.slane %v2380_v51, 2  ;;  %v2202_v59 = vpop.f32.mrb[39].mxu0  ;;  %v2217_v37 = vmul.f32 %v3051_v41, %v3051_v41 }
 0x654   : > { %v2215_v5 = vmul.f32 %v2202_v59, %v2202_v59 }
 0x655   : > { %v2382_v33 = vadd.f32 %v2381_v0, %v2380_v51  ;;  %v3068_v12 = vpop.f32.mrb[40].mxu1 }
 0x656   : > { %v2218_v2 = vadd.f32 %v2215_v5, %v2214_v13  ;;  %v2673_v48 = vpop.f32.mrb[41].mxu1  ;;  %v2690_v49 = vmul.f32 %v3068_v12, %v3068_v12 }
 0x657   : > { %v2383_v50 = vrot.slane %v2382_v33, 1  ;;  %v3069_v38 = vpop.f32.mrb[42].mxu1  ;;  %v2688_v58 = vmul.f32 %v2673_v48, %v2673_v48 }
 0x658   : > { %v2219_v22 = vadd.f32 %v2218_v2, %v2216_v35  ;;  %v2676_v44 = vpop.f32.mrb[43].mxu1  ;;  %v2691_v19 = vmul.f32 %v3069_v38, %v3069_v38 }
 0x659   : > { %v4684_v26 = vadd.f32 %v2383_v50, %v2382_v33  ;;  %v2689_v7 = vmul.f32 %v2676_v44, %v2676_v44  ;;  %v3062_v39 = vpop.f32.mrb[40].mxu0 }
 0x65a   : > { %v2220_v28 = vadd.f32 %v2219_v22, %v2217_v37  ;;  %v2515_v54 = vpop.f32.mrb[41].mxu0  ;;  %v2532_v42 = vmul.f32 %v3062_v39, %v3062_v39 }
 0x65b   : > { %3363 = vrsqrt.f32 %v4684_v26  ;;  %v3063_v9 = vpop.f32.mrb[42].mxu0  ;;  %v2692_v47 = vadd.f32 %v2689_v7, %v2688_v58  ;;  %v2530_v57 = vmul.f32 %v2515_v54, %v2515_v54  ;;  %vm2387_vm4 = vcmp.eq.f32.partialorder %v4684_v26, inf }
 0x65c   : > { %v2221_v43 = vrot.slane %v2220_v28, 4  ;;  %v2518_v17 = vpop.f32.mrb[43].mxu0  ;;  %v2533_v1 = vmul.f32 %v3063_v9, %v3063_v9  ;;  %v2390_v27 = vand.u32 2147483648, %v4684_v26  ;;  %vm2389_vm5 = vcmp.eq.f32.partialorder %v4684_v26, 0.0 }
 0x65d   : > { %v2531_v56 = vmul.f32 %v2518_v17, %v2518_v17  ;;  %v2693_v62 = vadd.f32 %v2692_v47, %v2690_v49  ;;  %v2392_v21 = vadd.f32 1.0, %v4684_v26 }
 0x65e   : > { %v2222_v60 = vadd.f32 %v2221_v43, %v2220_v28 }
 0x65f   : > { %v2534_v61 = vadd.f32 %v2531_v56, %v2530_v57  ;;  %v2694_v63 = vadd.f32 %v2693_v62, %v2691_v19 }
 0x660   : > { %v2223_v53 = vrot.slane %v2222_v60, 2 }
 0x661   : > { %v2535_v40 = vadd.f32 %v2534_v61, %v2532_v42  ;;  %v2695_v11 = vrot.slane %v2694_v63, 4 }
 0x662   : > { %v2224_v52 = vadd.f32 %v2223_v53, %v2222_v60 }
 0x663   : > { %v2536_v20 = vadd.f32 %v2535_v40, %v2533_v1  ;;  %v2696_v29 = vadd.f32 %v2695_v11, %v2694_v63 }
 0x664   : > { %v2225_v18 = vrot.slane %v2224_v52, 1 }
 0x665   : > { %v3364_v8 = vpop.eup %3363  ;;  %v2537_v15 = vrot.slane %v2536_v20, 4  ;;  %v2697_v45 = vrot.slane %v2696_v29, 2 }
 0x666   : > { %v2226_v31 = vadd.f32 %v2225_v18, %v2224_v52  ;;  %v2386_v25 = vmul.f32 %v3364_v8, %v4684_v26 }
 0x667   : > { %v2538_v55 = vadd.f32 %v2537_v15, %v2536_v20  ;;  %v2698_v16 = vadd.f32 %v2697_v45, %v2696_v29 }
 0x668   : > { %3365 = vrsqrt.f32 %v2226_v31  ;;  %v2388_v3 = vsel %vm2387_vm4, %v4684_v26, %v2386_v25  ;;  %v2234_v51 = vadd.f32 1.0, %v2226_v31  ;;  %vm2229_vm0 = vcmp.eq.f32.partialorder %v2226_v31, inf }
 0x669   : > { %v2539_v32 = vrot.slane %v2538_v55, 2  ;;  %v2699_v14 = vrot.slane %v2698_v16, 1  ;;  %v2391_v46 = vsel %vm2389_vm5, %v2390_v27, %v2388_v3  ;;  %v2232_v41 = vand.u32 2147483648, %v2226_v31 }
 0x66a   : > { %v2395_v36 = vadd.f32 1e-08, %v2391_v46  ;;  %vm2231_vm6 = vcmp.eq.f32.partialorder %v2226_v31, 0.0 }
 0x66b   : > { %v2540_v4 = vadd.f32 %v2539_v32, %v2538_v55  ;;  %v4692_v24 = vadd.f32 %v2699_v14, %v2698_v16 }
 0x66d   : > { %v2541_v23 = vrot.slane %v2540_v4, 1  ;;  %3367 = vrsqrt.f32 %v4692_v24  ;;  %vm2703_vm7 = vcmp.eq.f32.partialorder %v4692_v24, inf  ;;  %v2706_v12 = vand.u32 2147483648, %v4692_v24 }
 0x66e   : > { %vm2705_vm8 = vcmp.eq.f32.partialorder %v4692_v24, 0.0  ;;  %v2708_v58 = vadd.f32 1.0, %v4692_v24 }
 0x66f   : > { %v2542_v34 = vadd.f32 %v2541_v23, %v2540_v4 }
 0x671   : > { %3369 = vrsqrt.f32 %v2542_v34  ;;  %v2550_v37 = vadd.f32 1.0, %v2542_v34  ;;  %vm2545_vm9 = vcmp.eq.f32.partialorder %v2542_v34, inf  ;;  %v2548_v44 = vand.u32 2147483648, %v2542_v34 }
 0x672   : > { %v3366_v6 = vpop.eup %3365  ;;  %3371 = vrcp.f32 %v2395_v36  ;;  %vm2547_vm10 = vcmp.eq.f32.partialorder %v2542_v34, 0.0 }
 0x673   : > { %v2228_v30 = vmul.f32 %v3366_v6, %v2226_v31  ;;  %3373 = vrcp.f32 %v2234_v51 }
 0x674   : > { %3375 = vrcp.f32 %v2392_v21 }
 0x675   : > { %v2230_v0 = vsel %vm2229_vm0, %v2226_v31, %v2228_v30 }
 0x676   : > { %v2233_v59 = vsel %vm2231_vm6, %v2232_v41, %v2230_v0 }
 0x677   : > { %v2237_v13 = vadd.f32 1e-08, %v2233_v59  ;;  %v3368_v5 = vpop.eup %3367 }
 0x678   : > { %v2702_v33 = vmul.f32 %v3368_v5, %v4692_v24 }
 0x679   : > { %3377 = vrcp.f32 %v2237_v13 }
 0x67a   : > { %v2704_v35 = vsel %vm2703_vm7, %v4692_v24, %v2702_v33 }
 0x67b   : > { %v3370_v2 = vpop.eup %3369  ;;  %v2707_v48 = vsel %vm2705_vm8, %v2706_v12, %v2704_v35 }
 0x67c   : > { %v2711_v50 = vadd.f32 1e-08, %v2707_v48  ;;  %v2544_v38 = vmul.f32 %v3370_v2, %v2542_v34  ;;  %v3372_v22 = vpop.eup %3371 }
 0x67d   : > { %v3374_v7 = vpop.eup %3373  ;;  %v2397_v9 = vmul.f32 %v3372_v22, %v2391_v46 }
 0x67e   : > { %v2546_v39 = vsel %vm2545_vm9, %v2542_v34, %v2544_v38  ;;  %v3376_v28 = vpop.eup %3375  ;;  %3379 = vrcp.f32 %v2711_v50  ;;  %v2236_v47 = vmul.f32 %v3374_v7, %v2226_v31 }
 0x67f   : > { %v2549_v49 = vsel %vm2547_vm10, %v2548_v44, %v2546_v39  ;;  %3381 = vrcp.f32 %v2550_v37  ;;  %v2394_v57 = vmul.f32 %v3376_v28, %v4684_v26 }
 0x680   : > { %v2553_v43 = vadd.f32 1e-08, %v2549_v49  ;;  %3383 = vrcp.f32 %v2708_v58 }
 0x681   : > { %v2398_v60 = vmul.f32 %v2397_v9, %v2394_v57 }
 0x682   : > { %3385 = vrcp.f32 %v2553_v43 }
 0x683   : > { %v3378_v54 = vpop.eup %3377 }
 0x684   : > { %v2239_v17 = vmul.f32 %v3378_v54, %v2233_v59 }
 0x686   : > { %v2240_v56 = vmul.f32 %v2239_v17, %v2236_v47 }
 0x688   : > { %v2722_v19 = vsel %vm2721_vm11, %v4682_v10, %v2240_v56  ;;  %v3380_v42 = vpop.eup %3379 }
 0x689   : > { %v2724_v62 = vsel %vm2723_vm12, %v2722_v19, %v2398_v60  ;;  %v3382_v61 = vpop.eup %3381  ;;  %v2713_v1 = vmul.f32 %v3380_v42, %v2707_v48 }
 0x68a   : > { %v3384_v53 = vpop.eup %3383  ;;  %v2552_v40 = vmul.f32 %v3382_v61, %v2542_v34 }
 0x68b   : > { %v2710_v11 = vmul.f32 %v3384_v53, %v4692_v24 }
 0x68c   : > { %v3386_v63 = vpop.eup %3385 }
 0x68d   : > { %v2555_v52 = vmul.f32 %v3386_v63, %v2549_v49  ;;  %v2714_v20 = vmul.f32 %v2713_v1, %v2710_v11 }
 0x68f   : > { %v2556_v26 = vmul.f32 %v2555_v52, %v2552_v40 }
 0x691   : > { %v2726_v10 = vsel %vm2725_vm13, %v2724_v62, %v2556_v26 }
 0x692   : > { %v2728_v18 = vsel %vm2727_vm14, %v2726_v10, %v2714_v20 }
 0x693   : > { %2729 = vst [vmem:[%s318_s22] sm:$0xff] %v2728_v18 }
 0x694 PF: > { %s18_s26 = sadd.s32 1, %s3393_s26  }
 0x695   : > { %p15_p5 = scmp.ge.s32.totalorder %s18_s26, 4  }
 0x697   :  { %17 = sbr.rel (!%p15_p5) target bundleno = 2 (0x2), region = 87 }

</bundles_post_ra>
